<compile_context>
chip_gen: v5e
topology: v5e:2x2
jax: 0.10.0
libtpu: 0.0.40
codegen_flags: <defaults>
</compile_context>

<pallas_src>
import math
import functools

import numpy as np
import jax
import jax.numpy as jnp
from jax import lax
from jax.experimental import pallas as pl
from jax.experimental.pallas import tpu as pltpu


def _round_up(n, m):
    return (n + m - 1) // m * m


# ------------------------------ Pallas kernel --------------------------------

def _wdsr_kernel(x_ref, mask_ref, *refs, num_blocks, res_scale, taps3, taps5):
    """Fully fused WDSR-burst trunk for one batch element.

    x_ref   : (1, Cin_pad, H*W)      input, channels on sublanes, spatial on lanes
    mask_ref: (25, H*W)              border masks for every (dh, dw) in [-2, 2]^2
    refs    : packed (Cout_pad, KK*Cin_pad) weights and (Cout_pad, 1) biases for
              [skip, head, block_i conv1/conv2 ..., tail], then the output ref.
    """
    o_ref = refs[-1]
    prm = refs[:-1]

    def build_patches(a, taps):
        # a: (C, HW) -> (KK*C, HW); tap k contributes a[c, p + dh*W + dw] (0 outside).
        blocks = []
        for mi, sh in taps:
            if sh == 0:                                   # center tap
                blocks.append(a)
            else:
                r = pltpu.roll(a, shift=sh, axis=1)        # XLU lane rotate
                blocks.append(r * mask_ref[mi:mi + 1, :])  # zero the padded taps
        return jnp.concatenate(blocks, axis=0)

    def conv3(a, w_ref, b_ref):
        p = build_patches(a, taps3)
        return jnp.dot(w_ref[...], p,
                       preferred_element_type=jnp.float32) + b_ref[...]

    # input shift (x -= 0.5); padded extra channels only meet zero weights.
    x = x_ref[0] - 0.5

    # head (3x3, zero-padded to the 5x5 tap layout) and skip (5x5) share one
    # 25-tap patch matrix of the input -> two MXU matmuls, no re-shifting.
    p25 = build_patches(x, taps5)
    s = jnp.dot(prm[0][...], p25, preferred_element_type=jnp.float32) + prm[1][...]
    h = jnp.dot(prm[2][...], p25, preferred_element_type=jnp.float32) + prm[3][...]

    idx = 4
    for _ in range(num_blocks):
        t = jnp.maximum(conv3(h, prm[idx], prm[idx + 1]), 0.0)
        h = conv3(t, prm[idx + 2], prm[idx + 3]) * res_scale + h
        idx += 4

    # tail + skip; the final +0.5 is already folded into the tail bias.
    o_ref[0] = conv3(h, prm[idx], prm[idx + 1]) + s


# ------------------------------ wrapper / glue --------------------------------

def _build_masks(H, W):
    """(25, H*W) f32 masks: mask[(dh+2)*5+dw+2, p]=1 iff tap (dh,dw) stays in-image."""
    row = np.arange(H * W) // W
    col = np.arange(H * W) % W
    m = np.zeros((25, H * W), np.float32)
    for dh in range(-2, 3):
        for dw in range(-2, 3):
            ok = (row + dh >= 0) & (row + dh < H) & (col + dw >= 0) & (col + dw < W)
            m[(dh + 2) * 5 + (dw + 2)] = ok
    return jnp.asarray(m)


def _make_taps(K, H, W):
    """Per tap: (mask row index in the 5x5 table, lane roll amount)."""
    p, HW = K // 2, H * W
    taps = []
    for kh in range(K):
        for kw in range(K):
            dh, dw = kh - p, kw - p
            taps.append(((dh + 2) * 5 + (dw + 2), (-(dh * W + dw)) % HW))
    return tuple(taps)


def _pack_conv(w_oihw, b, cin_pad, cout_pad, pad_to_5x5=False, bias_shift=0.0):
    """Pack an OIHW conv into (Cout_pad, KK*Cin_pad) matching the kernel tap order."""
    cout, cin, kh, kw = w_oihw.shape
    if pad_to_5x5 and kh == 3:
        w_oihw = jnp.pad(w_oihw, ((0, 0), (0, 0), (1, 1), (1, 1)))
        kh = kw = 5
    wp = jnp.pad(w_oihw, ((0, cout_pad - cout), (0, cin_pad - cin), (0, 0), (0, 0)))
    wp = jnp.transpose(wp, (0, 2, 3, 1)).reshape(cout_pad, kh * kw * cin_pad)
    bp = jnp.pad(b + bias_shift, (0, cout_pad - cout)).reshape(cout_pad, 1)
    return wp, bp


def model_forward(x5, params, cfg):
    # x5: (B, T, C, H, W) — PyTorch 5-D burst input.
    B, T, C, H, W = x5.shape
    HW = H * W
    r = cfg['scale']
    nf = cfg['num_residual_units']
    wm = cfg['width_multiplier']
    nb = cfg['num_blocks']
    in_ch = T * C
    out_feats = r * r * C

    cin_pad = _round_up(in_ch, 8)
    out_pad = _round_up(out_feats, 8)
    res_scale = 1.0 / math.sqrt(nb)

    # ---- pack all weights once (tiny) ----
    w_skip, b_skip = _pack_conv(*params['skip'], cin_pad, out_pad, pad_to_5x5=True)
    w_head, b_head = _pack_conv(*params['head'], cin_pad, nf, pad_to_5x5=True)
    flat = [w_skip, b_skip, w_head, b_head]
    for (wa, ba), (wb, bb) in params['blocks']:
        flat += list(_pack_conv(wa, ba, nf, nf * wm))
        flat += list(_pack_conv(wb, bb, nf * wm, nf))
    flat += list(_pack_conv(*params['tail'], nf, out_pad, bias_shift=0.5))

    masks = _build_masks(H, W)
    taps3 = _make_taps(3, H, W)
    taps5 = _make_taps(5, H, W)

    # ---- input: (B, T*C, H*W), channel dim padded to a sublane multiple ----
    x = x5.reshape(B, in_ch, HW)
    if cin_pad > in_ch:
        x = jnp.pad(x, ((0, 0), (0, cin_pad - in_ch), (0, 0)))

    kernel = functools.partial(_wdsr_kernel, num_blocks=nb, res_scale=res_scale,
                               taps3=taps3, taps5=taps5)

    in_specs = [
        pl.BlockSpec((1, cin_pad, HW), lambda i: (i, 0, 0)),
        pl.BlockSpec((25, HW), lambda i: (0, 0)),
    ]
    for a in flat:                                   # weights stay VMEM-resident
        in_specs.append(pl.BlockSpec(a.shape, lambda i: (0, 0)))

    y = pl.pallas_call(
        kernel,
        out_shape=jax.ShapeDtypeStruct((B, out_pad, HW), jnp.float32),
        grid=(B,),
        in_specs=in_specs,
        out_specs=pl.BlockSpec((1, out_pad, HW), lambda i: (i, 0, 0)),
        compiler_params=pltpu.CompilerParams(dimension_semantics=("parallel",)),
    )(x, masks, *flat)

    # ---- epilogue (pure permutation): PixelShuffle + back to (B, C, 1, H*r, W*r) ----
    y = y[:, :out_feats, :].reshape(B, C, r, r, H, W)
    y = jnp.transpose(y, (0, 1, 4, 2, 5, 3)).reshape(B, C, 1, H * r, W * r)
    return y


# --------------------------- parameters (weight-norm) -------------------------

def init_wn_conv(key, cin, cout, ksize):
    """Deterministic weight-norm conv params, folded into a plain OIHW weight."""
    kv, kg, kb = jax.random.split(key, 3)
    v = jax.random.normal(kv, (cout, cin, ksize, ksize), jnp.float32) * 0.1
    g = jax.random.uniform(kg, (cout,), jnp.float32, 0.5, 1.5)
    b = jax.random.normal(kb, (cout,), jnp.float32) * 0.05
    norm = jnp.sqrt(jnp.sum(v * v, axis=(1, 2, 3)) + 1e-12)
    w = v * (g / norm)[:, None, None, None]            # OIHW, weight-norm folded
    return w, b


# -------------------------- pure-JAX reference (check) ------------------------

def _conv_ref(x, w, b, pad):
    y = lax.conv_general_dilated(x, w, (1, 1), [(pad, pad), (pad, pad)],
                                 dimension_numbers=('NCHW', 'OIHW', 'NCHW'))
    return y + b[None, :, None, None]


def model_forward_ref(x5, params, cfg):
    B, T, C, H, W = x5.shape
    r = cfg['scale']
    nb = cfg['num_blocks']
    x = x5.reshape(B, T * C, H, W) - 0.5
    s = _conv_ref(x, *params['skip'], 2)
    h = _conv_ref(x, *params['head'], 1)
    rs = 1.0 / math.sqrt(nb)
    for (wa, ba), (wb, bb) in params['blocks']:
        t = jnp.maximum(_conv_ref(h, wa, ba, 1), 0.0)
        h = _conv_ref(t, wb, bb, 1) * rs + h
    y = _conv_ref(h, *params['tail'], 1) + s
    y = y.reshape(B, C, r, r, H, W)                          # PixelShuffle(r)
    y = jnp.transpose(y, (0, 1, 4, 2, 5, 3)).reshape(B, C, H * r, W * r)
    y = y + 0.5
    return y.reshape(B, C, 1, H * r, W * r)


# ------------------------------------ main ------------------------------------

if __name__ == "__main__":
    cfg = dict(scale=2, num_blocks=2, num_residual_units=8,
               width_multiplier=2, num_channels=3, train_temporal_padding_size=1)
    T = cfg['train_temporal_padding_size'] * 2 + 1
    C = cfg['num_channels']
    in_ch = C * T
    nf = cfg['num_residual_units']
    wm = cfg['width_multiplier']
    out_feats = cfg['scale'] ** 2 * C

    root = jax.random.PRNGKey(0)
    pkey, xkey = jax.random.split(root)
    keys = jax.random.split(pkey, 3 + 2 * cfg['num_blocks'])
    params = {
        'head': init_wn_conv(keys[0], in_ch, nf, 3),
        'skip': init_wn_conv(keys[1], in_ch, out_feats, 5),
        'tail': init_wn_conv(keys[2], nf, out_feats, 3),
        'blocks': [(init_wn_conv(keys[3 + 2 * i], nf, nf * wm, 3),
                    init_wn_conv(keys[4 + 2 * i], nf * wm, nf, 3))
                   for i in range(cfg['num_blocks'])],
    }

    B, H, W = 2, 16, 16
    x5 = jax.random.uniform(xkey, (B, T, C, H, W), jnp.float32)

    y = jax.block_until_ready(model_forward(x5, params, cfg))
    y_ref = jax.block_until_ready(model_forward_ref(x5, params, cfg))

    assert y.shape == (B, C, 1, H * cfg['scale'], W * cfg['scale']), y.shape
    err = float(jnp.max(jnp.abs(y - y_ref)))
    assert jnp.allclose(y, y_ref, rtol=1e-4, atol=1e-4), err
    print("KERNEL_OK")
</pallas_src>

<mosaic_0001>
module attributes {stable_mosaic.version = 11 : i64} {
  func.func @_wdsr_kernel(%arg0: i32, %arg1: memref<1x16x256xf32, #tpu.memory_space<vmem>>, %arg2: memref<25x256xf32, #tpu.memory_space<vmem>>, %arg3: memref<16x400xf32, #tpu.memory_space<vmem>>, %arg4: memref<16x1xf32, #tpu.memory_space<vmem>>, %arg5: memref<8x400xf32, #tpu.memory_space<vmem>>, %arg6: memref<8x1xf32, #tpu.memory_space<vmem>>, %arg7: memref<16x72xf32, #tpu.memory_space<vmem>>, %arg8: memref<16x1xf32, #tpu.memory_space<vmem>>, %arg9: memref<8x144xf32, #tpu.memory_space<vmem>>, %arg10: memref<8x1xf32, #tpu.memory_space<vmem>>, %arg11: memref<16x72xf32, #tpu.memory_space<vmem>>, %arg12: memref<16x1xf32, #tpu.memory_space<vmem>>, %arg13: memref<8x144xf32, #tpu.memory_space<vmem>>, %arg14: memref<8x1xf32, #tpu.memory_space<vmem>>, %arg15: memref<16x72xf32, #tpu.memory_space<vmem>>, %arg16: memref<16x1xf32, #tpu.memory_space<vmem>>, %arg17: memref<1x16x256xf32, #tpu.memory_space<vmem>>) attributes {dimension_semantics = [#tpu.dimension_semantics<parallel>], iteration_bounds = array<i64: 2>, scalar_prefetch = 0 : i64, scratch_operands = 0 : i64, tpu.core_type = #tpu.core_type<tc>, window_params = [{transform_indices = @transform_0, window_bounds = array<i64: 1, 16, 256>}, {pipeline_mode = #tpu.pipeline_mode<synchronous>, transform_indices = @transform_1, window_bounds = array<i64: 25, 256>}, {pipeline_mode = #tpu.pipeline_mode<synchronous>, transform_indices = @transform_2, window_bounds = array<i64: 16, 400>}, {pipeline_mode = #tpu.pipeline_mode<synchronous>, transform_indices = @transform_3, window_bounds = array<i64: 16, 1>}, {pipeline_mode = #tpu.pipeline_mode<synchronous>, transform_indices = @transform_4, window_bounds = array<i64: 8, 400>}, {pipeline_mode = #tpu.pipeline_mode<synchronous>, transform_indices = @transform_5, window_bounds = array<i64: 8, 1>}, {pipeline_mode = #tpu.pipeline_mode<synchronous>, transform_indices = @transform_6, window_bounds = array<i64: 16, 72>}, {pipeline_mode = #tpu.pipeline_mode<synchronous>, transform_indices = @transform_7, window_bounds = array<i64: 16, 1>}, {pipeline_mode = #tpu.pipeline_mode<synchronous>, transform_indices = @transform_8, window_bounds = array<i64: 8, 144>}, {pipeline_mode = #tpu.pipeline_mode<synchronous>, transform_indices = @transform_9, window_bounds = array<i64: 8, 1>}, {pipeline_mode = #tpu.pipeline_mode<synchronous>, transform_indices = @transform_10, window_bounds = array<i64: 16, 72>}, {pipeline_mode = #tpu.pipeline_mode<synchronous>, transform_indices = @transform_11, window_bounds = array<i64: 16, 1>}, {pipeline_mode = #tpu.pipeline_mode<synchronous>, transform_indices = @transform_12, window_bounds = array<i64: 8, 144>}, {pipeline_mode = #tpu.pipeline_mode<synchronous>, transform_indices = @transform_13, window_bounds = array<i64: 8, 1>}, {pipeline_mode = #tpu.pipeline_mode<synchronous>, transform_indices = @transform_14, window_bounds = array<i64: 16, 72>}, {pipeline_mode = #tpu.pipeline_mode<synchronous>, transform_indices = @transform_15, window_bounds = array<i64: 16, 1>}, {transform_indices = @transform_16, window_bounds = array<i64: 1, 16, 256>}]} {
    %c0 = arith.constant 0 : index
    %c0_0 = arith.constant 0 : index
    %c0_1 = arith.constant 0 : index
    %0 = vector.load %arg1[%c0, %c0_0, %c0_1] : memref<1x16x256xf32, #tpu.memory_space<vmem>>, vector<1x16x256xf32>
    %1 = vector.shape_cast %0 : vector<1x16x256xf32> to vector<16x256xf32>
    %cst = arith.constant 5.000000e-01 : f32
    %2 = vector.broadcast %cst : f32 to vector<16x256xf32>
    %3 = arith.subf %1, %2 : vector<16x256xf32>
    %c34_i32 = arith.constant 34 : i32
    %4 = tpu.dynamic_rotate %3 by %c34_i32 dim 1 : vector<16x256xf32>, i32 -> vector<16x256xf32>
    %c0_2 = arith.constant 0 : index
    %c0_3 = arith.constant 0 : index
    %5 = vector.load %arg2[%c0_2, %c0_3] : memref<25x256xf32, #tpu.memory_space<vmem>>, vector<1x256xf32>
    %6 = vector.broadcast %5 : vector<1x256xf32> to vector<16x256xf32>
    %7 = arith.mulf %4, %6 : vector<16x256xf32>
    %c33_i32 = arith.constant 33 : i32
    %8 = tpu.dynamic_rotate %3 by %c33_i32 dim 1 : vector<16x256xf32>, i32 -> vector<16x256xf32>
    %c1 = arith.constant 1 : index
    %c0_4 = arith.constant 0 : index
    %9 = vector.load %arg2[%c1, %c0_4] : memref<25x256xf32, #tpu.memory_space<vmem>>, vector<1x256xf32>
    %10 = vector.broadcast %9 : vector<1x256xf32> to vector<16x256xf32>
    %11 = arith.mulf %8, %10 : vector<16x256xf32>
    %c32_i32 = arith.constant 32 : i32
    %12 = tpu.dynamic_rotate %3 by %c32_i32 dim 1 : vector<16x256xf32>, i32 -> vector<16x256xf32>
    %c2 = arith.constant 2 : index
    %c0_5 = arith.constant 0 : index
    %13 = vector.load %arg2[%c2, %c0_5] : memref<25x256xf32, #tpu.memory_space<vmem>>, vector<1x256xf32>
    %14 = vector.broadcast %13 : vector<1x256xf32> to vector<16x256xf32>
    %15 = arith.mulf %12, %14 : vector<16x256xf32>
    %c31_i32 = arith.constant 31 : i32
    %16 = tpu.dynamic_rotate %3 by %c31_i32 dim 1 : vector<16x256xf32>, i32 -> vector<16x256xf32>
    %c3 = arith.constant 3 : index
    %c0_6 = arith.constant 0 : index
    %17 = vector.load %arg2[%c3, %c0_6] : memref<25x256xf32, #tpu.memory_space<vmem>>, vector<1x256xf32>
    %18 = vector.broadcast %17 : vector<1x256xf32> to vector<16x256xf32>
    %19 = arith.mulf %16, %18 : vector<16x256xf32>
    %c30_i32 = arith.constant 30 : i32
    %20 = tpu.dynamic_rotate %3 by %c30_i32 dim 1 : vector<16x256xf32>, i32 -> vector<16x256xf32>
    %c4 = arith.constant 4 : index
    %c0_7 = arith.constant 0 : index
    %21 = vector.load %arg2[%c4, %c0_7] : memref<25x256xf32, #tpu.memory_space<vmem>>, vector<1x256xf32>
    %22 = vector.broadcast %21 : vector<1x256xf32> to vector<16x256xf32>
    %23 = arith.mulf %20, %22 : vector<16x256xf32>
    %c18_i32 = arith.constant 18 : i32
    %24 = tpu.dynamic_rotate %3 by %c18_i32 dim 1 : vector<16x256xf32>, i32 -> vector<16x256xf32>
    %c5 = arith.constant 5 : index
    %c0_8 = arith.constant 0 : index
    %25 = vector.load %arg2[%c5, %c0_8] : memref<25x256xf32, #tpu.memory_space<vmem>>, vector<1x256xf32>
    %26 = vector.broadcast %25 : vector<1x256xf32> to vector<16x256xf32>
    %27 = arith.mulf %24, %26 : vector<16x256xf32>
    %c17_i32 = arith.constant 17 : i32
    %28 = tpu.dynamic_rotate %3 by %c17_i32 dim 1 : vector<16x256xf32>, i32 -> vector<16x256xf32>
    %c6 = arith.constant 6 : index
    %c0_9 = arith.constant 0 : index
    %29 = vector.load %arg2[%c6, %c0_9] : memref<25x256xf32, #tpu.memory_space<vmem>>, vector<1x256xf32>
    %30 = vector.broadcast %29 : vector<1x256xf32> to vector<16x256xf32>
    %31 = arith.mulf %28, %30 : vector<16x256xf32>
    %c16_i32 = arith.constant 16 : i32
    %32 = tpu.dynamic_rotate %3 by %c16_i32 dim 1 : vector<16x256xf32>, i32 -> vector<16x256xf32>
    %c7 = arith.constant 7 : index
    %c0_10 = arith.constant 0 : index
    %33 = vector.load %arg2[%c7, %c0_10] : memref<25x256xf32, #tpu.memory_space<vmem>>, vector<1x256xf32>
    %34 = vector.broadcast %33 : vector<1x256xf32> to vector<16x256xf32>
    %35 = arith.mulf %32, %34 : vector<16x256xf32>
    %c15_i32 = arith.constant 15 : i32
    %36 = tpu.dynamic_rotate %3 by %c15_i32 dim 1 : vector<16x256xf32>, i32 -> vector<16x256xf32>
    %c8 = arith.constant 8 : index
    %c0_11 = arith.constant 0 : index
    %37 = vector.load %arg2[%c8, %c0_11] : memref<25x256xf32, #tpu.memory_space<vmem>>, vector<1x256xf32>
    %38 = vector.broadcast %37 : vector<1x256xf32> to vector<16x256xf32>
    %39 = arith.mulf %36, %38 : vector<16x256xf32>
    %c14_i32 = arith.constant 14 : i32
    %40 = tpu.dynamic_rotate %3 by %c14_i32 dim 1 : vector<16x256xf32>, i32 -> vector<16x256xf32>
    %c9 = arith.constant 9 : index
    %c0_12 = arith.constant 0 : index
    %41 = vector.load %arg2[%c9, %c0_12] : memref<25x256xf32, #tpu.memory_space<vmem>>, vector<1x256xf32>
    %42 = vector.broadcast %41 : vector<1x256xf32> to vector<16x256xf32>
    %43 = arith.mulf %40, %42 : vector<16x256xf32>
    %c2_i32 = arith.constant 2 : i32
    %44 = tpu.dynamic_rotate %3 by %c2_i32 dim 1 : vector<16x256xf32>, i32 -> vector<16x256xf32>
    %c10 = arith.constant 10 : index
    %c0_13 = arith.constant 0 : index
    %45 = vector.load %arg2[%c10, %c0_13] : memref<25x256xf32, #tpu.memory_space<vmem>>, vector<1x256xf32>
    %46 = vector.broadcast %45 : vector<1x256xf32> to vector<16x256xf32>
    %47 = arith.mulf %44, %46 : vector<16x256xf32>
    %c1_i32 = arith.constant 1 : i32
    %48 = tpu.dynamic_rotate %3 by %c1_i32 dim 1 : vector<16x256xf32>, i32 -> vector<16x256xf32>
    %c11 = arith.constant 11 : index
    %c0_14 = arith.constant 0 : index
    %49 = vector.load %arg2[%c11, %c0_14] : memref<25x256xf32, #tpu.memory_space<vmem>>, vector<1x256xf32>
    %50 = vector.broadcast %49 : vector<1x256xf32> to vector<16x256xf32>
    %51 = arith.mulf %48, %50 : vector<16x256xf32>
    %c255_i32 = arith.constant 255 : i32
    %52 = tpu.dynamic_rotate %3 by %c255_i32 dim 1 : vector<16x256xf32>, i32 -> vector<16x256xf32>
    %c13 = arith.constant 13 : index
    %c0_15 = arith.constant 0 : index
    %53 = vector.load %arg2[%c13, %c0_15] : memref<25x256xf32, #tpu.memory_space<vmem>>, vector<1x256xf32>
    %54 = vector.broadcast %53 : vector<1x256xf32> to vector<16x256xf32>
    %55 = arith.mulf %52, %54 : vector<16x256xf32>
    %c254_i32 = arith.constant 254 : i32
    %56 = tpu.dynamic_rotate %3 by %c254_i32 dim 1 : vector<16x256xf32>, i32 -> vector<16x256xf32>
    %c14 = arith.constant 14 : index
    %c0_16 = arith.constant 0 : index
    %57 = vector.load %arg2[%c14, %c0_16] : memref<25x256xf32, #tpu.memory_space<vmem>>, vector<1x256xf32>
    %58 = vector.broadcast %57 : vector<1x256xf32> to vector<16x256xf32>
    %59 = arith.mulf %56, %58 : vector<16x256xf32>
    %c242_i32 = arith.constant 242 : i32
    %60 = tpu.dynamic_rotate %3 by %c242_i32 dim 1 : vector<16x256xf32>, i32 -> vector<16x256xf32>
    %c15 = arith.constant 15 : index
    %c0_17 = arith.constant 0 : index
    %61 = vector.load %arg2[%c15, %c0_17] : memref<25x256xf32, #tpu.memory_space<vmem>>, vector<1x256xf32>
    %62 = vector.broadcast %61 : vector<1x256xf32> to vector<16x256xf32>
    %63 = arith.mulf %60, %62 : vector<16x256xf32>
    %c241_i32 = arith.constant 241 : i32
    %64 = tpu.dynamic_rotate %3 by %c241_i32 dim 1 : vector<16x256xf32>, i32 -> vector<16x256xf32>
    %c16 = arith.constant 16 : index
    %c0_18 = arith.constant 0 : index
    %65 = vector.load %arg2[%c16, %c0_18] : memref<25x256xf32, #tpu.memory_space<vmem>>, vector<1x256xf32>
    %66 = vector.broadcast %65 : vector<1x256xf32> to vector<16x256xf32>
    %67 = arith.mulf %64, %66 : vector<16x256xf32>
    %c240_i32 = arith.constant 240 : i32
    %68 = tpu.dynamic_rotate %3 by %c240_i32 dim 1 : vector<16x256xf32>, i32 -> vector<16x256xf32>
    %c17 = arith.constant 17 : index
    %c0_19 = arith.constant 0 : index
    %69 = vector.load %arg2[%c17, %c0_19] : memref<25x256xf32, #tpu.memory_space<vmem>>, vector<1x256xf32>
    %70 = vector.broadcast %69 : vector<1x256xf32> to vector<16x256xf32>
    %71 = arith.mulf %68, %70 : vector<16x256xf32>
    %c239_i32 = arith.constant 239 : i32
    %72 = tpu.dynamic_rotate %3 by %c239_i32 dim 1 : vector<16x256xf32>, i32 -> vector<16x256xf32>
    %c18 = arith.constant 18 : index
    %c0_20 = arith.constant 0 : index
    %73 = vector.load %arg2[%c18, %c0_20] : memref<25x256xf32, #tpu.memory_space<vmem>>, vector<1x256xf32>
    %74 = vector.broadcast %73 : vector<1x256xf32> to vector<16x256xf32>
    %75 = arith.mulf %72, %74 : vector<16x256xf32>
    %c238_i32 = arith.constant 238 : i32
    %76 = tpu.dynamic_rotate %3 by %c238_i32 dim 1 : vector<16x256xf32>, i32 -> vector<16x256xf32>
    %c19 = arith.constant 19 : index
    %c0_21 = arith.constant 0 : index
    %77 = vector.load %arg2[%c19, %c0_21] : memref<25x256xf32, #tpu.memory_space<vmem>>, vector<1x256xf32>
    %78 = vector.broadcast %77 : vector<1x256xf32> to vector<16x256xf32>
    %79 = arith.mulf %76, %78 : vector<16x256xf32>
    %c226_i32 = arith.constant 226 : i32
    %80 = tpu.dynamic_rotate %3 by %c226_i32 dim 1 : vector<16x256xf32>, i32 -> vector<16x256xf32>
    %c20 = arith.constant 20 : index
    %c0_22 = arith.constant 0 : index
    %81 = vector.load %arg2[%c20, %c0_22] : memref<25x256xf32, #tpu.memory_space<vmem>>, vector<1x256xf32>
    %82 = vector.broadcast %81 : vector<1x256xf32> to vector<16x256xf32>
    %83 = arith.mulf %80, %82 : vector<16x256xf32>
    %c225_i32 = arith.constant 225 : i32
    %84 = tpu.dynamic_rotate %3 by %c225_i32 dim 1 : vector<16x256xf32>, i32 -> vector<16x256xf32>
    %c21 = arith.constant 21 : index
    %c0_23 = arith.constant 0 : index
    %85 = vector.load %arg2[%c21, %c0_23] : memref<25x256xf32, #tpu.memory_space<vmem>>, vector<1x256xf32>
    %86 = vector.broadcast %85 : vector<1x256xf32> to vector<16x256xf32>
    %87 = arith.mulf %84, %86 : vector<16x256xf32>
    %c224_i32 = arith.constant 224 : i32
    %88 = tpu.dynamic_rotate %3 by %c224_i32 dim 1 : vector<16x256xf32>, i32 -> vector<16x256xf32>
    %c22 = arith.constant 22 : index
    %c0_24 = arith.constant 0 : index
    %89 = vector.load %arg2[%c22, %c0_24] : memref<25x256xf32, #tpu.memory_space<vmem>>, vector<1x256xf32>
    %90 = vector.broadcast %89 : vector<1x256xf32> to vector<16x256xf32>
    %91 = arith.mulf %88, %90 : vector<16x256xf32>
    %c223_i32 = arith.constant 223 : i32
    %92 = tpu.dynamic_rotate %3 by %c223_i32 dim 1 : vector<16x256xf32>, i32 -> vector<16x256xf32>
    %c23 = arith.constant 23 : index
    %c0_25 = arith.constant 0 : index
    %93 = vector.load %arg2[%c23, %c0_25] : memref<25x256xf32, #tpu.memory_space<vmem>>, vector<1x256xf32>
    %94 = vector.broadcast %93 : vector<1x256xf32> to vector<16x256xf32>
    %95 = arith.mulf %92, %94 : vector<16x256xf32>
    %c222_i32 = arith.constant 222 : i32
    %96 = tpu.dynamic_rotate %3 by %c222_i32 dim 1 : vector<16x256xf32>, i32 -> vector<16x256xf32>
    %c24 = arith.constant 24 : index
    %c0_26 = arith.constant 0 : index
    %97 = vector.load %arg2[%c24, %c0_26] : memref<25x256xf32, #tpu.memory_space<vmem>>, vector<1x256xf32>
    %98 = vector.broadcast %97 : vector<1x256xf32> to vector<16x256xf32>
    %99 = arith.mulf %96, %98 : vector<16x256xf32>
    %100 = tpu.concatenate %7, %11, %15, %19, %23, %27, %31, %35, %39, %43, %47, %51, %3, %55, %59, %63 in 0 : vector<16x256xf32>, vector<16x256xf32>, vector<16x256xf32>, vector<16x256xf32>, vector<16x256xf32>, vector<16x256xf32>, vector<16x256xf32>, vector<16x256xf32>, vector<16x256xf32>, vector<16x256xf32>, vector<16x256xf32>, vector<16x256xf32>, vector<16x256xf32>, vector<16x256xf32>, vector<16x256xf32>, vector<16x256xf32> -> vector<256x256xf32>
    %101 = tpu.concatenate %67, %71, %75, %79, %83, %87, %91, %95, %99 in 0 : vector<16x256xf32>, vector<16x256xf32>, vector<16x256xf32>, vector<16x256xf32>, vector<16x256xf32>, vector<16x256xf32>, vector<16x256xf32>, vector<16x256xf32>, vector<16x256xf32> -> vector<144x256xf32>
    %102 = tpu.concatenate %100, %101 in 0 : vector<256x256xf32>, vector<144x256xf32> -> vector<400x256xf32>
    %c0_27 = arith.constant 0 : index
    %c0_28 = arith.constant 0 : index
    %103 = vector.load %arg3[%c0_27, %c0_28] : memref<16x400xf32, #tpu.memory_space<vmem>>, vector<16x400xf32>
    %cst_29 = arith.constant dense<0.000000e+00> : vector<16x256xf32>
    %104 = tpu.matmul %103, %102, %cst_29 {dimension_numbers = #tpu.dot_dimension_numbers<[1], [0], [0], [1], [0, 0, 1, 1], [], []>} : vector<16x400xf32>, vector<400x256xf32>, vector<16x256xf32> -> vector<16x256xf32>
    %c0_30 = arith.constant 0 : index
    %c0_31 = arith.constant 0 : index
    %105 = vector.load %arg4[%c0_30, %c0_31] : memref<16x1xf32, #tpu.memory_space<vmem>>, vector<16x1xf32>
    %106 = vector.broadcast %105 : vector<16x1xf32> to vector<16x256xf32>
    %107 = arith.addf %104, %106 : vector<16x256xf32>
    %c0_32 = arith.constant 0 : index
    %c0_33 = arith.constant 0 : index
    %108 = vector.load %arg5[%c0_32, %c0_33] : memref<8x400xf32, #tpu.memory_space<vmem>>, vector<8x400xf32>
    %cst_34 = arith.constant dense<0.000000e+00> : vector<8x256xf32>
    %109 = tpu.matmul %108, %102, %cst_34 {dimension_numbers = #tpu.dot_dimension_numbers<[1], [0], [0], [1], [0, 0, 1, 1], [], []>} : vector<8x400xf32>, vector<400x256xf32>, vector<8x256xf32> -> vector<8x256xf32>
    %c0_35 = arith.constant 0 : index
    %c0_36 = arith.constant 0 : index
    %110 = vector.load %arg6[%c0_35, %c0_36] : memref<8x1xf32, #tpu.memory_space<vmem>>, vector<8x1xf32>
    %111 = vector.broadcast %110 : vector<8x1xf32> to vector<8x256xf32>
    %112 = arith.addf %109, %111 : vector<8x256xf32>
    %c17_i32_37 = arith.constant 17 : i32
    %113 = tpu.dynamic_rotate %112 by %c17_i32_37 dim 1 : vector<8x256xf32>, i32 -> vector<8x256xf32>
    %c6_38 = arith.constant 6 : index
    %c0_39 = arith.constant 0 : index
    %114 = vector.load %arg2[%c6_38, %c0_39] : memref<25x256xf32, #tpu.memory_space<vmem>>, vector<1x256xf32>
    %115 = vector.broadcast %114 : vector<1x256xf32> to vector<8x256xf32>
    %116 = arith.mulf %113, %115 : vector<8x256xf32>
    %c16_i32_40 = arith.constant 16 : i32
    %117 = tpu.dynamic_rotate %112 by %c16_i32_40 dim 1 : vector<8x256xf32>, i32 -> vector<8x256xf32>
    %c7_41 = arith.constant 7 : index
    %c0_42 = arith.constant 0 : index
    %118 = vector.load %arg2[%c7_41, %c0_42] : memref<25x256xf32, #tpu.memory_space<vmem>>, vector<1x256xf32>
    %119 = vector.broadcast %118 : vector<1x256xf32> to vector<8x256xf32>
    %120 = arith.mulf %117, %119 : vector<8x256xf32>
    %c15_i32_43 = arith.constant 15 : i32
    %121 = tpu.dynamic_rotate %112 by %c15_i32_43 dim 1 : vector<8x256xf32>, i32 -> vector<8x256xf32>
    %c8_44 = arith.constant 8 : index
    %c0_45 = arith.constant 0 : index
    %122 = vector.load %arg2[%c8_44, %c0_45] : memref<25x256xf32, #tpu.memory_space<vmem>>, vector<1x256xf32>
    %123 = vector.broadcast %122 : vector<1x256xf32> to vector<8x256xf32>
    %124 = arith.mulf %121, %123 : vector<8x256xf32>
    %c1_i32_46 = arith.constant 1 : i32
    %125 = tpu.dynamic_rotate %112 by %c1_i32_46 dim 1 : vector<8x256xf32>, i32 -> vector<8x256xf32>
    %c11_47 = arith.constant 11 : index
    %c0_48 = arith.constant 0 : index
    %126 = vector.load %arg2[%c11_47, %c0_48] : memref<25x256xf32, #tpu.memory_space<vmem>>, vector<1x256xf32>
    %127 = vector.broadcast %126 : vector<1x256xf32> to vector<8x256xf32>
    %128 = arith.mulf %125, %127 : vector<8x256xf32>
    %c255_i32_49 = arith.constant 255 : i32
    %129 = tpu.dynamic_rotate %112 by %c255_i32_49 dim 1 : vector<8x256xf32>, i32 -> vector<8x256xf32>
    %c13_50 = arith.constant 13 : index
    %c0_51 = arith.constant 0 : index
    %130 = vector.load %arg2[%c13_50, %c0_51] : memref<25x256xf32, #tpu.memory_space<vmem>>, vector<1x256xf32>
    %131 = vector.broadcast %130 : vector<1x256xf32> to vector<8x256xf32>
    %132 = arith.mulf %129, %131 : vector<8x256xf32>
    %c241_i32_52 = arith.constant 241 : i32
    %133 = tpu.dynamic_rotate %112 by %c241_i32_52 dim 1 : vector<8x256xf32>, i32 -> vector<8x256xf32>
    %c16_53 = arith.constant 16 : index
    %c0_54 = arith.constant 0 : index
    %134 = vector.load %arg2[%c16_53, %c0_54] : memref<25x256xf32, #tpu.memory_space<vmem>>, vector<1x256xf32>
    %135 = vector.broadcast %134 : vector<1x256xf32> to vector<8x256xf32>
    %136 = arith.mulf %133, %135 : vector<8x256xf32>
    %c240_i32_55 = arith.constant 240 : i32
    %137 = tpu.dynamic_rotate %112 by %c240_i32_55 dim 1 : vector<8x256xf32>, i32 -> vector<8x256xf32>
    %c17_56 = arith.constant 17 : index
    %c0_57 = arith.constant 0 : index
    %138 = vector.load %arg2[%c17_56, %c0_57] : memref<25x256xf32, #tpu.memory_space<vmem>>, vector<1x256xf32>
    %139 = vector.broadcast %138 : vector<1x256xf32> to vector<8x256xf32>
    %140 = arith.mulf %137, %139 : vector<8x256xf32>
    %c239_i32_58 = arith.constant 239 : i32
    %141 = tpu.dynamic_rotate %112 by %c239_i32_58 dim 1 : vector<8x256xf32>, i32 -> vector<8x256xf32>
    %c18_59 = arith.constant 18 : index
    %c0_60 = arith.constant 0 : index
    %142 = vector.load %arg2[%c18_59, %c0_60] : memref<25x256xf32, #tpu.memory_space<vmem>>, vector<1x256xf32>
    %143 = vector.broadcast %142 : vector<1x256xf32> to vector<8x256xf32>
    %144 = arith.mulf %141, %143 : vector<8x256xf32>
    %145 = tpu.concatenate %116, %120, %124, %128, %112, %132, %136, %140, %144 in 0 : vector<8x256xf32>, vector<8x256xf32>, vector<8x256xf32>, vector<8x256xf32>, vector<8x256xf32>, vector<8x256xf32>, vector<8x256xf32>, vector<8x256xf32>, vector<8x256xf32> -> vector<72x256xf32>
    %c0_61 = arith.constant 0 : index
    %c0_62 = arith.constant 0 : index
    %146 = vector.load %arg7[%c0_61, %c0_62] : memref<16x72xf32, #tpu.memory_space<vmem>>, vector<16x72xf32>
    %cst_63 = arith.constant dense<0.000000e+00> : vector<16x256xf32>
    %147 = tpu.matmul %146, %145, %cst_63 {dimension_numbers = #tpu.dot_dimension_numbers<[1], [0], [0], [1], [0, 0, 1, 1], [], []>} : vector<16x72xf32>, vector<72x256xf32>, vector<16x256xf32> -> vector<16x256xf32>
    %c0_64 = arith.constant 0 : index
    %c0_65 = arith.constant 0 : index
    %148 = vector.load %arg8[%c0_64, %c0_65] : memref<16x1xf32, #tpu.memory_space<vmem>>, vector<16x1xf32>
    %149 = vector.broadcast %148 : vector<16x1xf32> to vector<16x256xf32>
    %150 = arith.addf %147, %149 : vector<16x256xf32>
    %cst_66 = arith.constant 0.000000e+00 : f32
    %151 = vector.broadcast %cst_66 : f32 to vector<16x256xf32>
    %152 = arith.maximumf %150, %151 : vector<16x256xf32>
    %c17_i32_67 = arith.constant 17 : i32
    %153 = tpu.dynamic_rotate %152 by %c17_i32_67 dim 1 : vector<16x256xf32>, i32 -> vector<16x256xf32>
    %c6_68 = arith.constant 6 : index
    %c0_69 = arith.constant 0 : index
    %154 = vector.load %arg2[%c6_68, %c0_69] : memref<25x256xf32, #tpu.memory_space<vmem>>, vector<1x256xf32>
    %155 = vector.broadcast %154 : vector<1x256xf32> to vector<16x256xf32>
    %156 = arith.mulf %153, %155 : vector<16x256xf32>
    %c16_i32_70 = arith.constant 16 : i32
    %157 = tpu.dynamic_rotate %152 by %c16_i32_70 dim 1 : vector<16x256xf32>, i32 -> vector<16x256xf32>
    %c7_71 = arith.constant 7 : index
    %c0_72 = arith.constant 0 : index
    %158 = vector.load %arg2[%c7_71, %c0_72] : memref<25x256xf32, #tpu.memory_space<vmem>>, vector<1x256xf32>
    %159 = vector.broadcast %158 : vector<1x256xf32> to vector<16x256xf32>
    %160 = arith.mulf %157, %159 : vector<16x256xf32>
    %c15_i32_73 = arith.constant 15 : i32
    %161 = tpu.dynamic_rotate %152 by %c15_i32_73 dim 1 : vector<16x256xf32>, i32 -> vector<16x256xf32>
    %c8_74 = arith.constant 8 : index
    %c0_75 = arith.constant 0 : index
    %162 = vector.load %arg2[%c8_74, %c0_75] : memref<25x256xf32, #tpu.memory_space<vmem>>, vector<1x256xf32>
    %163 = vector.broadcast %162 : vector<1x256xf32> to vector<16x256xf32>
    %164 = arith.mulf %161, %163 : vector<16x256xf32>
    %c1_i32_76 = arith.constant 1 : i32
    %165 = tpu.dynamic_rotate %152 by %c1_i32_76 dim 1 : vector<16x256xf32>, i32 -> vector<16x256xf32>
    %c11_77 = arith.constant 11 : index
    %c0_78 = arith.constant 0 : index
    %166 = vector.load %arg2[%c11_77, %c0_78] : memref<25x256xf32, #tpu.memory_space<vmem>>, vector<1x256xf32>
    %167 = vector.broadcast %166 : vector<1x256xf32> to vector<16x256xf32>
    %168 = arith.mulf %165, %167 : vector<16x256xf32>
    %c255_i32_79 = arith.constant 255 : i32
    %169 = tpu.dynamic_rotate %152 by %c255_i32_79 dim 1 : vector<16x256xf32>, i32 -> vector<16x256xf32>
    %c13_80 = arith.constant 13 : index
    %c0_81 = arith.constant 0 : index
    %170 = vector.load %arg2[%c13_80, %c0_81] : memref<25x256xf32, #tpu.memory_space<vmem>>, vector<1x256xf32>
    %171 = vector.broadcast %170 : vector<1x256xf32> to vector<16x256xf32>
    %172 = arith.mulf %169, %171 : vector<16x256xf32>
    %c241_i32_82 = arith.constant 241 : i32
    %173 = tpu.dynamic_rotate %152 by %c241_i32_82 dim 1 : vector<16x256xf32>, i32 -> vector<16x256xf32>
    %c16_83 = arith.constant 16 : index
    %c0_84 = arith.constant 0 : index
    %174 = vector.load %arg2[%c16_83, %c0_84] : memref<25x256xf32, #tpu.memory_space<vmem>>, vector<1x256xf32>
    %175 = vector.broadcast %174 : vector<1x256xf32> to vector<16x256xf32>
    %176 = arith.mulf %173, %175 : vector<16x256xf32>
    %c240_i32_85 = arith.constant 240 : i32
    %177 = tpu.dynamic_rotate %152 by %c240_i32_85 dim 1 : vector<16x256xf32>, i32 -> vector<16x256xf32>
    %c17_86 = arith.constant 17 : index
    %c0_87 = arith.constant 0 : index
    %178 = vector.load %arg2[%c17_86, %c0_87] : memref<25x256xf32, #tpu.memory_space<vmem>>, vector<1x256xf32>
    %179 = vector.broadcast %178 : vector<1x256xf32> to vector<16x256xf32>
    %180 = arith.mulf %177, %179 : vector<16x256xf32>
    %c239_i32_88 = arith.constant 239 : i32
    %181 = tpu.dynamic_rotate %152 by %c239_i32_88 dim 1 : vector<16x256xf32>, i32 -> vector<16x256xf32>
    %c18_89 = arith.constant 18 : index
    %c0_90 = arith.constant 0 : index
    %182 = vector.load %arg2[%c18_89, %c0_90] : memref<25x256xf32, #tpu.memory_space<vmem>>, vector<1x256xf32>
    %183 = vector.broadcast %182 : vector<1x256xf32> to vector<16x256xf32>
    %184 = arith.mulf %181, %183 : vector<16x256xf32>
    %185 = tpu.concatenate %156, %160, %164, %168, %152, %172, %176, %180, %184 in 0 : vector<16x256xf32>, vector<16x256xf32>, vector<16x256xf32>, vector<16x256xf32>, vector<16x256xf32>, vector<16x256xf32>, vector<16x256xf32>, vector<16x256xf32>, vector<16x256xf32> -> vector<144x256xf32>
    %c0_91 = arith.constant 0 : index
    %c0_92 = arith.constant 0 : index
    %186 = vector.load %arg9[%c0_91, %c0_92] : memref<8x144xf32, #tpu.memory_space<vmem>>, vector<8x144xf32>
    %cst_93 = arith.constant dense<0.000000e+00> : vector<8x256xf32>
    %187 = tpu.matmul %186, %185, %cst_93 {dimension_numbers = #tpu.dot_dimension_numbers<[1], [0], [0], [1], [0, 0, 1, 1], [], []>} : vector<8x144xf32>, vector<144x256xf32>, vector<8x256xf32> -> vector<8x256xf32>
    %c0_94 = arith.constant 0 : index
    %c0_95 = arith.constant 0 : index
    %188 = vector.load %arg10[%c0_94, %c0_95] : memref<8x1xf32, #tpu.memory_space<vmem>>, vector<8x1xf32>
    %189 = vector.broadcast %188 : vector<8x1xf32> to vector<8x256xf32>
    %190 = arith.addf %187, %189 : vector<8x256xf32>
    %cst_96 = arith.constant 0.707106769 : f32
    %191 = vector.broadcast %cst_96 : f32 to vector<8x256xf32>
    %192 = arith.mulf %190, %191 : vector<8x256xf32>
    %193 = arith.addf %192, %112 : vector<8x256xf32>
    %c17_i32_97 = arith.constant 17 : i32
    %194 = tpu.dynamic_rotate %193 by %c17_i32_97 dim 1 : vector<8x256xf32>, i32 -> vector<8x256xf32>
    %c6_98 = arith.constant 6 : index
    %c0_99 = arith.constant 0 : index
    %195 = vector.load %arg2[%c6_98, %c0_99] : memref<25x256xf32, #tpu.memory_space<vmem>>, vector<1x256xf32>
    %196 = vector.broadcast %195 : vector<1x256xf32> to vector<8x256xf32>
    %197 = arith.mulf %194, %196 : vector<8x256xf32>
    %c16_i32_100 = arith.constant 16 : i32
    %198 = tpu.dynamic_rotate %193 by %c16_i32_100 dim 1 : vector<8x256xf32>, i32 -> vector<8x256xf32>
    %c7_101 = arith.constant 7 : index
    %c0_102 = arith.constant 0 : index
    %199 = vector.load %arg2[%c7_101, %c0_102] : memref<25x256xf32, #tpu.memory_space<vmem>>, vector<1x256xf32>
    %200 = vector.broadcast %199 : vector<1x256xf32> to vector<8x256xf32>
    %201 = arith.mulf %198, %200 : vector<8x256xf32>
    %c15_i32_103 = arith.constant 15 : i32
    %202 = tpu.dynamic_rotate %193 by %c15_i32_103 dim 1 : vector<8x256xf32>, i32 -> vector<8x256xf32>
    %c8_104 = arith.constant 8 : index
    %c0_105 = arith.constant 0 : index
    %203 = vector.load %arg2[%c8_104, %c0_105] : memref<25x256xf32, #tpu.memory_space<vmem>>, vector<1x256xf32>
    %204 = vector.broadcast %203 : vector<1x256xf32> to vector<8x256xf32>
    %205 = arith.mulf %202, %204 : vector<8x256xf32>
    %c1_i32_106 = arith.constant 1 : i32
    %206 = tpu.dynamic_rotate %193 by %c1_i32_106 dim 1 : vector<8x256xf32>, i32 -> vector<8x256xf32>
    %c11_107 = arith.constant 11 : index
    %c0_108 = arith.constant 0 : index
    %207 = vector.load %arg2[%c11_107, %c0_108] : memref<25x256xf32, #tpu.memory_space<vmem>>, vector<1x256xf32>
    %208 = vector.broadcast %207 : vector<1x256xf32> to vector<8x256xf32>
    %209 = arith.mulf %206, %208 : vector<8x256xf32>
    %c255_i32_109 = arith.constant 255 : i32
    %210 = tpu.dynamic_rotate %193 by %c255_i32_109 dim 1 : vector<8x256xf32>, i32 -> vector<8x256xf32>
    %c13_110 = arith.constant 13 : index
    %c0_111 = arith.constant 0 : index
    %211 = vector.load %arg2[%c13_110, %c0_111] : memref<25x256xf32, #tpu.memory_space<vmem>>, vector<1x256xf32>
    %212 = vector.broadcast %211 : vector<1x256xf32> to vector<8x256xf32>
    %213 = arith.mulf %210, %212 : vector<8x256xf32>
    %c241_i32_112 = arith.constant 241 : i32
    %214 = tpu.dynamic_rotate %193 by %c241_i32_112 dim 1 : vector<8x256xf32>, i32 -> vector<8x256xf32>
    %c16_113 = arith.constant 16 : index
    %c0_114 = arith.constant 0 : index
    %215 = vector.load %arg2[%c16_113, %c0_114] : memref<25x256xf32, #tpu.memory_space<vmem>>, vector<1x256xf32>
    %216 = vector.broadcast %215 : vector<1x256xf32> to vector<8x256xf32>
    %217 = arith.mulf %214, %216 : vector<8x256xf32>
    %c240_i32_115 = arith.constant 240 : i32
    %218 = tpu.dynamic_rotate %193 by %c240_i32_115 dim 1 : vector<8x256xf32>, i32 -> vector<8x256xf32>
    %c17_116 = arith.constant 17 : index
    %c0_117 = arith.constant 0 : index
    %219 = vector.load %arg2[%c17_116, %c0_117] : memref<25x256xf32, #tpu.memory_space<vmem>>, vector<1x256xf32>
    %220 = vector.broadcast %219 : vector<1x256xf32> to vector<8x256xf32>
    %221 = arith.mulf %218, %220 : vector<8x256xf32>
    %c239_i32_118 = arith.constant 239 : i32
    %222 = tpu.dynamic_rotate %193 by %c239_i32_118 dim 1 : vector<8x256xf32>, i32 -> vector<8x256xf32>
    %c18_119 = arith.constant 18 : index
    %c0_120 = arith.constant 0 : index
    %223 = vector.load %arg2[%c18_119, %c0_120] : memref<25x256xf32, #tpu.memory_space<vmem>>, vector<1x256xf32>
    %224 = vector.broadcast %223 : vector<1x256xf32> to vector<8x256xf32>
    %225 = arith.mulf %222, %224 : vector<8x256xf32>
    %226 = tpu.concatenate %197, %201, %205, %209, %193, %213, %217, %221, %225 in 0 : vector<8x256xf32>, vector<8x256xf32>, vector<8x256xf32>, vector<8x256xf32>, vector<8x256xf32>, vector<8x256xf32>, vector<8x256xf32>, vector<8x256xf32>, vector<8x256xf32> -> vector<72x256xf32>
    %c0_121 = arith.constant 0 : index
    %c0_122 = arith.constant 0 : index
    %227 = vector.load %arg11[%c0_121, %c0_122] : memref<16x72xf32, #tpu.memory_space<vmem>>, vector<16x72xf32>
    %cst_123 = arith.constant dense<0.000000e+00> : vector<16x256xf32>
    %228 = tpu.matmul %227, %226, %cst_123 {dimension_numbers = #tpu.dot_dimension_numbers<[1], [0], [0], [1], [0, 0, 1, 1], [], []>} : vector<16x72xf32>, vector<72x256xf32>, vector<16x256xf32> -> vector<16x256xf32>
    %c0_124 = arith.constant 0 : index
    %c0_125 = arith.constant 0 : index
    %229 = vector.load %arg12[%c0_124, %c0_125] : memref<16x1xf32, #tpu.memory_space<vmem>>, vector<16x1xf32>
    %230 = vector.broadcast %229 : vector<16x1xf32> to vector<16x256xf32>
    %231 = arith.addf %228, %230 : vector<16x256xf32>
    %cst_126 = arith.constant 0.000000e+00 : f32
    %232 = vector.broadcast %cst_126 : f32 to vector<16x256xf32>
    %233 = arith.maximumf %231, %232 : vector<16x256xf32>
    %c17_i32_127 = arith.constant 17 : i32
    %234 = tpu.dynamic_rotate %233 by %c17_i32_127 dim 1 : vector<16x256xf32>, i32 -> vector<16x256xf32>
    %c6_128 = arith.constant 6 : index
    %c0_129 = arith.constant 0 : index
    %235 = vector.load %arg2[%c6_128, %c0_129] : memref<25x256xf32, #tpu.memory_space<vmem>>, vector<1x256xf32>
    %236 = vector.broadcast %235 : vector<1x256xf32> to vector<16x256xf32>
    %237 = arith.mulf %234, %236 : vector<16x256xf32>
    %c16_i32_130 = arith.constant 16 : i32
    %238 = tpu.dynamic_rotate %233 by %c16_i32_130 dim 1 : vector<16x256xf32>, i32 -> vector<16x256xf32>
    %c7_131 = arith.constant 7 : index
    %c0_132 = arith.constant 0 : index
    %239 = vector.load %arg2[%c7_131, %c0_132] : memref<25x256xf32, #tpu.memory_space<vmem>>, vector<1x256xf32>
    %240 = vector.broadcast %239 : vector<1x256xf32> to vector<16x256xf32>
    %241 = arith.mulf %238, %240 : vector<16x256xf32>
    %c15_i32_133 = arith.constant 15 : i32
    %242 = tpu.dynamic_rotate %233 by %c15_i32_133 dim 1 : vector<16x256xf32>, i32 -> vector<16x256xf32>
    %c8_134 = arith.constant 8 : index
    %c0_135 = arith.constant 0 : index
    %243 = vector.load %arg2[%c8_134, %c0_135] : memref<25x256xf32, #tpu.memory_space<vmem>>, vector<1x256xf32>
    %244 = vector.broadcast %243 : vector<1x256xf32> to vector<16x256xf32>
    %245 = arith.mulf %242, %244 : vector<16x256xf32>
    %c1_i32_136 = arith.constant 1 : i32
    %246 = tpu.dynamic_rotate %233 by %c1_i32_136 dim 1 : vector<16x256xf32>, i32 -> vector<16x256xf32>
    %c11_137 = arith.constant 11 : index
    %c0_138 = arith.constant 0 : index
    %247 = vector.load %arg2[%c11_137, %c0_138] : memref<25x256xf32, #tpu.memory_space<vmem>>, vector<1x256xf32>
    %248 = vector.broadcast %247 : vector<1x256xf32> to vector<16x256xf32>
    %249 = arith.mulf %246, %248 : vector<16x256xf32>
    %c255_i32_139 = arith.constant 255 : i32
    %250 = tpu.dynamic_rotate %233 by %c255_i32_139 dim 1 : vector<16x256xf32>, i32 -> vector<16x256xf32>
    %c13_140 = arith.constant 13 : index
    %c0_141 = arith.constant 0 : index
    %251 = vector.load %arg2[%c13_140, %c0_141] : memref<25x256xf32, #tpu.memory_space<vmem>>, vector<1x256xf32>
    %252 = vector.broadcast %251 : vector<1x256xf32> to vector<16x256xf32>
    %253 = arith.mulf %250, %252 : vector<16x256xf32>
    %c241_i32_142 = arith.constant 241 : i32
    %254 = tpu.dynamic_rotate %233 by %c241_i32_142 dim 1 : vector<16x256xf32>, i32 -> vector<16x256xf32>
    %c16_143 = arith.constant 16 : index
    %c0_144 = arith.constant 0 : index
    %255 = vector.load %arg2[%c16_143, %c0_144] : memref<25x256xf32, #tpu.memory_space<vmem>>, vector<1x256xf32>
    %256 = vector.broadcast %255 : vector<1x256xf32> to vector<16x256xf32>
    %257 = arith.mulf %254, %256 : vector<16x256xf32>
    %c240_i32_145 = arith.constant 240 : i32
    %258 = tpu.dynamic_rotate %233 by %c240_i32_145 dim 1 : vector<16x256xf32>, i32 -> vector<16x256xf32>
    %c17_146 = arith.constant 17 : index
    %c0_147 = arith.constant 0 : index
    %259 = vector.load %arg2[%c17_146, %c0_147] : memref<25x256xf32, #tpu.memory_space<vmem>>, vector<1x256xf32>
    %260 = vector.broadcast %259 : vector<1x256xf32> to vector<16x256xf32>
    %261 = arith.mulf %258, %260 : vector<16x256xf32>
    %c239_i32_148 = arith.constant 239 : i32
    %262 = tpu.dynamic_rotate %233 by %c239_i32_148 dim 1 : vector<16x256xf32>, i32 -> vector<16x256xf32>
    %c18_149 = arith.constant 18 : index
    %c0_150 = arith.constant 0 : index
    %263 = vector.load %arg2[%c18_149, %c0_150] : memref<25x256xf32, #tpu.memory_space<vmem>>, vector<1x256xf32>
    %264 = vector.broadcast %263 : vector<1x256xf32> to vector<16x256xf32>
    %265 = arith.mulf %262, %264 : vector<16x256xf32>
    %266 = tpu.concatenate %237, %241, %245, %249, %233, %253, %257, %261, %265 in 0 : vector<16x256xf32>, vector<16x256xf32>, vector<16x256xf32>, vector<16x256xf32>, vector<16x256xf32>, vector<16x256xf32>, vector<16x256xf32>, vector<16x256xf32>, vector<16x256xf32> -> vector<144x256xf32>
    %c0_151 = arith.constant 0 : index
    %c0_152 = arith.constant 0 : index
    %267 = vector.load %arg13[%c0_151, %c0_152] : memref<8x144xf32, #tpu.memory_space<vmem>>, vector<8x144xf32>
    %cst_153 = arith.constant dense<0.000000e+00> : vector<8x256xf32>
    %268 = tpu.matmul %267, %266, %cst_153 {dimension_numbers = #tpu.dot_dimension_numbers<[1], [0], [0], [1], [0, 0, 1, 1], [], []>} : vector<8x144xf32>, vector<144x256xf32>, vector<8x256xf32> -> vector<8x256xf32>
    %c0_154 = arith.constant 0 : index
    %c0_155 = arith.constant 0 : index
    %269 = vector.load %arg14[%c0_154, %c0_155] : memref<8x1xf32, #tpu.memory_space<vmem>>, vector<8x1xf32>
    %270 = vector.broadcast %269 : vector<8x1xf32> to vector<8x256xf32>
    %271 = arith.addf %268, %270 : vector<8x256xf32>
    %cst_156 = arith.constant 0.707106769 : f32
    %272 = vector.broadcast %cst_156 : f32 to vector<8x256xf32>
    %273 = arith.mulf %271, %272 : vector<8x256xf32>
    %274 = arith.addf %273, %193 : vector<8x256xf32>
    %c17_i32_157 = arith.constant 17 : i32
    %275 = tpu.dynamic_rotate %274 by %c17_i32_157 dim 1 : vector<8x256xf32>, i32 -> vector<8x256xf32>
    %c6_158 = arith.constant 6 : index
    %c0_159 = arith.constant 0 : index
    %276 = vector.load %arg2[%c6_158, %c0_159] : memref<25x256xf32, #tpu.memory_space<vmem>>, vector<1x256xf32>
    %277 = vector.broadcast %276 : vector<1x256xf32> to vector<8x256xf32>
    %278 = arith.mulf %275, %277 : vector<8x256xf32>
    %c16_i32_160 = arith.constant 16 : i32
    %279 = tpu.dynamic_rotate %274 by %c16_i32_160 dim 1 : vector<8x256xf32>, i32 -> vector<8x256xf32>
    %c7_161 = arith.constant 7 : index
    %c0_162 = arith.constant 0 : index
    %280 = vector.load %arg2[%c7_161, %c0_162] : memref<25x256xf32, #tpu.memory_space<vmem>>, vector<1x256xf32>
    %281 = vector.broadcast %280 : vector<1x256xf32> to vector<8x256xf32>
    %282 = arith.mulf %279, %281 : vector<8x256xf32>
    %c15_i32_163 = arith.constant 15 : i32
    %283 = tpu.dynamic_rotate %274 by %c15_i32_163 dim 1 : vector<8x256xf32>, i32 -> vector<8x256xf32>
    %c8_164 = arith.constant 8 : index
    %c0_165 = arith.constant 0 : index
    %284 = vector.load %arg2[%c8_164, %c0_165] : memref<25x256xf32, #tpu.memory_space<vmem>>, vector<1x256xf32>
    %285 = vector.broadcast %284 : vector<1x256xf32> to vector<8x256xf32>
    %286 = arith.mulf %283, %285 : vector<8x256xf32>
    %c1_i32_166 = arith.constant 1 : i32
    %287 = tpu.dynamic_rotate %274 by %c1_i32_166 dim 1 : vector<8x256xf32>, i32 -> vector<8x256xf32>
    %c11_167 = arith.constant 11 : index
    %c0_168 = arith.constant 0 : index
    %288 = vector.load %arg2[%c11_167, %c0_168] : memref<25x256xf32, #tpu.memory_space<vmem>>, vector<1x256xf32>
    %289 = vector.broadcast %288 : vector<1x256xf32> to vector<8x256xf32>
    %290 = arith.mulf %287, %289 : vector<8x256xf32>
    %c255_i32_169 = arith.constant 255 : i32
    %291 = tpu.dynamic_rotate %274 by %c255_i32_169 dim 1 : vector<8x256xf32>, i32 -> vector<8x256xf32>
    %c13_170 = arith.constant 13 : index
    %c0_171 = arith.constant 0 : index
    %292 = vector.load %arg2[%c13_170, %c0_171] : memref<25x256xf32, #tpu.memory_space<vmem>>, vector<1x256xf32>
    %293 = vector.broadcast %292 : vector<1x256xf32> to vector<8x256xf32>
    %294 = arith.mulf %291, %293 : vector<8x256xf32>
    %c241_i32_172 = arith.constant 241 : i32
    %295 = tpu.dynamic_rotate %274 by %c241_i32_172 dim 1 : vector<8x256xf32>, i32 -> vector<8x256xf32>
    %c16_173 = arith.constant 16 : index
    %c0_174 = arith.constant 0 : index
    %296 = vector.load %arg2[%c16_173, %c0_174] : memref<25x256xf32, #tpu.memory_space<vmem>>, vector<1x256xf32>
    %297 = vector.broadcast %296 : vector<1x256xf32> to vector<8x256xf32>
    %298 = arith.mulf %295, %297 : vector<8x256xf32>
    %c240_i32_175 = arith.constant 240 : i32
    %299 = tpu.dynamic_rotate %274 by %c240_i32_175 dim 1 : vector<8x256xf32>, i32 -> vector<8x256xf32>
    %c17_176 = arith.constant 17 : index
    %c0_177 = arith.constant 0 : index
    %300 = vector.load %arg2[%c17_176, %c0_177] : memref<25x256xf32, #tpu.memory_space<vmem>>, vector<1x256xf32>
    %301 = vector.broadcast %300 : vector<1x256xf32> to vector<8x256xf32>
    %302 = arith.mulf %299, %301 : vector<8x256xf32>
    %c239_i32_178 = arith.constant 239 : i32
    %303 = tpu.dynamic_rotate %274 by %c239_i32_178 dim 1 : vector<8x256xf32>, i32 -> vector<8x256xf32>
    %c18_179 = arith.constant 18 : index
    %c0_180 = arith.constant 0 : index
    %304 = vector.load %arg2[%c18_179, %c0_180] : memref<25x256xf32, #tpu.memory_space<vmem>>, vector<1x256xf32>
    %305 = vector.broadcast %304 : vector<1x256xf32> to vector<8x256xf32>
    %306 = arith.mulf %303, %305 : vector<8x256xf32>
    %307 = tpu.concatenate %278, %282, %286, %290, %274, %294, %298, %302, %306 in 0 : vector<8x256xf32>, vector<8x256xf32>, vector<8x256xf32>, vector<8x256xf32>, vector<8x256xf32>, vector<8x256xf32>, vector<8x256xf32>, vector<8x256xf32>, vector<8x256xf32> -> vector<72x256xf32>
    %c0_181 = arith.constant 0 : index
    %c0_182 = arith.constant 0 : index
    %308 = vector.load %arg15[%c0_181, %c0_182] : memref<16x72xf32, #tpu.memory_space<vmem>>, vector<16x72xf32>
    %cst_183 = arith.constant dense<0.000000e+00> : vector<16x256xf32>
    %309 = tpu.matmul %308, %307, %cst_183 {dimension_numbers = #tpu.dot_dimension_numbers<[1], [0], [0], [1], [0, 0, 1, 1], [], []>} : vector<16x72xf32>, vector<72x256xf32>, vector<16x256xf32> -> vector<16x256xf32>
    %c0_184 = arith.constant 0 : index
    %c0_185 = arith.constant 0 : index
    %310 = vector.load %arg16[%c0_184, %c0_185] : memref<16x1xf32, #tpu.memory_space<vmem>>, vector<16x1xf32>
    %311 = vector.broadcast %310 : vector<16x1xf32> to vector<16x256xf32>
    %312 = arith.addf %309, %311 : vector<16x256xf32>
    %313 = arith.addf %312, %107 : vector<16x256xf32>
    %c0_186 = arith.constant 0 : index
    %c0_187 = arith.constant 0 : index
    %c0_188 = arith.constant 0 : index
    %314 = vector.load %arg17[%c0_186, %c0_187, %c0_188] : memref<1x16x256xf32, #tpu.memory_space<vmem>>, vector<1x16x256xf32>
    %315 = vector.shape_cast %314 : vector<1x16x256xf32> to vector<16x256xf32>
    %316 = vector.shape_cast %313 : vector<16x256xf32> to vector<1x16x256xf32>
    tpu.vector_store %arg17[%c0_186, %c0_187, %c0_188], %316 {strides = array<i32>} : memref<1x16x256xf32, #tpu.memory_space<vmem>>, vector<1x16x256xf32>,
    return
  }
  func.func @transform_0(%arg0: i32) -> (i32, i32, i32) {
    %c0_i32 = arith.constant 0 : i32
    %c0_i32_0 = arith.constant 0 : i32
    %c0_i32_1 = arith.constant 0 : i32
    return %arg0, %c0_i32, %c0_i32_0 : i32, i32, i32
  }
  func.func @transform_1(%arg0: i32) -> (i32, i32) {
    %c0_i32 = arith.constant 0 : i32
    %c0_i32_0 = arith.constant 0 : i32
    %c0_i32_1 = arith.constant 0 : i32
    return %c0_i32, %c0_i32_0 : i32, i32
  }
  func.func @transform_2(%arg0: i32) -> (i32, i32) {
    %c0_i32 = arith.constant 0 : i32
    %c0_i32_0 = arith.constant 0 : i32
    %c0_i32_1 = arith.constant 0 : i32
    return %c0_i32, %c0_i32_0 : i32, i32
  }
  func.func @transform_3(%arg0: i32) -> (i32, i32) {
    %c0_i32 = arith.constant 0 : i32
    %c0_i32_0 = arith.constant 0 : i32
    %c0_i32_1 = arith.constant 0 : i32
    return %c0_i32, %c0_i32_0 : i32, i32
  }
  func.func @transform_4(%arg0: i32) -> (i32, i32) {
    %c0_i32 = arith.constant 0 : i32
    %c0_i32_0 = arith.constant 0 : i32
    %c0_i32_1 = arith.constant 0 : i32
    return %c0_i32, %c0_i32_0 : i32, i32
  }
  func.func @transform_5(%arg0: i32) -> (i32, i32) {
    %c0_i32 = arith.constant 0 : i32
    %c0_i32_0 = arith.constant 0 : i32
    %c0_i32_1 = arith.constant 0 : i32
    return %c0_i32, %c0_i32_0 : i32, i32
  }
  func.func @transform_6(%arg0: i32) -> (i32, i32) {
    %c0_i32 = arith.constant 0 : i32
    %c0_i32_0 = arith.constant 0 : i32
    %c0_i32_1 = arith.constant 0 : i32
    return %c0_i32, %c0_i32_0 : i32, i32
  }
  func.func @transform_7(%arg0: i32) -> (i32, i32) {
    %c0_i32 = arith.constant 0 : i32
    %c0_i32_0 = arith.constant 0 : i32
    %c0_i32_1 = arith.constant 0 : i32
    return %c0_i32, %c0_i32_0 : i32, i32
  }
  func.func @transform_8(%arg0: i32) -> (i32, i32) {
    %c0_i32 = arith.constant 0 : i32
    %c0_i32_0 = arith.constant 0 : i32
    %c0_i32_1 = arith.constant 0 : i32
    return %c0_i32, %c0_i32_0 : i32, i32
  }
  func.func @transform_9(%arg0: i32) -> (i32, i32) {
    %c0_i32 = arith.constant 0 : i32
    %c0_i32_0 = arith.constant 0 : i32
    %c0_i32_1 = arith.constant 0 : i32
    return %c0_i32, %c0_i32_0 : i32, i32
  }
  func.func @transform_10(%arg0: i32) -> (i32, i32) {
    %c0_i32 = arith.constant 0 : i32
    %c0_i32_0 = arith.constant 0 : i32
    %c0_i32_1 = arith.constant 0 : i32
    return %c0_i32, %c0_i32_0 : i32, i32
  }
  func.func @transform_11(%arg0: i32) -> (i32, i32) {
    %c0_i32 = arith.constant 0 : i32
    %c0_i32_0 = arith.constant 0 : i32
    %c0_i32_1 = arith.constant 0 : i32
    return %c0_i32, %c0_i32_0 : i32, i32
  }
  func.func @transform_12(%arg0: i32) -> (i32, i32) {
    %c0_i32 = arith.constant 0 : i32
    %c0_i32_0 = arith.constant 0 : i32
    %c0_i32_1 = arith.constant 0 : i32
    return %c0_i32, %c0_i32_0 : i32, i32
  }
  func.func @transform_13(%arg0: i32) -> (i32, i32) {
    %c0_i32 = arith.constant 0 : i32
    %c0_i32_0 = arith.constant 0 : i32
    %c0_i32_1 = arith.constant 0 : i32
    return %c0_i32, %c0_i32_0 : i32, i32
  }
  func.func @transform_14(%arg0: i32) -> (i32, i32) {
    %c0_i32 = arith.constant 0 : i32
    %c0_i32_0 = arith.constant 0 : i32
    %c0_i32_1 = arith.constant 0 : i32
    return %c0_i32, %c0_i32_0 : i32, i32
  }
  func.func @transform_15(%arg0: i32) -> (i32, i32) {
    %c0_i32 = arith.constant 0 : i32
    %c0_i32_0 = arith.constant 0 : i32
    %c0_i32_1 = arith.constant 0 : i32
    return %c0_i32, %c0_i32_0 : i32, i32
  }
  func.func @transform_16(%arg0: i32) -> (i32, i32, i32) {
    %c0_i32 = arith.constant 0 : i32
    %c0_i32_0 = arith.constant 0 : i32
    %c0_i32_1 = arith.constant 0 : i32
    return %arg0, %c0_i32, %c0_i32_0 : i32, i32, i32
  }
}

</mosaic_0001>

<bundles_post_ra>
// kernel: tpu_custom_call.1
= control target key start
LH: loop header
LB: loop body
LE: loop exit
PB: predicated region body
PF: predicated region fallthrough
CT: control target
= control target key end

     0   :  { %s4993_s0 = inlined_call_operand.hbm [shape: f32[2,16,256], index: 0, kind: input, shape index: {}]   ;;  %s4994_s1 = inlined_call_operand.hbm [shape: f32[25,256], index: 1, kind: input, shape index: {}]   ;;  %s4995_s2 = inlined_call_operand.hbm [shape: f32[16,400], index: 2, kind: input, shape index: {}]   ;;  %s4996_s3 = inlined_call_operand.vmem [shape: f32[16,1], index: 3, kind: input, shape index: {}]   ;;  %s4997_s4 = inlined_call_operand.vmem [shape: f32[8,400], index: 4, kind: input, shape index: {}]   ;;  %s4998_s5 = inlined_call_operand.vmem [shape: f32[8,1], index: 5, kind: input, shape index: {}]   ;;  %s4999_s6 = inlined_call_operand.vmem [shape: f32[16,72], index: 6, kind: input, shape index: {}]   ;;  %s5000_s7 = inlined_call_operand.vmem [shape: f32[16,1], index: 7, kind: input, shape index: {}]   ;;  %s5001_s8 = inlined_call_operand.vmem [shape: f32[8,144], index: 8, kind: input, shape index: {}]   ;;  %s5002_s9 = inlined_call_operand.vmem [shape: f32[8,1], index: 9, kind: input, shape index: {}]   ;;  %s5003_s10 = inlined_call_operand.vmem [shape: f32[16,72], index: 10, kind: input, shape index: {}]   ;;  %s5004_s11 = inlined_call_operand.vmem [shape: f32[16,1], index: 11, kind: input, shape index: {}]   ;;  %s5005_s12 = inlined_call_operand.hbm [shape: f32[8,144], index: 12, kind: input, shape index: {}]   ;;  %s5006_s13 = inlined_call_operand.vmem [shape: f32[8,1], index: 13, kind: input, shape index: {}]   ;;  %s5007_s14 = inlined_call_operand.hbm [shape: f32[16,72], index: 14, kind: input, shape index: {}]   ;;  %s5008_s15 = inlined_call_operand.vmem [shape: f32[16,1], index: 15, kind: input, shape index: {}]   ;;  %s5009_s16 = inlined_call_operand.hbm [shape: f32[2,16,256], index: 16, kind: output, shape index: {}]  }
   0x1   :  { %5080 = sst [smem:[#allocation72_spill]] %s4993_s0 }
   0x2   :  { %5081 = sst [smem:[#allocation73_spill]] %s4994_s1 }
   0x3   :  { %5082 = sst [smem:[#allocation74_spill]] %s4995_s2 }
   0x4   :  { %5083 = sst [smem:[#allocation75_spill]] %s4996_s3 }
   0x5   :  { %5084 = sst [smem:[#allocation76_spill]] %s4997_s4 }
   0x6   :  { %5085 = sst [smem:[#allocation77_spill]] %s4998_s5 }
   0x7   :  { %5086 = sst [smem:[#allocation78_spill]] %s5005_s12 }
   0x8   :  { %5087 = sst [smem:[#allocation79_spill]] %s5006_s13 }
   0x9   :  { %5088 = sst [smem:[#allocation80_spill]] %s5007_s14 }
   0xa   :  { %5089 = sst [smem:[#allocation81_spill]] %s5008_s15 }
   0xb   :  { %5090 = sst [smem:[#allocation82_spill]] %s5009_s16 }
   0xc   :  { %21 = vsyncpa [#allocation3], 0 }
   0xd   :  { %23 = vsyncpa [#allocation3 + $0x1], 0 }
   0xe   :  { %24 = vsyncpa [#allocation6], 0 }
   0xf   :  { %25 = vsyncpa [#allocation9], 0 }
  0x10   :  { %26 = vsyncpa [#allocation4], 0 }
  0x11   :  { %28 = vsyncpa [#allocation4 + $0x1], 0  ;;  %s3074_s21 = smov 0   ;;  %s3076_s22 = smov 0  }
  0x12   :  { %s3078_s23 = smov 0   ;;  %s3080_s24 = smov 0  }
  0x13 LB: > { %5091 = sst [smem:[#allocation16_spill]] %s2939_s21  ;;  %s3095_s25 = sadd.s32 4294967295, %s2951_s24   ;;  %s2951_s24 = sphi %s3080_s24, %s5235_s24   ;;  %s2947_s23 = sphi %s3078_s23, %s5234_s23   ;;  %s2943_s22 = sphi %s3076_s22, %s5233_s22   ;;  %s2939_s21 = sphi %s3074_s21, %s5232_s21  }
  0x14   : > { %s2555_s26 = sadd.s32 4294967294, %s2951_s24   ;;  %p54_p0 = scmp.ne.s32.totalorder %s2943_s22, %s2939_s21 }
  0x15   : > { %p55_p1 = scmp.eq.s32.totalorder %s3095_s25, 0  ;;  %p393_p2 = scmp.eq.s32.totalorder %s3095_s25, 1 }
  0x16   : > { %p399_p3 = scmp.eq.s32.totalorder %s2555_s26, 1  ;;  %p2556_p5 = scmp.ge.s32.totalorder %s2951_s24, 1 }
  0x17   : > { %p3104_p4 = por %p55_p1, %p54_p0  ;;  %p406_p7 = scmp.lt.s32.totalorder %s2951_s24, 3 }
  0x18   : > { %p3109_p6 = por %p399_p3, %p54_p0  ;;  %s5095_s1 = sld [smem:[#allocation73_spill]] }
  0x19   : > { %p3117_p8 = pnand %p2556_p5, %p406_p7  ;;  %s2953_s18 = smov [#allocation5]  }
  0x1a   : > { %s5093_s28 = scalar_select %p3109_p6, 1, 0 }
  0x1b   : > { %p2625_p9 = pneg %p3117_p8  ;;  %s419_s19 = sshll.u32 %s2953_s18, 4  ;;  %s420_s19 = int_to_ptr.vmem [resolvable:$true] %s419_s19 }
  0x1c   : > { %5094 = sst [smem:[#allocation17_spill]] %s5093_s28  ;;  %s5017_s28 = smov 16  }
  0x1d   : > { %p3125_p10 = pnand %p2625_p9, %p55_p1  ;;  %s5098_s12 = sld [smem:[#allocation78_spill]] }
  0x1e   : > { %s417_s0 = sshll.u32 %s5095_s1, 4  ;;  %s5016_s1 = smov 256   ;;  %s418_s0 = int_to_ptr.hbm [resolvable:$true] %s417_s0 }
  0x1f   : > { %2628 = dma.hbm_to_vmem [thread:$0]  (!%p3125_p10), %s418_s0, 1024, %s420_s19, [#allocation6], %s5016_s1, %s5016_s1, %s5017_s28  }
  0x20   : > { %s2956_s18 = smov [#allocation8]   ;;  %s5099_s2 = sld [smem:[#allocation74_spill]] }
  0x21   : > { %s475_s21 = sshll.u32 %s2956_s18, 4  ;;  %s2957_s26 = smov [#allocation7]   ;;  %s476_s21 = int_to_ptr.vmem [resolvable:$true] %s475_s21 }
  0x22   : > { %s433_s29 = sshll.u32 %s2957_s26, 4  ;;  %s5100_s14 = sld [smem:[#allocation80_spill]]  ;;  %s434_s29 = int_to_ptr.vmem [resolvable:$true] %s433_s29 }
  0x23   : > { %s473_s30 = sshll.u32 %s5098_s12, 4  ;;  %s2958_s15 = smov 512   ;;  %s474_s30 = int_to_ptr.hbm [resolvable:$true] %s473_s30 }
  0x24   : > { %2634 = dma.hbm_to_vmem [thread:$0]  (!%p3125_p10), %s474_s30, 256, %s476_s21, [#allocation9]  }
  0x25   : > { %s2959_s16 = smov 32   ;;  %s2960_s21 = smov [#allocation10]  }
  0x26   : > { %s431_s3 = sshll.u32 %s5099_s2, 4  ;;  %s489_s19 = sshll.u32 %s2960_s21, 4  ;;  %s432_s3 = int_to_ptr.hbm [resolvable:$true] %s431_s3  ;;  %s490_s19 = int_to_ptr.vmem [resolvable:$true] %s489_s19 }
  0x27   : > { %2631 = dma.hbm_to_vmem [thread:$0]  (!%p3125_p10), %s432_s3, 1024, %s434_s29, [#allocation6], %s2958_s15, %s2958_s15, %s2959_s16  }
  0x28   : > { %s487_s0 = sshll.u32 %s5100_s14, 4  ;;  %s2961_s30 = smov 128   ;;  %s488_s0 = int_to_ptr.hbm [resolvable:$true] %s487_s0 }
  0x29   : > { %s2962_s18 = smov 8   ;;  %s3151_s12 = sadd.s32 1, %s2951_s24  }
  0x2a   : > { %2637 = dma.hbm_to_vmem [thread:$0]  (!%p3125_p10), %s488_s0, 256, %s490_s19, [#allocation9], %s2961_s30, %s2961_s30, %s2962_s18  }
  0x2b   : > { %s38_s13 = ssub.s32 %s2951_s24, %s3151_s12  ;;  %s41_s26 = sadd.s32 1, %s2947_s23 }
  0x2c   : > { %p39_p12 = scmp.eq.s32.totalorder %s38_s13, 0  ;;  %p48_p13 = scmp.ne.s32.totalorder %s2947_s23, %s2943_s22 }
  0x2d   : > { %p49_p0 = scmp.eq.s32.totalorder %s2951_s24, 0  ;;  %p2650_p7 = scmp.lt.s32.totalorder %s2951_s24, 2 }
  0x2e   : > { %s3160_s3 = scalar_select %p39_p12, %s2947_s23, %s41_s26  }
  0x2f   : > { %p50_p3 = por %p49_p0, %p48_p13  ;;  %p3164_p5 = por %p393_p2, %p48_p13 }
  0x30   : > { %s506_s15 = sand.u32 1, %s2947_s23   ;;  %s2603_s0 = sshll.u32 %s2951_s24, 5 }
  0x31   : > { %s2562_s20 = sshll.u32 %s506_s15, 5  ;;  %s5102_s19 = sld [smem:[#allocation72_spill]] }
  0x32   : > { %s510_s18 = scalar_lea.vmem [#allocation2], %s2562_s20  ;;  %p3174_p9 = pnand %p2650_p7, %p50_p3 }
  0x33   : > { %s518_s13 = sshll.u32 %s510_s18, 4  ;;  %s507_s28 = scalar_lea.sflag [#allocation3], %s506_s15  ;;  %s519_s13 = int_to_ptr.vmem [resolvable:$true] %s518_s13 }
  0x34   : > { %p2851_p10 = pneg %p3174_p9 }
  0x37   : > { %s515_s30 = scalar_lea.hbm %s5102_s19, %s2603_s0  ;;  %s2854_s16 = scalar_lea.hbm %s5102_s19, 64 }
  0x38   : > { %s516_s1 = sshll.u32 %s515_s30, 4  ;;  %s517_s1 = int_to_ptr.hbm [resolvable:$true] %s516_s1 }
  0x39   : > { %s2847_s2 = sshra.s32 %s517_s1, 4  ;;  %s2848_s2 = int_to_ptr.hbm [resolvable:$true] %s2847_s2 }
  0x3a   : > { %s2849_s14 = scalar_lea.hbm %s2848_s2, 32  ;;  %p2855_p0 = scmp.lt.s32.totalorder %s2848_s2, %s5102_s19 }
  0x3b   : > { %p2850_p2 = scmp.ne.s32.totalorder %s2848_s2, %s2849_s14  ;;  %p2856_p3 = scmp.lt.s32.totalorder %s2854_s16, %s2849_s14 }
  0x3d   : > { %p2852_p12 = pnand %p2851_p10, %p2850_p2  ;;  %p2857_p7 = por %p2856_p3, %p2855_p0 }
  0x3f   : > { %p2853_p13 = pneg %p2852_p12 }
  0x41   : > { %p2858_p11 = pnand %p2857_p7, %p2853_p13 }
  0x43   : > { %2861 = shalt.err (!%p2858_p11)
}
  0x44   : > { %s5104_s15 = smov 16   ;;  %s5105_s18 = smov 256  }
  0x45   : > { %2641 = dma.hbm_to_vmem [thread:$0]  (!%p3174_p9), %s517_s1, 512, %s519_s13, %s507_s28, %s5105_s18, %s5105_s18, %s5104_s15  }
  0x46   : > { %530 = sbr.rel (%p3117_p8) target bundleno = 2175 (0x87f), region = 84 }
  0x4b   : > { %s3194_s0 = sand.u32 1, %s2943_s22  }
  0x4c   : > { %s2566_s2 = sshll.u32 %s3194_s0, 5  ;;  %s533_s14 = scalar_lea.sflag [#allocation3], %s3194_s0 }
  0x4d   : > { %s536_s20 = scalar_lea.vmem [#allocation2], %s2566_s2 }
  0x4e   : > { %2922 = dma.done.wait (%p3104_p4), %s533_s14, 512  }
  0x4f   : > { %2924 = vsyncadd (%p3104_p4), %s533_s14, 4294966784 }
  0x50   : > { %2926 = dma.done.wait (%p55_p1), [#allocation6], 2048  }
  0x51   : > { %2928 = vsyncadd (%p55_p1), [#allocation6], 4294965248 }
  0x52   : > { %2930 = dma.done.wait (%p55_p1), [#allocation9], 512  }
  0x53   : > { %2932 = vsyncadd (%p55_p1), [#allocation9], 4294966784  ;;  %v608_v0 = vld [vmem:[%s536_s20 + $0x10] sm:$0xff]  ;;  %v606_v1 = vld [vmem:[%s536_s20] sm:$0xff]  ;;  %s2963_s1 = smov 95   ;;  %s2964_s27 = smov 96   ;;  %v622_v8 = vlaneseq }
  0x54   : > { %v3212_v2 = vadd.f32 -0.5, %v608_v0  ;;  %v3214_v3 = vadd.f32 -0.5, %v606_v1  ;;  %v609_v4 = vld [vmem:[%s536_s20 + $0x18] sm:$0xff]  ;;  %v607_v5 = vld [vmem:[%s536_s20 + $0x8] sm:$0xff]  ;;  %s2965_s28 = smov 16   ;;  %s2966_s17 = smov 97  }
  0x55   : > { %v3219_v6 = vadd.f32 -0.5, %v609_v4  ;;  %v3221_v7 = vadd.f32 -0.5, %v607_v5  ;;  %s2967_s13 = smov 17   ;;  %s2968_s26 = smov 98   ;;  %v3264_v10 = vand.u32 127, %v622_v8 }
  0x56   : > { %1145 = vrot.lane.b32.xlu0 %v3212_v2, %s2963_s1  ;;  %1143 = vrot.lane.b32.xlu1 %v3214_v3, %s2963_s1  ;;  %s2969_s16 = smov 18   ;;  %s2970_s21 = smov 110   ;;  %v1133_v11 = vld [vmem:[#allocation5 + $0x26] ss:$8 sm:$0x3] }
  0x57   : > { %1121 = vrot.lane.b32.xlu2 %v3212_v2, %s2964_s27  ;;  %s2971_s30 = smov 114   ;;  %s2972_s15 = smov 30   ;;  %vm1127_vm0 = vcmp.lt.s32.totalorder %v3264_v10, 96  ;;  %v1136_v12 = vperm.slane %v1133_v11, 1  ;;  %vm1151_vm1 = vcmp.lt.s32.totalorder %v3264_v10, 95  ;;  %v1135_v33 = vperm.slane %v1133_v11, 0 }
  0x58   : > { %s2973_s18 = smov 111   ;;  %s2974_s14 = smov 126   ;;  %v1157_v20 = vld [vmem:[#allocation5 + $0x27] ss:$8 sm:$0x3]  ;;  %vm791_vm2 = vcmp.lt.s32.totalorder %v3264_v10, 16 }
  0x59   : > { %s2975_s20 = smov 31   ;;  %v1159_v21 = vperm.slane %v1157_v20, 0  ;;  %v1160_v22 = vperm.slane %v1157_v20, 1  ;;  %v3323_v44 = vld [vmem:[#allocation5 + $0x7] ss:$8 sm:$0x3] }
  0x5a   : > { %v1109_v45 = vld [vmem:[#allocation5 + $0x25] ss:$8 sm:$0x3]  ;;  %v3332_v46 = vperm.slane %v3323_v44, 0  ;;  %vm1103_vm3 = vcmp.lt.s32.totalorder %v3264_v10, 97  ;;  %vm767_vm4 = vcmp.lt.s32.totalorder %v3264_v10, 17 }
  0x5b   : > { %v1111_v47 = vperm.slane %v1109_v45, 0  ;;  %v1112_v48 = vperm.slane %v1109_v45, 1  ;;  %v3375_v63 = vld [vmem:[#allocation5 + $0x6] ss:$8 sm:$0x3]  ;;  %vm1079_vm5 = vcmp.lt.s32.totalorder %v3264_v10, 98 }
  0x5c   : > { %5114 = vst [vmem:[#allocation26_spill] sm:$0xff] %v3332_v46  ;;  %v3384_v0 = vperm.slane %v3375_v63, 0  ;;  %v749_v45 = vld [vmem:[#allocation5 + $0x5] ss:$8 sm:$0x3]  ;;  %vm743_vm6 = vcmp.lt.s32.totalorder %v3264_v10, 18 }
  0x5d   : > { %vm1055_vm7 = vcmp.lt.s32.totalorder %v3264_v10, 110  ;;  %vm959_vm8 = vcmp.lt.s32.totalorder %v3264_v10, 114  ;;  %vm719_vm9 = vcmp.lt.s32.totalorder %v3264_v10, 30  ;;  %vm1031_vm10 = vcmp.lt.s32.totalorder %v3264_v10, 111  ;;  %s5196_s4 = sld [smem:[#allocation76_spill]] }
  0x5e   : > { %1149 = vrot.lane.b32.xlu0 %v3219_v6, %s2963_s1  ;;  %1147 = vrot.lane.b32.xlu1 %v3221_v7, %s2963_s1  ;;  %s2976_s1 = smov 112   ;;  %5117 = vst [vmem:[#allocation29_spill] sm:$0xff] %v3384_v0  ;;  %vm935_vm11 = vcmp.lt.s32.totalorder %v3264_v10, 126  ;;  %vm695_vm12 = vcmp.lt.s32.totalorder %v3264_v10, 31  ;;  %vm1007_vm13 = vcmp.lt.s32.totalorder %v3264_v10, 112  ;;  %vm911_vm14 = vcmp.lt.s32.totalorder %v3264_v10, 127 }
  0x5f   : > { %1125 = vrot.lane.b32.xlu2 %v3219_v6, %s2964_s27  ;;  %vm1175_vm15 = vcmp.lt.s32.totalorder %v3264_v10, 94  ;;  %s5202_s5 = sld [smem:[#allocation77_spill]] }
  0x66   : > { %1119 = vrot.lane.b32.xlu0 %v3214_v3, %s2964_s27  ;;  %1123 = vrot.lane.b32.xlu1 %v3221_v7, %s2964_s27  ;;  %s2977_s27 = smov 127  }
  0x67   : > { %785 = vrot.lane.b32.xlu2 %v3212_v2, %s2965_s28 }
  0x6e   : > { %789 = vrot.lane.b32.xlu0 %v3219_v6, %s2965_s28  ;;  %1097 = vrot.lane.b32.xlu1 %v3212_v2, %s2966_s17 }
  0x6f   : > { %1101 = vrot.lane.b32.xlu2 %v3219_v6, %s2966_s17 }
  0x76   : > { %783 = vrot.lane.b32.xlu0 %v3214_v3, %s2965_s28  ;;  %787 = vrot.lane.b32.xlu1 %v3221_v7, %s2965_s28 }
  0x77   : > { %1095 = vrot.lane.b32.xlu2 %v3214_v3, %s2966_s17 }
  0x7e   : > { %1099 = vrot.lane.b32.xlu0 %v3221_v7, %s2966_s17  ;;  %761 = vrot.lane.b32.xlu1 %v3212_v2, %s2967_s13  ;;  %s2978_s17 = smov 94  }
  0x7f   : > { %765 = vrot.lane.b32.xlu2 %v3219_v6, %s2967_s13 }
  0x86   : > { %1073 = vrot.lane.b32.xlu0 %v3212_v2, %s2968_s26  ;;  %1077 = vrot.lane.b32.xlu1 %v3219_v6, %s2968_s26 }
  0x87   : > { %759 = vrot.lane.b32.xlu2 %v3214_v3, %s2967_s13 }
  0x8e   : > { %763 = vrot.lane.b32.xlu0 %v3221_v7, %s2967_s13  ;;  %1071 = vrot.lane.b32.xlu1 %v3214_v3, %s2968_s26 }
  0x8f   : > { %1075 = vrot.lane.b32.xlu2 %v3221_v7, %s2968_s26  ;;  %s2979_s26 = smov 32  }
  0x96   : > { %737 = vrot.lane.b32.xlu0 %v3212_v2, %s2969_s16  ;;  %741 = vrot.lane.b32.xlu1 %v3219_v6, %s2969_s16 }
  0x97   : > { %1049 = vrot.lane.b32.xlu2 %v3212_v2, %s2970_s21 }
  0x9e   : > { %1053 = vrot.lane.b32.xlu0 %v3219_v6, %s2970_s21  ;;  %735 = vrot.lane.b32.xlu1 %v3214_v3, %s2969_s16 }
  0x9f   : > { %739 = vrot.lane.b32.xlu2 %v3221_v7, %s2969_s16  ;;  %s2980_s16 = smov 113  }
  0xa6   : > { %953 = vrot.lane.b32.xlu0 %v3212_v2, %s2971_s30  ;;  %957 = vrot.lane.b32.xlu1 %v3219_v6, %s2971_s30 }
  0xa7   : > { %1047 = vrot.lane.b32.xlu2 %v3214_v3, %s2970_s21 }
  0xae   : > { %1051 = vrot.lane.b32.xlu0 %v3221_v7, %s2970_s21  ;;  %713 = vrot.lane.b32.xlu1 %v3212_v2, %s2972_s15  ;;  %s2981_s21 = smov 33  }
  0xaf   : > { %717 = vrot.lane.b32.xlu2 %v3219_v6, %s2972_s15 }
  0xb1   : > { %v1122_v9 = vpop.permute.xlu2 %1121 }
  0xb6   : > { %951 = vrot.lane.b32.xlu0 %v3214_v3, %s2971_s30  ;;  %955 = vrot.lane.b32.xlu1 %v3221_v7, %s2971_s30  ;;  %s2982_s30 = smov 1  }
  0xb7   : > { %1025 = vrot.lane.b32.xlu2 %v3212_v2, %s2973_s18 }
  0xb9   : > { %v1126_v13 = vpop.permute.xlu2 %1125 }
  0xba   : > { %v1131_v14 = vsel %vm1127_vm0, %v1126_v13, %v1122_v9  ;;  %v1129_v34 = vsel %vm1127_vm0, %v1122_v9, %v1126_v13 }
  0xbb   : > { %v3273_v15 = vmul.f32 %v1136_v12, %v1131_v14  ;;  %v3308_v36 = vmul.f32 %v1135_v33, %v1129_v34  ;;  %v1085_v14 = vld [vmem:[#allocation5 + $0x24] ss:$8 sm:$0x3] }
  0xbd   : > { %5106 = vst [vmem:[#allocation18_spill] sm:$0xff] %v3273_v15 }
  0xbe   : > { %1029 = vrot.lane.b32.xlu0 %v3219_v6, %s2973_s18  ;;  %711 = vrot.lane.b32.xlu1 %v3214_v3, %s2972_s15  ;;  %5111 = vst [vmem:[#allocation23_spill] sm:$0xff] %v3308_v36 }
  0xbf   : > { %715 = vrot.lane.b32.xlu2 %v3221_v7, %s2972_s15  ;;  %s2983_s15 = smov 34  }
  0xc1   : > { %v3279_v16 = vpop.permute.xlu2 %785 }
  0xc6   : > { %929 = vrot.lane.b32.xlu0 %v3212_v2, %s2974_s14  ;;  %933 = vrot.lane.b32.xlu1 %v3219_v6, %s2974_s14 }
  0xc7   : > { %1023 = vrot.lane.b32.xlu2 %v3214_v3, %s2973_s18 }
  0xc8   : > { %v1146_v17 = vpop.permute.xlu0 %1145  ;;  %v1144_v18 = vpop.permute.xlu1 %1143 }
  0xc9   : > { %v1102_v19 = vpop.permute.xlu2 %1101 }
  0xce   : > { %1027 = vrot.lane.b32.xlu0 %v3221_v7, %s2973_s18  ;;  %689 = vrot.lane.b32.xlu1 %v3212_v2, %s2975_s20 }
  0xcf   : > { %693 = vrot.lane.b32.xlu2 %v3219_v6, %s2975_s20 }
  0xd0   : > { %v1150_v23 = vpop.permute.xlu0 %1149  ;;  %v1148_v24 = vpop.permute.xlu1 %1147 }
  0xd1   : > { %v1153_v25 = vsel %vm1151_vm1, %v1146_v17, %v1150_v23  ;;  %v3292_v26 = vpop.permute.xlu2 %1095  ;;  %v1155_v27 = vsel %vm1151_vm1, %v1150_v23, %v1146_v17  ;;  %v1154_v28 = vsel %vm1151_vm1, %v1148_v24, %v1144_v18  ;;  %v1152_v30 = vsel %vm1151_vm1, %v1144_v18, %v1148_v24 }
  0xd2   : > { %v3294_v29 = vmul.f32 %v1159_v21, %v1153_v25  ;;  %v3296_v31 = vmul.f32 %v1160_v22, %v1155_v27  ;;  %v3298_v32 = vmul.f32 %v1160_v22, %v1154_v28  ;;  %v3303_v35 = vmul.f32 %v1159_v21, %v1152_v30 }
  0xd3   : > { %v1087_v18 = vperm.slane %v1085_v14, 0  ;;  %vm983_vm1 = vcmp.lt.s32.totalorder %v3264_v10, 113 }
  0xd4   : > { %5107 = vst [vmem:[#allocation19_spill] sm:$0xff] %v3294_v29  ;;  %1264 = vmatpush.msra.mxu2 %v3294_v29 }
  0xd5   : > { %5108 = vst [vmem:[#allocation20_spill] sm:$0xff] %v3296_v31 }
  0xd6   : > { %5109 = vst [vmem:[#allocation21_spill] sm:$0xff] %v3298_v32  ;;  %927 = vrot.lane.b32.xlu0 %v3214_v3, %s2974_s14  ;;  %931 = vrot.lane.b32.xlu1 %v3221_v7, %s2974_s14  ;;  %s2984_s14 = smov 2  }
  0xd7   : > { %5110 = vst [vmem:[#allocation22_spill] sm:$0xff] %v3303_v35  ;;  %1265 = vmatpush.msra.mxu2 %v3303_v35  ;;  %1001 = vrot.lane.b32.xlu2 %v3212_v2, %s2976_s1 }
  0xd8   : > { %v1120_v37 = vpop.permute.xlu0 %1119  ;;  %v1124_v38 = vpop.permute.xlu1 %1123 }
  0xd9   : > { %1266 = vmatpush.msra.mxu2 %v3308_v36  ;;  %v1128_v39 = vsel %vm1127_vm0, %v1120_v37, %v1124_v38  ;;  %v3315_v40 = vpop.permute.xlu2 %765  ;;  %v1130_v41 = vsel %vm1127_vm0, %v1124_v38, %v1120_v37  ;;  %vm671_vm0 = vcmp.lt.s32.totalorder %v3264_v10, 32 }
  0xda   : > { %v3319_v42 = vmul.f32 %v1135_v33, %v1128_v39  ;;  %v3321_v43 = vmul.f32 %v1136_v12, %v1130_v41 }
  0xdc   : > { %5112 = vst [vmem:[#allocation24_spill] sm:$0xff] %v3319_v42  ;;  %1267 = vmatpush.msra.mxu2 %v3319_v42 }
  0xdd   : > { %5113 = vst [vmem:[#allocation25_spill] sm:$0xff] %v3321_v43  ;;  %v3708_v43 = vld [vmem:[#allocation5 + $0x2] ss:$8 sm:$0x3] }
  0xde   : > { %1005 = vrot.lane.b32.xlu0 %v3219_v6, %s2976_s1  ;;  %687 = vrot.lane.b32.xlu1 %v3214_v3, %s2975_s20 }
  0xdf   : > { %691 = vrot.lane.b32.xlu2 %v3221_v7, %s2975_s20  ;;  %s2985_s20 = smov 14  }
  0xe0   : > { %v3337_v49 = vpop.permute.xlu0 %789  ;;  %v1098_v50 = vpop.permute.xlu1 %1097 }
  0xe1   : > { %v795_v51 = vsel %vm791_vm2, %v3337_v49, %v3279_v16  ;;  %v1105_v52 = vsel %vm1103_vm3, %v1098_v50, %v1102_v19  ;;  %v3345_v53 = vpop.permute.xlu2 %759  ;;  %v1107_v54 = vsel %vm1103_vm3, %v1102_v19, %v1098_v50  ;;  %v1088_v19 = vperm.slane %v1085_v14, 1 }
  0xe2   : > { %v3350_v55 = vmul.f32 %v3332_v46, %v795_v51  ;;  %v3352_v56 = vmul.f32 %v1111_v47, %v1105_v52  ;;  %v3354_v57 = vmul.f32 %v1112_v48, %v1107_v54 }
  0xe4   : > { %5115 = vst [vmem:[#allocation27_spill] sm:$0xff] %v3352_v56  ;;  %1218 = vmatpush.msra.mxu0 %v3350_v55  ;;  %1268 = vmatpush.msra.mxu2 %v3352_v56 }
  0xe5   : > { %5116 = vst [vmem:[#allocation28_spill] sm:$0xff] %v3354_v57 }
  0xe6   : > { %905 = vrot.lane.b32.xlu0 %v3212_v2, %s2977_s27  ;;  %909 = vrot.lane.b32.xlu1 %v3219_v6, %s2977_s27 }
  0xe7   : > { %999 = vrot.lane.b32.xlu2 %v3214_v3, %s2976_s1 }
  0xe8   : > { %v3364_v58 = vpop.permute.xlu0 %783  ;;  %v3366_v59 = vpop.permute.xlu1 %787 }
  0xe9   : > { %v794_v60 = vsel %vm791_vm2, %v3366_v59, %v3364_v58  ;;  %v1076_v61 = vpop.permute.xlu2 %1075 }
  0xea   : > { %v3373_v62 = vmul.f32 %v3332_v46, %v794_v60 }
  0xec   : > { %1219 = vmatpush.msra.mxu0 %v3373_v62 }
  0xee   : > { %1003 = vrot.lane.b32.xlu0 %v3221_v7, %s2976_s1  ;;  %1169 = vrot.lane.b32.xlu1 %v3212_v2, %s2978_s17 }
  0xef   : > { %1173 = vrot.lane.b32.xlu2 %v3219_v6, %s2978_s17 }
  0xf0   : > { %v1100_v1 = vpop.permute.xlu0 %1099  ;;  %v3388_v4 = vpop.permute.xlu1 %761 }
  0xf1   : > { %v1104_v5 = vsel %vm1103_vm3, %v3292_v26, %v1100_v1  ;;  %v771_v8 = vsel %vm767_vm4, %v3315_v40, %v3388_v4  ;;  %v3397_v9 = vpop.permute.xlu2 %1049  ;;  %v1106_v13 = vsel %vm1103_vm3, %v1100_v1, %v3292_v26  ;;  %vm1211_vm3 = vcmask 130048  }
  0xf2   : > { %v3399_v11 = vmul.f32 %v1111_v47, %v1104_v5  ;;  %v3402_v12 = vmul.f32 %v3384_v0, %v771_v8  ;;  %v3407_v17 = vmul.f32 %v1112_v48, %v1106_v13  ;;  %v751_v47 = vperm.slane %v749_v45, 0  ;;  %v1061_v5 = vld [vmem:[#allocation5 + $0x23] ss:$8 sm:$0x3] }
  0xf3   : > { %v752_v48 = vperm.slane %v749_v45, 1  ;;  %v1063_v8 = vperm.slane %v1061_v5, 0  ;;  %v1064_v13 = vperm.slane %v1061_v5, 1 }
  0xf4   : > { %5118 = vst [vmem:[#allocation30_spill] sm:$0xff] %v3399_v11  ;;  %1269 = vmatpush.msra.mxu2 %v3399_v11  ;;  %1220 = vmatpush.msra.mxu0 %v3402_v12 }
  0xf5   : > { %5119 = vst [vmem:[#allocation31_spill] sm:$0xff] %v3407_v17  ;;  %v3668_v17 = vld [vmem:[#allocation5 + $0x15] ss:$8 sm:$0x3] }
  0xf6   : > { %665 = vrot.lane.b32.xlu0 %v3212_v2, %s2979_s26  ;;  %669 = vrot.lane.b32.xlu1 %v3219_v6, %s2979_s26 }
  0xf7   : > { %903 = vrot.lane.b32.xlu2 %v3214_v3, %s2977_s27 }
  0xf8   : > { %v1074_v20 = vpop.permute.xlu0 %1073  ;;  %v1078_v21 = vpop.permute.xlu1 %1077 }
  0xf9   : > { %v1081_v22 = vsel %vm1079_vm5, %v1074_v20, %v1078_v21  ;;  %v740_v23 = vpop.permute.xlu2 %739  ;;  %v1083_v24 = vsel %vm1079_vm5, %v1078_v21, %v1074_v20 }
  0xfa   : > { %v3422_v25 = vmul.f32 %v1087_v18, %v1081_v22  ;;  %v3424_v26 = vmul.f32 %v1088_v19, %v1083_v24 }
  0xfc   : > { %5120 = vst [vmem:[#allocation32_spill] sm:$0xff] %v3422_v25  ;;  %1270 = vmatpush.msra.mxu2 %v3422_v25 }
  0xfd   : > { %5121 = vst [vmem:[#allocation33_spill] sm:$0xff] %v3424_v26 }
  0xfe   : > { %907 = vrot.lane.b32.xlu0 %v3221_v7, %s2977_s27  ;;  %977 = vrot.lane.b32.xlu1 %v3212_v2, %s2980_s16 }
  0xff   : > { %981 = vrot.lane.b32.xlu2 %v3219_v6, %s2980_s16 }
 0x100   : > { %v3433_v27 = vpop.permute.xlu0 %763  ;;  %v1072_v28 = vpop.permute.xlu1 %1071 }
 0x101   : > { %v770_v30 = vsel %vm767_vm4, %v3433_v27, %v3345_v53  ;;  %v1080_v33 = vsel %vm1079_vm5, %v1072_v28, %v1076_v61  ;;  %v3441_v34 = vpop.permute.xlu2 %1047  ;;  %v1082_v37 = vsel %vm1079_vm5, %v1076_v61, %v1072_v28  ;;  %vm647_vm5 = vcmp.lt.s32.totalorder %v3264_v10, 33 }
 0x102   : > { %v3446_v38 = vmul.f32 %v3384_v0, %v770_v30  ;;  %v3448_v39 = vmul.f32 %v1087_v18, %v1080_v33  ;;  %v3450_v41 = vmul.f32 %v1088_v19, %v1082_v37  ;;  %v965_v37 = vld [vmem:[#allocation5 + $0x17] ss:$8 sm:$0x3] }
 0x104   : > { %5122 = vst [vmem:[#allocation34_spill] sm:$0xff] %v3448_v39  ;;  %1221 = vmatpush.msra.mxu0 %v3446_v38  ;;  %1271 = vmatpush.msra.mxu2 %v3448_v39 }
 0x105   : > { %5123 = vst [vmem:[#allocation35_spill] sm:$0xff] %v3450_v41 }
 0x106   : > { %1167 = vrot.lane.b32.xlu0 %v3214_v3, %s2978_s17  ;;  %1171 = vrot.lane.b32.xlu1 %v3221_v7, %s2978_s17  ;;  %s2986_s17 = smov 15  }
 0x107   : > { %663 = vrot.lane.b32.xlu2 %v3214_v3, %s2979_s26 }
 0x108   : > { %v738_v50 = vpop.permute.xlu0 %737  ;;  %v742_v51 = vpop.permute.xlu1 %741 }
 0x109   : > { %v747_v52 = vsel %vm743_vm6, %v742_v51, %v738_v50  ;;  %v718_v54 = vpop.permute.xlu2 %717  ;;  %v745_v60 = vsel %vm743_vm6, %v738_v50, %v742_v51 }
 0x10a   : > { %v3465_v61 = vmul.f32 %v751_v47, %v747_v52  ;;  %v3467_v1 = vmul.f32 %v752_v48, %v745_v60 }
 0x10c   : > { %1222 = vmatpush.msra.mxu0 %v3465_v61 }
 0x10e   : > { %667 = vrot.lane.b32.xlu0 %v3221_v7, %s2979_s26  ;;  %975 = vrot.lane.b32.xlu1 %v3214_v3, %s2980_s16  ;;  %s5226_s26 = sld [smem:[#allocation82_spill]] }
 0x10f   : > { %979 = vrot.lane.b32.xlu2 %v3221_v7, %s2980_s16 }
 0x110   : > { %v1054_v14 = vpop.permute.xlu0 %1053  ;;  %v736_v18 = vpop.permute.xlu1 %735 }
 0x111   : > { %v1057_v19 = vsel %vm1055_vm7, %v3397_v9, %v1054_v14  ;;  %v746_v20 = vsel %vm743_vm6, %v740_v23, %v736_v18  ;;  %v3482_v21 = vpop.permute.xlu2 %1025  ;;  %v744_v22 = vsel %vm743_vm6, %v736_v18, %v740_v23  ;;  %v1059_v33 = vsel %vm1055_vm7, %v1054_v14, %v3397_v9  ;;  %v725_v14 = vld [vmem:[#allocation5 + $0x4] ss:$8 sm:$0x3] }
 0x112   : > { %5124 = vst [vmem:[#allocation36_spill] sm:$0xff] %v3482_v21  ;;  %v3486_v24 = vmul.f32 %v1063_v8, %v1057_v19  ;;  %v3488_v28 = vmul.f32 %v751_v47, %v746_v20  ;;  %v3490_v30 = vmul.f32 %v752_v48, %v744_v22  ;;  %v3495_v45 = vmul.f32 %v1064_v13, %v1059_v33 }
 0x113   : > { %v967_v23 = vperm.slane %v965_v37, 0  ;;  %v968_v47 = vperm.slane %v965_v37, 1  ;;  %v727_v18 = vperm.slane %v725_v14, 0  ;;  %v728_v19 = vperm.slane %v725_v14, 1 }
 0x114   : > { %5125 = vst [vmem:[#allocation37_spill] sm:$0xff] %v3486_v24  ;;  %1272 = vmatpush.msra.mxu2 %v3486_v24  ;;  %1223 = vmatpush.msra.mxu0 %v3488_v28  ;;  %v941_v24 = vld [vmem:[#allocation5 + $0x16] ss:$8 sm:$0x3]  ;;  %vm887_vm6 = vcmp.lt.s32.totalorder %v3264_v10, 1 }
 0x115   : > { %5126 = vst [vmem:[#allocation38_spill] sm:$0xff] %v3495_v45 }
 0x116   : > { %641 = vrot.lane.b32.xlu0 %v3212_v2, %s2981_s21  ;;  %645 = vrot.lane.b32.xlu1 %v3219_v6, %s2981_s21 }
 0x117   : > { %639 = vrot.lane.b32.xlu2 %v3214_v3, %s2981_s21 }
 0x118   : > { %v954_v48 = vpop.permute.xlu0 %953  ;;  %v958_v9 = vpop.permute.xlu1 %957 }
 0x119   : > { %v961_v50 = vsel %vm959_vm8, %v954_v48, %v958_v9  ;;  %v716_v51 = vpop.permute.xlu2 %715  ;;  %v963_v52 = vsel %vm959_vm8, %v958_v9, %v954_v48 }
 0x11a   : > { %v3507_v60 = vmul.f32 %v967_v23, %v961_v50  ;;  %v3509_v5 = vmul.f32 %v968_v47, %v963_v52 }
 0x11c   : > { %1241 = vmatpush.msra.mxu1 %v3507_v60 }
 0x11e   : > { %643 = vrot.lane.b32.xlu0 %v3221_v7, %s2981_s21  ;;  %881 = vrot.lane.b32.xlu1 %v3212_v2, %s2982_s30  ;;  %s5222_s21 = sld [smem:[#allocation81_spill]] }
 0x11f   : > { %885 = vrot.lane.b32.xlu2 %v3219_v6, %s2982_s30 }
 0x120   : > { %v1052_v20 = vpop.permute.xlu0 %1051  ;;  %v714_v22 = vpop.permute.xlu1 %713 }
 0x121   : > { %v1056_v33 = vsel %vm1055_vm7, %v3441_v34, %v1052_v20  ;;  %v723_v37 = vsel %vm719_vm9, %v718_v54, %v714_v22  ;;  %v3523_v48 = vpop.permute.xlu2 %1023  ;;  %v721_v9 = vsel %vm719_vm9, %v714_v22, %v718_v54  ;;  %v1058_v50 = vsel %vm1055_vm7, %v1052_v20, %v3441_v34 }
 0x122   : > { %5127 = vst [vmem:[#allocation39_spill] sm:$0xff] %v3523_v48  ;;  %v3530_v52 = vmul.f32 %v1063_v8, %v1056_v33  ;;  %v3532_v14 = vmul.f32 %v727_v18, %v723_v37  ;;  %v3534_v0 = vmul.f32 %v728_v19, %v721_v9  ;;  %v3536_v46 = vmul.f32 %v1064_v13, %v1058_v50  ;;  %v3552_v37 = vld [vmem:[#allocation5 + $0x22] ss:$8 sm:$0x3] }
 0x123   : > { %5130 = vst [vmem:[#allocation42_spill] sm:$0xff] %v3552_v37  ;;  %v3560_v9 = vperm.slane %v3552_v37, 0  ;;  %vm624_vm7 = vcmp.lt.s32.totalorder %v3264_v10, 34 }
 0x124   : > { %5128 = vst [vmem:[#allocation40_spill] sm:$0xff] %v3530_v52  ;;  %1273 = vmatpush.msra.mxu2 %v3530_v52  ;;  %1224 = vmatpush.msra.mxu0 %v3532_v14 }
 0x125   : > { %5129 = vst [vmem:[#allocation41_spill] sm:$0xff] %v3536_v46 }
 0x126   : > { %616 = vrot.lane.b32.xlu0 %v3212_v2, %s2983_s15  ;;  %620 = vrot.lane.b32.xlu1 %v3219_v6, %s2983_s15  ;;  %5131 = vst [vmem:[#allocation43_spill] sm:$0xff] %v3560_v9 }
 0x127   : > { %879 = vrot.lane.b32.xlu2 %v3214_v3, %s2982_s30 }
 0x128   : > { %v952_v34 = vpop.permute.xlu0 %951  ;;  %v956_v54 = vpop.permute.xlu1 %955 }
 0x129   : > { %v960_v8 = vsel %vm959_vm8, %v952_v34, %v956_v54  ;;  %v694_v20 = vpop.permute.xlu2 %693  ;;  %v962_v13 = vsel %vm959_vm8, %v956_v54, %v952_v34  ;;  %vm863_vm8 = vcmp.lt.s32.totalorder %v3264_v10, 2 }
 0x12a   : > { %v3548_v22 = vmul.f32 %v967_v23, %v960_v8  ;;  %v3550_v33 = vmul.f32 %v968_v47, %v962_v13 }
 0x12c   : > { %1242 = vmatpush.msra.mxu1 %v3548_v22 }
 0x12e   : > { %883 = vrot.lane.b32.xlu0 %v3221_v7, %s2982_s30  ;;  %614 = vrot.lane.b32.xlu1 %v3214_v3, %s2983_s15 }
 0x12f   : > { %618 = vrot.lane.b32.xlu2 %v3221_v7, %s2983_s15  ;;  %s5223_s15 = smov %s5222_s21 }
 0x130   : > { %v3563_v23 = vpop.permute.xlu0 %1029  ;;  %v712_v47 = vpop.permute.xlu1 %711 }
 0x131   : > { %5132 = vst [vmem:[#allocation44_spill] sm:$0xff] %v3563_v23  ;;  %v1033_v50 = vsel %vm1031_vm10, %v3482_v21, %v3563_v23  ;;  %v722_v34 = vsel %vm719_vm9, %v716_v51, %v712_v47  ;;  %v3571_v54 = vpop.permute.xlu2 %1001  ;;  %v720_v8 = vsel %vm719_vm9, %v712_v47, %v716_v51  ;;  %v943_v51 = vperm.slane %v941_v24, 0  ;;  %v701_v23 = vld [vmem:[#allocation5 + $0x3] ss:$8 sm:$0x3] }
 0x132   : > { %5133 = vst [vmem:[#allocation45_spill] sm:$0xff] %v3571_v54  ;;  %v3576_v13 = vmul.f32 %v3560_v9, %v1033_v50  ;;  %v3578_v52 = vmul.f32 %v727_v18, %v722_v34  ;;  %v3580_v46 = vmul.f32 %v728_v19, %v720_v8  ;;  %v944_v47 = vperm.slane %v941_v24, 1 }
 0x133   : > { %v703_v24 = vperm.slane %v701_v23, 0  ;;  %v704_v21 = vperm.slane %v701_v23, 1  ;;  %vm839_vm9 = vcmp.lt.s32.totalorder %v3264_v10, 14 }
 0x134   : > { %5134 = vst [vmem:[#allocation46_spill] sm:$0xff] %v3576_v13  ;;  %1274 = vmatpush.msra.mxu2 %v3576_v13  ;;  %1225 = vmatpush.msra.mxu0 %v3578_v52 }
 0x136   : > { %857 = vrot.lane.b32.xlu0 %v3212_v2, %s2984_s14  ;;  %861 = vrot.lane.b32.xlu1 %v3219_v6, %s2984_s14 }
 0x137   : > { %855 = vrot.lane.b32.xlu2 %v3214_v3, %s2984_s14 }
 0x138   : > { %v930_v18 = vpop.permute.xlu0 %929  ;;  %v934_v50 = vpop.permute.xlu1 %933 }
 0x139   : > { %v937_v19 = vsel %vm935_vm11, %v930_v18, %v934_v50  ;;  %v692_v34 = vpop.permute.xlu2 %691  ;;  %v939_v8 = vsel %vm935_vm11, %v934_v50, %v930_v18 }
 0x13a   : > { %v3592_v13 = vmul.f32 %v943_v51, %v937_v19  ;;  %v3594_v45 = vmul.f32 %v944_v47, %v939_v8 }
 0x13c   : > { %1243 = vmatpush.msra.mxu1 %v3592_v13 }
 0x13e   : > { %859 = vrot.lane.b32.xlu0 %v3221_v7, %s2984_s14  ;;  %833 = vrot.lane.b32.xlu1 %v3212_v2, %s2985_s20 }
 0x13f   : > { %837 = vrot.lane.b32.xlu2 %v3219_v6, %s2985_s20 }
 0x140   : > { %v3601_v37 = vpop.permute.xlu0 %1027  ;;  %v690_v18 = vpop.permute.xlu1 %689 }
 0x141   : > { %5135 = vst [vmem:[#allocation47_spill] sm:$0xff] %v3601_v37  ;;  %v1032_v50 = vsel %vm1031_vm10, %v3523_v48, %v3601_v37  ;;  %v699_v19 = vsel %vm695_vm12, %v694_v20, %v690_v18  ;;  %v3609_v8 = vpop.permute.xlu2 %999  ;;  %v697_v39 = vsel %vm695_vm12, %v690_v18, %v694_v20  ;;  %v3636_v37 = vld [vmem:[#allocation5 + $0x21] ss:$8 sm:$0x3] }
 0x142   : > { %5136 = vst [vmem:[#allocation48_spill] sm:$0xff] %v3609_v8  ;;  %v3614_v23 = vmul.f32 %v3560_v9, %v1032_v50  ;;  %v3616_v41 = vmul.f32 %v703_v24, %v699_v19  ;;  %v3618_v25 = vmul.f32 %v704_v21, %v697_v39  ;;  %v3645_v48 = vperm.slane %v3636_v37, 0 }
 0x143   : > { %5139 = vst [vmem:[#allocation51_spill] sm:$0xff] %v3636_v37 }
 0x144   : > { %5137 = vst [vmem:[#allocation49_spill] sm:$0xff] %v3614_v23  ;;  %1275 = vmatpush.msra.mxu2 %v3614_v23  ;;  %1226 = vmatpush.msra.mxu0 %v3616_v41 }
 0x145   : > { %5138 = vst [vmem:[#allocation50_spill] sm:$0xff] %v3616_v41 }
 0x146   : > { %831 = vrot.lane.b32.xlu0 %v3214_v3, %s2985_s20  ;;  %835 = vrot.lane.b32.xlu1 %v3221_v7, %s2985_s20  ;;  %5140 = vst [vmem:[#allocation52_spill] sm:$0xff] %v3645_v48  ;;  %s5220_s20 = sld [smem:[#allocation79_spill]] }
 0x147   : > { %809 = vrot.lane.b32.xlu2 %v3212_v2, %s2986_s17 }
 0x148   : > { %v928_v20 = vpop.permute.xlu0 %927  ;;  %v932_v18 = vpop.permute.xlu1 %931 }
 0x149   : > { %v936_v50 = vsel %vm935_vm11, %v928_v20, %v932_v18  ;;  %v3628_v19 = vpop.permute.xlu2 %1173  ;;  %v938_v39 = vsel %vm935_vm11, %v932_v18, %v928_v20  ;;  %vm815_vm11 = vcmp.lt.s32.totalorder %v3264_v10, 15 }
 0x14a   : > { %v3632_v9 = vmul.f32 %v943_v51, %v936_v50  ;;  %v3634_v23 = vmul.f32 %v944_v47, %v938_v39 }
 0x14c   : > { %1244 = vmatpush.msra.mxu1 %v3632_v9 }
 0x14e   : > { %813 = vrot.lane.b32.xlu0 %v3219_v6, %s2986_s17  ;;  %807 = vrot.lane.b32.xlu1 %v3214_v3, %s2986_s17 }
 0x14f   : > { %811 = vrot.lane.b32.xlu2 %v3221_v7, %s2986_s17 }
 0x150   : > { %v3649_v51 = vpop.permute.xlu0 %1005  ;;  %v688_v47 = vpop.permute.xlu1 %687 }
 0x151   : > { %5141 = vst [vmem:[#allocation53_spill] sm:$0xff] %v3649_v51  ;;  %v1009_v20 = vsel %vm1007_vm13, %v3571_v54, %v3649_v51  ;;  %v698_v18 = vsel %vm695_vm12, %v692_v34, %v688_v47  ;;  %v3657_v50 = vpop.permute.xlu2 %903  ;;  %v696_v39 = vsel %vm695_vm12, %v688_v47, %v692_v34  ;;  %v3674_v51 = vperm.slane %v3668_v17, 0  ;;  %v3687_v47 = vld [vmem:[#allocation5 + $0x30] ss:$8 sm:$0x3] }
 0x152   : > { %v3662_v37 = vmul.f32 %v3645_v48, %v1009_v20  ;;  %v3664_v26 = vmul.f32 %v703_v24, %v698_v18  ;;  %v3666_v11 = vmul.f32 %v704_v21, %v696_v39  ;;  %v1183_v18 = vperm.slane %v3687_v47, 0 }
 0x153   : > { %5144 = vst [vmem:[#allocation56_spill] sm:$0xff] %v3674_v51  ;;  %vm1653_vm12 = vcmask 588800  }
 0x154   : > { %5142 = vst [vmem:[#allocation54_spill] sm:$0xff] %v3662_v37  ;;  %1276 = vmatpush.msra.mxu2 %v3662_v37  ;;  %1227 = vmatpush.msra.mxu0 %v3664_v26 }
 0x155   : > { %5143 = vst [vmem:[#allocation55_spill] sm:$0xff] %v3664_v26 }
 0x158   : > { %v3676_v54 = vpop.permute.xlu0 %905  ;;  %v3678_v34 = vpop.permute.xlu1 %909 }
 0x159   : > { %v913_v21 = vsel %vm911_vm14, %v3676_v54, %v3678_v34  ;;  %v3689_v20 = vpop.permute.xlu2 %981 }
 0x15a   : > { %v3685_v24 = vmul.f32 %v3674_v51, %v913_v21  ;;  %5145 = vst [vmem:[#allocation57_spill] sm:$0xff] %v3689_v20 }
 0x15c   : > { %1245 = vmatpush.msra.mxu1 %v3685_v24 }
 0x160   : > { %v3694_v39 = vpop.permute.xlu0 %1003  ;;  %v1170_v37 = vpop.permute.xlu1 %1169 }
 0x161   : > { %5146 = vst [vmem:[#allocation58_spill] sm:$0xff] %v3694_v39  ;;  %v1008_v56 = vsel %vm1007_vm13, %v3609_v8, %v3694_v39  ;;  %v1177_v21 = vsel %vm1175_vm15, %v1170_v37, %v3628_v19  ;;  %v3712_v36 = vpop.permute.xlu2 %663  ;;  %v679_v39 = vperm.slane %v3708_v43, 0 }
 0x162   : > { %v3704_v57 = vmul.f32 %v3645_v48, %v1008_v56  ;;  %v3706_v42 = vmul.f32 %v1183_v18, %v1177_v21  ;;  %v3726_v48 = vld [vmem:[#allocation5 + $0x20] ss:$8 sm:$0x3] }
 0x163   : > { %5150 = vst [vmem:[#allocation62_spill] sm:$0xff] %v3726_v48 }
 0x164   : > { %5147 = vst [vmem:[#allocation59_spill] sm:$0xff] %v3704_v57  ;;  %1277 = vmatpush.msra.mxu2 %v3704_v57  ;;  %1301 = vmatpush.msra.mxu3 %v3706_v42 }
 0x165   : > { %5148 = vst [vmem:[#allocation60_spill] sm:$0xff] %v3706_v42  ;;  %v3731_v42 = vperm.slane %v3726_v48, 0 }
 0x167   : > { %5151 = vst [vmem:[#allocation63_spill] sm:$0xff] %v3731_v42 }
 0x168   : > { %v3716_v8 = vpop.permute.xlu0 %665  ;;  %v3718_v15 = vpop.permute.xlu1 %669 }
 0x169   : > { %v675_v56 = vsel %vm671_vm0, %v3718_v15, %v3716_v8  ;;  %v3733_v57 = vpop.permute.xlu2 %979 }
 0x16a   : > { %v3724_v21 = vmul.f32 %v679_v39, %v675_v56 }
 0x16c   : > { %5149 = vst [vmem:[#allocation61_spill] sm:$0xff] %v3724_v21  ;;  %1228 = vmatpush.msra.mxu0 %v3724_v21  ;;  %v3757_v21 = vperm.slane %v3323_v44, 1  ;;  %v792_v44 = vsel %vm791_vm2, %v3364_v58, %v3366_v59  ;;  %v768_v58 = vsel %vm767_vm4, %v3345_v53, %v3433_v27 }
 0x16e   : > { %5154 = vst [vmem:[#allocation66_spill] sm:$0xff] %v3757_v21 }
 0x170   : > { %v3735_v35 = vpop.permute.xlu0 %907  ;;  %v3737_v32 = vpop.permute.xlu1 %977 }
 0x171   : > { %5152 = vst [vmem:[#allocation64_spill] sm:$0xff] %v3737_v32  ;;  %v912_v56 = vsel %vm911_vm14, %v3657_v50, %v3735_v35  ;;  %v985_v29 = vsel %vm983_vm1, %v3737_v32, %v3689_v20  ;;  %v3778_v32 = vperm.slane %v3375_v63, 1  ;;  %v1184_v63 = vperm.slane %v3687_v47, 1 }
 0x172   : > { %v3748_v31 = vmul.f32 %v3674_v51, %v912_v56  ;;  %v3751_v48 = vmul.f32 %v3731_v42, %v985_v29  ;;  %v793_v56 = vsel %vm791_vm2, %v3279_v16, %v3337_v49  ;;  %v3766_v51 = vpop.permute.xlu2 %639  ;;  %v769_v16 = vsel %vm767_vm4, %v3388_v4, %v3315_v40 }
 0x173   : > { %v3775_v20 = vmul.f32 %v3757_v21, %v793_v56  ;;  %5155 = vst [vmem:[#allocation67_spill] sm:$0xff] %v3778_v32  ;;  %v3787_v49 = vmul.f32 %v3757_v21, %v792_v44  ;;  %v3795_v59 = vmul.f32 %v3778_v32, %v769_v16  ;;  %v1179_v40 = vsel %vm1175_vm15, %v3628_v19, %v1170_v37  ;;  %v3824_v44 = vld [vmem:[#allocation7 + $0x10] sm:$0xff]  ;;  %v653_v16 = vld [vmem:[#allocation5 + $0x1] ss:$8 sm:$0x3] }
 0x174   : > { %5153 = vst [vmem:[#allocation65_spill] sm:$0xff] %v3751_v48  ;;  %1246 = vmatpush.msra.mxu1 %v3748_v31  ;;  %1278 = vmatpush.msra.mxu2 %v3751_v48  ;;  %v3805_v4 = vmul.f32 %v3778_v32, %v768_v58  ;;  %v3822_v19 = vmul.f32 %v1184_v63, %v1179_v40  ;;  %v3851_v32 = vld [vmem:[#allocation5 + $0x13] ss:$8 sm:$0x3] }
 0x176   : > { %1247 = vmatpush.msra.mxu1 %v3212_v2 }
 0x178   : > { %v1168_v26 = vpop.permute.xlu0 %1167  ;;  %v1172_v41 = vpop.permute.xlu1 %1171  ;;  %1248 = vmatpush.msra.mxu1 %v3214_v3 }
 0x179   : > { %v1176_v29 = vsel %vm1175_vm15, %v1168_v26, %v1172_v41  ;;  %v1178_v37 = vsel %vm1175_vm15, %v1172_v41, %v1168_v26  ;;  %v3834_v26 = vld [vmem:[#allocation7 + $0x18] sm:$0xff]  ;;  %v655_v41 = vperm.slane %v653_v16, 0 }
 0x17a   : > { %v3768_v48 = vmul.f32 %v1183_v18, %v1176_v29  ;;  %v3826_v58 = vpop.permute.xlu2 %885 }
 0x17c   : > { %1302 = vmatpush.msra.mxu3 %v3768_v48 }
 0x17d   : > { %2576 = vmatmul.msk.f32.vlgmr.msra.gmra.mxu3 %vm1211_vm3, %v3834_v26 }
 0x17e   : > { %1310 = vmatpush.msrb.mxu3 %v3775_v20 }
 0x180   : > { %1311 = vmatpush.msrb.mxu3 %v3787_v49  ;;  %v668_v18 = vpop.permute.xlu0 %667  ;;  %v3798_v56 = vpop.permute.xlu1 %975 }
 0x181   : > { %v674_v53 = vsel %vm671_vm0, %v668_v18, %v3712_v36  ;;  %v984_v27 = vsel %vm983_vm1, %v3798_v56, %v3733_v57 }
 0x182   : > { %1312 = vmatpush.msrb.mxu3 %v3795_v59  ;;  %v3814_v47 = vmul.f32 %v679_v39, %v674_v53  ;;  %v3817_v29 = vmul.f32 %v3731_v42, %v984_v27  ;;  %v3832_v39 = vmul.f32 %v1184_v63, %v1178_v37  ;;  %v680_v37 = vperm.slane %v3708_v43, 1  ;;  %v629_v42 = vld [vmem:[#allocation5] ss:$8 sm:$0x3] }
 0x183   : > { %v672_v43 = vsel %vm671_vm0, %v3712_v36, %v668_v18 }
 0x184   : > { %1313 = vmatpush.msrb.mxu3 %v3805_v4  ;;  %1229 = vmatpush.msra.mxu0 %v3814_v47 }
 0x185   : > { %1279 = vmatpush.msra.mxu2 %v3817_v29 }
 0x186   : > { %1314 = vmatpush.msrb.mxu3 %v3467_v1  ;;  %1280 = vmatmul.f32.vlgmr.msra.gmra.mxu2 %v3824_v44 }
 0x187   : > { %1393 = vmatpush.msrb.mxu2 %v3822_v19 }
 0x188   : > { %1315 = vmatpush.msrb.mxu3 %v3490_v30  ;;  %v642_v40 = vpop.permute.xlu0 %641  ;;  %v646_v63 = vpop.permute.xlu1 %645 }
 0x189   : > { %1394 = vmatpush.msrb.mxu2 %v3832_v39  ;;  %v651_v53 = vsel %vm647_vm5, %v646_v63, %v642_v40 }
 0x18a   : > { %1316 = vmatpush.msrb.mxu3 %v3534_v0  ;;  %v3847_v27 = vmul.f32 %v655_v41, %v651_v53  ;;  %v3868_v53 = vperm.slane %v3851_v32, 0 }
 0x18b   : > { %1435 = vmatpush.msra.mxu2 %v3507_v60  ;;  %v673_v60 = vsel %vm671_vm0, %v3716_v8, %v3718_v15  ;;  %v656_v15 = vperm.slane %v653_v16, 1  ;;  %v649_v8 = vsel %vm647_vm5, %v642_v40, %v646_v63  ;;  %v3886_v16 = vmul.f32 %v680_v37, %v672_v43 }
 0x18c   : > { %1317 = vmatpush.msrb.mxu3 %v3580_v46  ;;  %1230 = vmatpush.msra.mxu0 %v3847_v27 }
 0x18d   : > { %1436 = vmatpush.msra.mxu2 %v3548_v22  ;;  %v3860_v22 = vpop.permute.xlu2 %879  ;;  %5156 = vst [vmem:[#allocation68_spill] sm:$0xff] %v3886_v16 }
 0x18e   : > { %1318 = vmatpush.msrb.mxu3 %v3618_v25 }
 0x18f   : > { %1437 = vmatpush.msra.mxu2 %v3592_v13  ;;  %v3871_v13 = vmul.f32 %v680_v37, %v673_v60  ;;  %v3896_v60 = vmul.f32 %v656_v15, %v649_v8 }
 0x190   : > { %1319 = vmatpush.msrb.mxu3 %v3666_v11  ;;  %v644_v21 = vpop.permute.xlu0 %643 }
 0x191   : > { %1438 = vmatpush.msra.mxu2 %v3632_v9  ;;  %v3876_v9 = vpop.permute.xlu1 %881  ;;  %v650_v36 = vsel %vm647_vm5, %v644_v21, %v3766_v51  ;;  %v648_v40 = vsel %vm647_vm5, %v3766_v51, %v644_v21  ;;  %5157 = vst [vmem:[#allocation69_spill] sm:$0xff] %v3896_v60  ;;  %v632_v51 = vperm.slane %v629_v42, 1 }
 0x192   : > { %v891_v18 = vsel %vm887_vm6, %v3826_v58, %v3876_v9  ;;  %1320 = vmatpush.msrb.mxu3 %v3871_v13  ;;  %v3901_v37 = vmul.f32 %v656_v15, %v648_v40 }
 0x193   : > { %1439 = vmatpush.msra.mxu2 %v3685_v24  ;;  %v3892_v24 = vmul.f32 %v655_v41, %v650_v36  ;;  %v901_v63 = vmul.f32 %v3868_v53, %v891_v18 }
 0x194   : > { %1321 = vmatpush.msrb.mxu3 %v3886_v16  ;;  %5158 = vst [vmem:[#allocation70_spill] sm:$0xff] %v3901_v37  ;;  %v1191_v16 = vld [vmem:[#allocation7] sm:$0xff] }
 0x195   : > { %1440 = vmatpush.msra.mxu2 %v3748_v31  ;;  %1231 = vmatpush.msra.mxu0 %v3892_v24  ;;  %v631_v31 = vperm.slane %v629_v42, 0  ;;  %v619_v21 = vpop.permute.xlu2 %618  ;;  %v3920_v42 = vld [vmem:[#allocation7 + $0x30] sm:$0xff] }
 0x196   : > { %1322 = vmatpush.msrb.mxu3 %v3896_v60  ;;  %1249 = vmatpush.msra.mxu1 %v901_v63  ;;  %v3937_v60 = vld [vmem:[#allocation5 + $0x12] ss:$8 sm:$0x3] }
 0x197   : > { %1441 = vmatpush.msra.mxu2 %v3212_v2 }
 0x198   : > { %1323 = vmatpush.msrb.mxu3 %v3901_v37  ;;  %v617_v41 = vpop.permute.xlu0 %616  ;;  %1283 = vmatmul.f32.gmra.mxu2 %v3920_v42 }
 0x199   : > { %1442 = vmatpush.msra.mxu2 %v3214_v3  ;;  %v621_v43 = vpop.permute.xlu1 %620  ;;  %v3916_v3 = vld [vmem:[#allocation7 + $0x38] sm:$0xff] }
 0x19a   : > { %v626_v2 = vsel %vm624_vm7, %v617_v41, %v621_v43  ;;  %v628_v8 = vsel %vm624_vm7, %v621_v43, %v617_v41  ;;  %2577 = vmatmul.msk.f32.gmra.mxu3 %vm1211_vm3, %v3916_v3 }
 0x19b   : > { %1443 = vmatpush.msra.mxu2 %v901_v63  ;;  %v3910_v15 = vmul.f32 %v631_v31, %v628_v8  ;;  %v3912_v36 = vmul.f32 %v632_v51, %v626_v2 }
 0x19d   : > { %5159 = vst [vmem:[#allocation71_spill] sm:$0xff] %v3912_v36  ;;  %1232 = vmatpush.msra.mxu0 %v3910_v15  ;;  %1324 = vmatpush.msrb.mxu3 %v3912_v36  ;;  %v3922_v18 = vpop.permute.xlu2 %855 }
 0x1a0   : > { %v884_v40 = vpop.permute.xlu0 %883  ;;  %2578 = vmatmul.msk.f32.vlgmr.msrb.gmra.mxu2 %vm1211_vm3, %v3834_v26 }
 0x1a1   : > { %v615_v63 = vpop.permute.xlu1 %614  ;;  %v890_v41 = vsel %vm887_vm6, %v884_v40, %v3860_v22 }
 0x1a2   : > { %v625_v43 = vsel %vm624_vm7, %v615_v63, %v619_v21  ;;  %v627_v2 = vsel %vm624_vm7, %v619_v21, %v615_v63  ;;  %v899_v36 = vmul.f32 %v3868_v53, %v890_v41  ;;  %v3948_v63 = vperm.slane %v3668_v17, 1 }
 0x1a3   : > { %v3932_v8 = vmul.f32 %v631_v31, %v627_v2  ;;  %v3935_v37 = vmul.f32 %v632_v51, %v625_v43  ;;  %v871_v31 = vperm.slane %v3937_v60, 0  ;;  %v914_v17 = vsel %vm911_vm14, %v3735_v35, %v3657_v50  ;;  %v1195_v50 = vld [vmem:[#allocation7 + $0x20] sm:$0xff] }
 0x1a4   : > { %1250 = vmatpush.msra.mxu1 %v899_v36  ;;  %1444 = vmatpush.msra.mxu2 %v899_v36  ;;  %v3978_v41 = vperm.slane %v3851_v32, 1  ;;  %v888_v32 = vsel %vm887_vm6, %v3860_v22, %v884_v40  ;;  %v5160_v22 = vld [vmem:[#allocation50_spill] sm:$0xff] }
 0x1a5   : > { %1233 = vmatpush.msra.mxu0 %v3932_v8  ;;  %1325 = vmatpush.msrb.mxu3 %v3935_v37 }
 0x1a6   : > { %1326 = vmatmul.f32.vlgmr.msrb.gmra.mxu3 %v1191_v16  ;;  %1234 = vmatmul.f32.vlgmr.msra.gmra.mxu0 %v1191_v16  ;;  %v838_v16 = vpop.permute.xlu2 %837 }
 0x1a7   : > { %1333 = vmatpush.msrb.mxu0 %v3509_v5  ;;  %1415 = vmatpush.msra.mxu3 %v3350_v55  ;;  %v915_v55 = vsel %vm911_vm14, %v3678_v34, %v3676_v54  ;;  %v845_v34 = vld [vmem:[#allocation5 + $0x11] ss:$8 sm:$0x3] }
 0x1a8   : > { %v858_v51 = vpop.permute.xlu0 %857  ;;  %v3967_v54 = vmul.f32 %v3948_v63, %v915_v55  ;;  %v847_v35 = vperm.slane %v845_v34, 0  ;;  %2579 = vmatmul.msk.f32.gmra.mxu2 %vm1211_vm3, %v3916_v3  ;;  %v4007_v3 = vmul.f32 %v3978_v41, %v888_v32  ;;  %v848_v55 = vperm.slane %v845_v34, 1 }
 0x1a9   : > { %1334 = vmatpush.msrb.mxu0 %v3550_v33  ;;  %1416 = vmatpush.msra.mxu3 %v3373_v62  ;;  %v862_v21 = vpop.permute.xlu1 %861 }
 0x1aa   : > { %v867_v36 = vsel %vm863_vm8, %v862_v21, %v858_v51 }
 0x1ab   : > { %1335 = vmatpush.msrb.mxu0 %v3594_v45  ;;  %1417 = vmatpush.msra.mxu3 %v3402_v12  ;;  %v877_v62 = vmul.f32 %v871_v31, %v867_v36  ;;  %v3972_v12 = vmul.f32 %v3948_v63, %v914_v17 }
 0x1ad   : > { %1336 = vmatpush.msrb.mxu0 %v3634_v23  ;;  %1418 = vmatpush.msra.mxu3 %v3446_v38 }
 0x1ae   : > { %1251 = vmatpush.msra.mxu1 %v877_v62  ;;  %1445 = vmatpush.msra.mxu2 %v877_v62 }
 0x1af   : > { %1337 = vmatpush.msrb.mxu0 %v3967_v54  ;;  %1419 = vmatpush.msra.mxu3 %v3465_v61  ;;  %v889_v61 = vsel %vm887_vm6, %v3876_v9, %v3826_v58  ;;  %v872_v9 = vperm.slane %v3937_v60, 1  ;;  %v5161_v60 = vld [vmem:[#allocation55_spill] sm:$0xff] }
 0x1b0   : > { %v860_v38 = vpop.permute.xlu0 %859  ;;  %1237 = vmatmul.f32.gmra.mxu0 %v1195_v50  ;;  %1329 = vmatmul.f32.gmra.mxu3 %v1195_v50  ;;  %v3999_v58 = vmul.f32 %v3978_v41, %v889_v61 }
 0x1b1   : > { %1338 = vmatpush.msrb.mxu0 %v3972_v12  ;;  %1420 = vmatpush.msra.mxu3 %v3488_v28  ;;  %v834_v26 = vpop.permute.xlu1 %833  ;;  %v866_v43 = vsel %vm863_vm8, %v860_v38, %v3922_v18 }
 0x1b2   : > { %v843_v2 = vsel %vm839_vm9, %v838_v16, %v834_v26  ;;  %v875_v28 = vmul.f32 %v871_v31, %v866_v43  ;;  %v865_v31 = vsel %vm863_vm8, %v858_v51, %v862_v21  ;;  %v841_v62 = vsel %vm839_vm9, %v834_v26, %v838_v16  ;;  %v821_v43 = vld [vmem:[#allocation5 + $0x10] ss:$8 sm:$0x3] }
 0x1b3   : > { %1339 = vmatpush.msrb.mxu0 %v3219_v6  ;;  %1421 = vmatpush.msra.mxu3 %v3532_v14  ;;  %v853_v36 = vmul.f32 %v847_v35, %v843_v2  ;;  %v810_v14 = vpop.permute.xlu2 %809  ;;  %v4014_v21 = vmul.f32 %v872_v9, %v865_v31  ;;  %v4028_v34 = vmul.f32 %v848_v55, %v841_v62  ;;  %v4035_v26 = vperm.slane %v821_v43, 0  ;;  %v5174_v62 = vld [vmem:[#allocation30_spill] sm:$0xff] }
 0x1b4   : > { %1252 = vmatpush.msra.mxu1 %v875_v28  ;;  %1446 = vmatpush.msra.mxu2 %v875_v28  ;;  %v4037_v2 = vperm.slane %v821_v43, 1  ;;  %v5181_v43 = vld [vmem:[#allocation44_spill] sm:$0xff] }
 0x1b5   : > { %1340 = vmatpush.msrb.mxu0 %v3221_v7  ;;  %1422 = vmatpush.msra.mxu3 %v3578_v52  ;;  %v864_v52 = vsel %vm863_vm8, %v3922_v18, %v860_v38  ;;  %v5162_v18 = vld [vmem:[#allocation61_spill] sm:$0xff] }
 0x1b6   : > { %1253 = vmatpush.msra.mxu1 %v853_v36  ;;  %1447 = vmatpush.msra.mxu2 %v853_v36  ;;  %v4022_v50 = vmul.f32 %v872_v9, %v864_v52 }
 0x1b7   : > { %1341 = vmatpush.msrb.mxu0 %v3999_v58  ;;  %1423 = vmatpush.msra.mxu3 %v5160_v22 }
 0x1b8   : > { %v832_v40 = vpop.permute.xlu0 %831 }
 0x1b9   : > { %1342 = vmatpush.msrb.mxu0 %v4007_v3  ;;  %1424 = vmatpush.msra.mxu3 %v5161_v60  ;;  %v836_v51 = vpop.permute.xlu1 %835  ;;  %v5166_v60 = vld [vmem:[#allocation22_spill] sm:$0xff] }
 0x1ba   : > { %v842_v17 = vsel %vm839_vm9, %v836_v51, %v832_v40  ;;  %v840_v61 = vsel %vm839_vm9, %v832_v40, %v836_v51  ;;  %v5168_v40 = vld [vmem:[#allocation23_spill] sm:$0xff]  ;;  %v5170_v51 = vld [vmem:[#allocation24_spill] sm:$0xff] }
 0x1bb   : > { %1343 = vmatpush.msrb.mxu0 %v4014_v21  ;;  %1425 = vmatpush.msra.mxu3 %v5162_v18  ;;  %v851_v38 = vmul.f32 %v847_v35, %v842_v17  ;;  %v4032_v16 = vmul.f32 %v848_v55, %v840_v61  ;;  %v812_v35 = vpop.permute.xlu2 %811  ;;  %v5172_v55 = vld [vmem:[#allocation27_spill] sm:$0xff]  ;;  %v5176_v17 = vld [vmem:[#allocation32_spill] sm:$0xff] }
 0x1bc   : > { %v5177_v18 = vld [vmem:[#allocation35_spill] sm:$0xff] }
 0x1bd   : > { %1344 = vmatpush.msrb.mxu0 %v4022_v50  ;;  %1426 = vmatpush.msra.mxu3 %v3814_v47 }
 0x1be   : > { %1254 = vmatpush.msra.mxu1 %v851_v38  ;;  %1448 = vmatpush.msra.mxu2 %v851_v38  ;;  %v5179_v38 = vld [vmem:[#allocation42_spill] sm:$0xff] }
 0x1bf   : > { %1345 = vmatpush.msrb.mxu0 %v4028_v34  ;;  %1427 = vmatpush.msra.mxu3 %v3847_v27  ;;  %v4095_v61 = vperm.slane %v5179_v38, 1  ;;  %v5200_v38 = vld [vmem:[#allocation59_spill] sm:$0xff] }
 0x1c0   : > { %v814_v47 = vpop.permute.xlu0 %813 }
 0x1c1   : > { %1346 = vmatpush.msrb.mxu0 %v4032_v16  ;;  %1428 = vmatpush.msra.mxu3 %v3892_v24  ;;  %v808_v28 = vpop.permute.xlu1 %807  ;;  %v817_v32 = vsel %vm815_vm11, %v810_v14, %v814_v47  ;;  %v819_v27 = vsel %vm815_vm11, %v814_v47, %v810_v14  ;;  %v5164_v14 = vld [vmem:[#allocation19_spill] sm:$0xff]  ;;  %v5182_v47 = vld [vmem:[#allocation38_spill] sm:$0xff] }
 0x1c2   : > { %v816_v36 = vsel %vm815_vm11, %v808_v28, %v812_v35  ;;  %v818_v9 = vsel %vm815_vm11, %v812_v35, %v808_v28  ;;  %v829_v31 = vmul.f32 %v4035_v26, %v819_v27  ;;  %v4052_v24 = vmul.f32 %v4037_v2, %v817_v32  ;;  %v5184_v28 = vld [vmem:[#allocation39_spill] sm:$0xff] }
 0x1c3   : > { %1429 = vmatpush.msra.mxu3 %v3910_v15  ;;  %v827_v22 = vmul.f32 %v4035_v26, %v818_v9  ;;  %v4056_v52 = vmul.f32 %v4037_v2, %v816_v36  ;;  %v5163_v15 = vld [vmem:[#allocation20_spill] sm:$0xff]  ;;  %v5185_v32 = vld [vmem:[#allocation47_spill] sm:$0xff]  ;;  %v5186_v36 = vld [vmem:[#allocation41_spill] sm:$0xff] }
 0x1c4   : > { %1255 = vmatpush.msra.mxu1 %v829_v31  ;;  %1347 = vmatpush.msrb.mxu0 %v4052_v24  ;;  %v1034_v27 = vsel %vm1031_vm10, %v5185_v32, %v5184_v28 }
 0x1c5   : > { %1430 = vmatpush.msra.mxu3 %v3932_v8  ;;  %1449 = vmatpush.msra.mxu2 %v829_v31  ;;  %v5165_v8 = vld [vmem:[#allocation21_spill] sm:$0xff]  ;;  %v5188_v31 = vld [vmem:[#allocation51_spill] sm:$0xff] }
 0x1c6   : > { %1256 = vmatpush.msra.mxu1 %v827_v22  ;;  %1348 = vmatpush.msrb.mxu0 %v4056_v52 }
 0x1c7   : > { %1515 = vmatpush.msrb.mxu3 %v3509_v5  ;;  %1450 = vmatpush.msra.mxu2 %v827_v22  ;;  %v5167_v5 = vld [vmem:[#allocation18_spill] sm:$0xff]  ;;  %v4114_v22 = vperm.slane %v5188_v31, 1 }
 0x1c8   : > { %1356 = vmatpush.msrb.mxu1 %v5163_v15  ;;  %1455 = vmatpush.msra.mxu0 %v5164_v14 }
 0x1c9   : > { %1516 = vmatpush.msrb.mxu3 %v3550_v33  ;;  %1535 = vmatpush.msrb.mxu2 %v5163_v15  ;;  %v5169_v33 = vld [vmem:[#allocation25_spill] sm:$0xff] }
 0x1ca   : > { %1357 = vmatpush.msrb.mxu1 %v5165_v8  ;;  %1456 = vmatpush.msra.mxu0 %v5166_v60  ;;  %v5189_v15 = vld [vmem:[#allocation45_spill] sm:$0xff]  ;;  %v1044_v60 = vmul.f32 %v4095_v61, %v1034_v27 }
 0x1cb   : > { %1517 = vmatpush.msrb.mxu3 %v3594_v45  ;;  %1536 = vmatpush.msrb.mxu2 %v5165_v8  ;;  %v5171_v45 = vld [vmem:[#allocation28_spill] sm:$0xff]  ;;  %v5191_v8 = vld [vmem:[#allocation46_spill] sm:$0xff] }
 0x1cc   : > { %1358 = vmatpush.msrb.mxu1 %v5167_v5  ;;  %1457 = vmatpush.msra.mxu0 %v5168_v40  ;;  %v5192_v40 = vld [vmem:[#allocation48_spill] sm:$0xff] }
 0x1cd   : > { %1518 = vmatpush.msrb.mxu3 %v3634_v23  ;;  %1537 = vmatpush.msrb.mxu2 %v5167_v5  ;;  %v5173_v23 = vld [vmem:[#allocation31_spill] sm:$0xff] }
 0x1ce   : > { %1359 = vmatpush.msrb.mxu1 %v5169_v33  ;;  %1458 = vmatpush.msra.mxu0 %v5170_v51  ;;  %v1196_v5 = vld [vmem:[#allocation7 + $0x28] sm:$0xff] }
 0x1cf   : > { %1519 = vmatpush.msrb.mxu3 %v3967_v54  ;;  %1538 = vmatpush.msrb.mxu2 %v5169_v33  ;;  %v5175_v54 = vld [vmem:[#allocation33_spill] sm:$0xff]  ;;  %v5193_v33 = vld [vmem:[#allocation58_spill] sm:$0xff] }
 0x1d0   : > { %1360 = vmatpush.msrb.mxu1 %v5171_v45  ;;  %1459 = vmatpush.msra.mxu0 %v5172_v55  ;;  %v1010_v51 = vsel %vm1007_vm13, %v5193_v33, %v5192_v40  ;;  %v5195_v55 = vld [vmem:[#allocation62_spill] sm:$0xff] }
 0x1d1   : > { %1520 = vmatpush.msrb.mxu3 %v3972_v12  ;;  %1539 = vmatpush.msrb.mxu2 %v5171_v45  ;;  %v1192_v12 = vld [vmem:[#allocation7 + $0x8] sm:$0xff] }
 0x1d2   : > { %1361 = vmatpush.msrb.mxu1 %v5173_v23  ;;  %1460 = vmatpush.msra.mxu0 %v5174_v62  ;;  %v1402_v62 = vld [vmem:[%s5196_s4] sm:$0xff] }
 0x1d3   : > { %1521 = vmatpush.msrb.mxu3 %v3219_v6  ;;  %1540 = vmatpush.msrb.mxu2 %v5173_v23  ;;  %v5178_v6 = vld [vmem:[#allocation34_spill] sm:$0xff]  ;;  %v4132_v23 = vperm.slane %v5195_v55, 1  ;;  %v1642_v55 = vld [vmem:[%s5000_s7 + $0x8] sm:$0xff] }
 0x1d4   : > { %1362 = vmatpush.msrb.mxu1 %v5175_v54  ;;  %1461 = vmatpush.msra.mxu0 %v5176_v17  ;;  %v5198_v17 = vld [vmem:[#allocation57_spill] sm:$0xff] }
 0x1d5   : > { %1522 = vmatpush.msrb.mxu3 %v3221_v7  ;;  %1541 = vmatpush.msrb.mxu2 %v5175_v54  ;;  %v5180_v7 = vld [vmem:[#allocation36_spill] sm:$0xff] }
 0x1d6   : > { %1363 = vmatpush.msrb.mxu1 %v5177_v18  ;;  %1462 = vmatpush.msra.mxu0 %v5178_v6  ;;  %v1035_v35 = vsel %vm1031_vm10, %v5181_v43, %v5180_v7  ;;  %v5197_v54 = vld [vmem:[#allocation64_spill] sm:$0xff]  ;;  %v5199_v6 = vld [vmem:[#allocation54_spill] sm:$0xff]  ;;  %v986_v43 = vsel %vm983_vm1, %v3733_v57, %v3798_v56 }
 0x1d7   : > { %1523 = vmatpush.msrb.mxu3 %v3999_v58  ;;  %1542 = vmatpush.msrb.mxu2 %v5177_v18  ;;  %v5183_v58 = vld [vmem:[#allocation37_spill] sm:$0xff]  ;;  %v1046_v9 = vmul.f32 %v4095_v61, %v1035_v35  ;;  %v987_v18 = vsel %vm983_vm1, %v5198_v17, %v5197_v54  ;;  %v996_v35 = vmul.f32 %v4132_v23, %v986_v43  ;;  %v1406_v57 = vld [vmem:[%s5202_s5] sm:$0xff]  ;;  %v5203_v56 = vld [vmem:[#allocation60_spill] sm:$0xff] }
 0x1d8   : > { %1349 = vmatmul.f32.vlgmr.msrb.gmra.mxu0 %v1192_v12  ;;  %1364 = vmatpush.msrb.mxu1 %v5182_v47  ;;  %v998_v7 = vmul.f32 %v4132_v23, %v987_v18 }
 0x1d9   : > { %1524 = vmatpush.msrb.mxu3 %v4007_v3  ;;  %1463 = vmatpush.msra.mxu0 %v5183_v58  ;;  %v5187_v3 = vld [vmem:[#allocation40_spill] sm:$0xff]  ;;  %v2987_v58 = vmov 0  }
 0x1da   : > { %1543 = vmatpush.msrb.mxu2 %v5182_v47  ;;  %1365 = vmatpush.msrb.mxu1 %v5186_v36  ;;  %v1404_v47 = vld [vmem:[%s5196_s4 + $0x10] sm:$0xff] }
 0x1db   : > { %1525 = vmatpush.msrb.mxu3 %v4014_v21  ;;  %1464 = vmatpush.msra.mxu0 %v5187_v3  ;;  %v5190_v21 = vld [vmem:[#allocation53_spill] sm:$0xff] }
 0x1dc   : > { %1544 = vmatpush.msrb.mxu2 %v5186_v36  ;;  %v1011_v14 = vsel %vm1007_vm13, %v5190_v21, %v5189_v15  ;;  %1366 = vmatpush.msrb.mxu1 %v1046_v9 }
 0x1dd   : > { %1526 = vmatpush.msrb.mxu3 %v4022_v50  ;;  %1465 = vmatpush.msra.mxu0 %v5191_v8  ;;  %v5194_v50 = vld [vmem:[#allocation49_spill] sm:$0xff]  ;;  %v1022_v45 = vmul.f32 %v4114_v22, %v1011_v14 }
 0x1de   : > { %1545 = vmatpush.msrb.mxu2 %v1046_v9  ;;  %1367 = vmatpush.msrb.mxu1 %v1044_v60 }
 0x1df   : > { %1527 = vmatpush.msrb.mxu3 %v4028_v34  ;;  %1466 = vmatpush.msra.mxu0 %v5194_v50  ;;  %v1020_v34 = vmul.f32 %v4114_v22, %v1010_v51 }
 0x1e0   : > { %1546 = vmatpush.msrb.mxu2 %v1044_v60  ;;  %1352 = vmatmul.f32.gmra.mxu0 %v1196_v5 }
 0x1e1   : > { %1528 = vmatpush.msrb.mxu3 %v4032_v16  ;;  %1368 = vmatpush.msrb.mxu1 %v1022_v45  ;;  %v1403_v16 = vld [vmem:[%s5196_s4 + $0x8] sm:$0xff] }
 0x1e2   : > { %1467 = vmatpush.msra.mxu0 %v5199_v6  ;;  %1547 = vmatpush.msrb.mxu2 %v1022_v45 }
 0x1e3   : > { %1529 = vmatpush.msrb.mxu3 %v4052_v24  ;;  %1369 = vmatpush.msrb.mxu1 %v1020_v34  ;;  %v5201_v24 = vld [vmem:[#allocation65_spill] sm:$0xff] }
 0x1e4   : > { %1431 = vmatmul.f32.vlgmr.msra.gmra.mxu3 %v1402_v62  ;;  %1468 = vmatpush.msra.mxu0 %v5200_v38 }
 0x1e5   : > { %1548 = vmatpush.msrb.mxu2 %v1020_v34  ;;  %1530 = vmatpush.msrb.mxu3 %v4056_v52 }
 0x1e6   : > { %1370 = vmatpush.msrb.mxu1 %v998_v7  ;;  %1451 = vmatmul.f32.vlgmr.msra.gmra.mxu2 %v1403_v16 }
 0x1e7   : > { %1469 = vmatpush.msra.mxu0 %v5201_v24  ;;  %1549 = vmatpush.msrb.mxu2 %v998_v7 }
 0x1e8   : > { %1257 = vmatmul.f32.vlgmr.msra.gmra.mxu1 %v1192_v12  ;;  %2724 = vset.pattern.permute.xlu0 %v2987_v58 }
 0x1e9   : > { %1371 = vmatpush.msrb.mxu1 %v996_v35  ;;  %1470 = vmatpush.msra.mxu0 %v3817_v29  ;;  %v1405_v29 = vld [vmem:[%s5196_s4 + $0x18] sm:$0xff] }
 0x1ea   : > { %1550 = vmatpush.msrb.mxu2 %v996_v35  ;;  %1471 = vmatmul.f32.vlgmr.msra.gmra.mxu0 %v1404_v47 }
 0x1eb   : > { %1489 = vmatpush.msrb.mxu0 %v5203_v56  ;;  %1495 = vmatpush.msra.mxu1 %v3775_v20 }
 0x1ec   : > { %1409 = vperm.xlu0 %2724, %v1406_v57   ;;  %1531 = vmatmul.f32.vlgmr.msrb.gmra.mxu3 %v1403_v16  ;;  %v5212_v16 = vld [vmem:[#allocation43_spill] sm:$0xff]  ;;  %v5213_v57 = vld [vmem:[#allocation52_spill] sm:$0xff] }
 0x1ed   : > { %1490 = vmatpush.msrb.mxu0 %v3768_v48  ;;  %1496 = vmatpush.msra.mxu1 %v3787_v49  ;;  %v5204_v48 = vld [vmem:[#allocation68_spill] sm:$0xff] }
 0x1ee   : > { %1551 = vmatmul.f32.vlgmr.msrb.gmra.mxu2 %v1404_v47  ;;  %2725 = vset.pattern.permute.xlu1 %v2987_v58 }
 0x1ef   : > { %1569 = vmatpush.msra.mxu0 %v3822_v19  ;;  %1497 = vmatpush.msra.mxu1 %v3795_v59 }
 0x1f0   : > { %1260 = vmatmul.f32.gmra.mxu1 %v1196_v5  ;;  %2726 = vset.pattern.permute.xlu2 %v2987_v58 }
 0x1f1   : > { %1570 = vmatpush.msra.mxu0 %v3832_v39  ;;  %1498 = vmatpush.msra.mxu1 %v3805_v4 }
 0x1f2   : > { %2580 = vmatmul.msk.f32.vlgmr.msrb.gmra.mxu0 %vm1211_vm3, %v1405_v29 }
 0x1f3   : > { %1499 = vmatpush.msra.mxu1 %v3467_v1  ;;  %v5205_v1 = vld [vmem:[#allocation69_spill] sm:$0xff] }
 0x1f5   : > { %1500 = vmatpush.msra.mxu1 %v3490_v30  ;;  %v5206_v30 = vld [vmem:[#allocation70_spill] sm:$0xff] }
 0x1f7   : > { %1501 = vmatpush.msra.mxu1 %v3534_v0  ;;  %v5207_v0 = vld [vmem:[#allocation71_spill] sm:$0xff] }
 0x1f8   : > { %1372 = vmatmul.f32.vlgmr.msrb.gmra.mxu1 %v3824_v44 }
 0x1f9   : > { %1502 = vmatpush.msra.mxu1 %v3580_v46 }
 0x1fa   : > { %2581 = vmatmul.msk.f32.vlgmr.msra.gmra.mxu0 %vm1211_vm3, %v1405_v29 }
 0x1fb   : > { %1503 = vmatpush.msra.mxu1 %v3618_v25 }
 0x1fd   : > { %1504 = vmatpush.msra.mxu1 %v3666_v11 }
 0x1ff   : > { %1505 = vmatpush.msra.mxu1 %v3871_v13 }
 0x200   : > { %1375 = vmatmul.f32.gmra.mxu1 %v3920_v42  ;;  %v4191_v46 = vpop.f32.mrf.mxu3 }
 0x201   : > { %1506 = vmatpush.msra.mxu1 %v5204_v48 }
 0x203   : > { %1507 = vmatpush.msra.mxu1 %v5205_v1 }
 0x205   : > { %1508 = vmatpush.msra.mxu1 %v5206_v30  ;;  %v1641_v30 = vld [vmem:[%s5000_s7] sm:$0xff] }
 0x207   : > { %1509 = vmatpush.msra.mxu1 %v5207_v0 }
 0x209   : > { %1510 = vmatpush.msra.mxu1 %v3935_v37  ;;  %v4195_v11 = vpop.f32.mrf.mxu2 }
 0x20a   : > { %1511 = vmatmul.f32.vlgmr.msra.gmra.mxu1 %v1402_v62 }
 0x21b   : > { %v4201_v59 = vpop.f32.mrf.mxu2 }
 0x21c   : > { %5209 = vst [vmem:[#allocation55_spill] sm:$0xff] %v4201_v59  ;;  %v2196_v59 = vld [vmem:[#allocation8 + $0x8] sm:$0xff] }
 0x21d   : > { %v4197_v20 = vpop.f32.mrf.mxu3 }
 0x21e   : > { %5208 = vst [vmem:[#allocation50_spill] sm:$0xff] %v4197_v20 }
 0x223   : > { %v4193_v25 = vpop.f32.mrf.mxu0  ;;  %v4207_v44 = vpop.f32.mrf.mxu2 }
 0x229   : > { %v4203_v4 = vpop.f32.mrf.mxu3 }
 0x22b   : > { %v4213_v37 = vpop.f32.mrf.mxu2 }
 0x22c   : > { %5210 = vst [vmem:[#allocation61_spill] sm:$0xff] %v4213_v37 }
 0x22d   : > { %v4199_v49 = vpop.f32.mrf.mxu0 }
 0x233   : > { %v4211_v13 = vpop.f32.mrf.mxu3 }
 0x255   : > { %v4205_v19 = vpop.f32.mrf.mxu0 }
 0x25d   : > { %v4209_v39 = vpop.f32.mrf.mxu0 }
 0x25e   : > { %v1410_v52 = vpop.permute.xlu0 %1409 }
 0x265   : > { %v4215_v42 = vpop.f32.mrf.mxu1 }
 0x267   : > { %v1472_v12 = vpop.f32.mrf.mxu0  ;;  %v1432_v28 = vpop.f32.mrf.mxu3 }
 0x268   : > { %v1433_v32 = vadd.f32 %v1432_v28, %v1410_v52 }
 0x269   : > { %v1452_v27 = vpop.f32.mrf.mxu2 }
 0x26a   : > { %v1453_v36 = vadd.f32 %v1452_v27, %v1433_v32 }
 0x26c   : > { %v1473_v3 = vadd.f32 %v1472_v12, %v1453_v36 }
 0x26d   : > { %v4217_v9 = vpop.f32.mrf.mxu1 }
 0x26f   : > { %v1492_v31 = vpop.f32.mrf.mxu0  ;;  %v1532_v60 = vpop.f32.mrf.mxu3 }
 0x270   : > { %v4219_v15 = vadd.f32 %v1492_v31, %v1473_v3  ;;  %v5214_v3 = vld [vmem:[#allocation63_spill] sm:$0xff] }
 0x271   : > { %v1552_v40 = vpop.f32.mrf.mxu2 }
 0x272   : > { %1607 = vrot.lane.b32.xlu2 %v4219_v15, %s2977_s27  ;;  %1615 = vrot.lane.b32.xlu0 %v4219_v15, %s2980_s16 }
 0x273   : > { %1631 = vrot.lane.b32.xlu1 %v4219_v15, %s2973_s18 }
 0x275   : > { %v4227_v21 = vpop.f32.mrf.mxu1 }
 0x277   : > { %v1572_v51 = vpop.f32.mrf.mxu0 }
 0x27a   : > { %1583 = vrot.lane.b32.xlu2 %v4219_v15, %s2965_s28  ;;  %1591 = vrot.lane.b32.xlu0 %v4219_v15, %s2986_s17 }
 0x27b   : > { %1623 = vrot.lane.b32.xlu1 %v4219_v15, %s2976_s1 }
 0x27d   : > { %v4235_v14 = vpop.f32.mrf.mxu1 }
 0x27e   : > { %5211 = vst [vmem:[#allocation20_spill] sm:$0xff] %v4235_v14 }
 0x283   : > { %1599 = vrot.lane.b32.xlu1 %v4219_v15, %s2982_s30 }
 0x287   : > { %v1512_v8 = vpop.f32.mrf.mxu1 }
 0x288   : > { %v1513_v5 = vadd.f32 %v1512_v8, %v1410_v52 }
 0x28a   : > { %v1533_v33 = vadd.f32 %v1532_v60, %v1513_v5  ;;  %v5215_v60 = vld [vmem:[#allocation56_spill] sm:$0xff] }
 0x28c   : > { %v1553_v50 = vadd.f32 %v1552_v40, %v1533_v33 }
 0x28e   : > { %v4239_v45 = vadd.f32 %v1572_v51, %v1553_v50 }
 0x290   : > { %1633 = vrot.lane.b32.xlu2 %v4239_v45, %s2973_s18  ;;  %1609 = vrot.lane.b32.xlu0 %v4239_v45, %s2977_s27 }
 0x291   : > { %1617 = vrot.lane.b32.xlu1 %v4239_v45, %s2980_s16 }
 0x298   : > { %1625 = vrot.lane.b32.xlu2 %v4239_v45, %s2976_s1  ;;  %1585 = vrot.lane.b32.xlu0 %v4239_v45, %s2965_s28 }
 0x299   : > { %1593 = vrot.lane.b32.xlu1 %v4239_v45, %s2986_s17 }
 0x2a0   : > { %1601 = vrot.lane.b32.xlu2 %v4239_v45, %s2982_s30  ;;  %1650 = vperm.xlu0 %2724, %v1642_v55  }
 0x2a1   : > { %1575 = vrot.lane.b32.xlu1 %v4219_v15, %s2967_s13 }
 0x2a8   : > { %1577 = vrot.lane.b32.xlu2 %v4239_v45, %s2967_s13 }
 0x2a9   : > { %1645 = vperm.xlu1 %2725, %v1641_v30  }
 0x2cc   : > { %v1608_v34 = vpop.permute.xlu2 %1607 }
 0x2d4   : > { %v1584_v62 = vpop.permute.xlu2 %1583 }
 0x2e4   : > { %v1616_v43 = vpop.permute.xlu0 %1615 }
 0x2e5   : > { %v1632_v54 = vpop.permute.xlu1 %1631 }
 0x2ea   : > { %v1634_v17 = vpop.permute.xlu2 %1633 }
 0x2eb   : > { %v1635_v18 = vsel %vm1031_vm10, %v1632_v54, %v1634_v17  ;;  %v1636_v6 = vsel %vm1031_vm10, %v1634_v17, %v1632_v54 }
 0x2ec   : > { %v1637_v38 = vmul.f32 %v1635_v18, %v5212_v16  ;;  %v1638_v7 = vmul.f32 %v1636_v6, %v4095_v61  ;;  %v1592_v48 = vpop.permute.xlu0 %1591 }
 0x2ed   : > { %v1624_v24 = vpop.permute.xlu1 %1623 }
 0x2ee   : > { %1667 = vmatpush.msrb.mxu1 %v1637_v38  ;;  %1690 = vmatpush.msrb.mxu0 %v1638_v7 }
 0x2f2   : > { %v1626_v35 = vpop.permute.xlu2 %1625 }
 0x2f3   : > { %v1627_v47 = vsel %vm1007_vm13, %v1624_v24, %v1626_v35  ;;  %v1628_v58 = vsel %vm1007_vm13, %v1626_v35, %v1624_v24  ;;  %v5216_v24 = vld [vmem:[#allocation26_spill] sm:$0xff] }
 0x2f4   : > { %v1629_v56 = vmul.f32 %v1627_v47, %v5213_v57  ;;  %v1630_v29 = vmul.f32 %v1628_v58, %v4114_v22  ;;  %v5217_v47 = vld [vmem:[#allocation66_spill] sm:$0xff] }
 0x2f5   : > { %v1600_v1 = vpop.permute.xlu1 %1599 }
 0x2f6   : > { %1668 = vmatpush.msrb.mxu1 %v1629_v56  ;;  %1691 = vmatpush.msrb.mxu0 %v1630_v29 }
 0x2fa   : > { %v1602_v36 = vpop.permute.xlu2 %1601 }
 0x2fb   : > { %v1603_v33 = vsel %vm887_vm6, %v1600_v1, %v1602_v36  ;;  %v1604_v51 = vsel %vm887_vm6, %v1602_v36, %v1600_v1  ;;  %v5218_v1 = vld [vmem:[#allocation29_spill] sm:$0xff] }
 0x2fc   : > { %v1605_v55 = vmul.f32 %v1604_v51, %v3868_v53 }
 0x302   : > { %v1610_v0 = vpop.permute.xlu0 %1609 }
 0x303   : > { %v1618_v52 = vpop.permute.xlu1 %1617  ;;  %v1611_v12 = vsel %vm911_vm14, %v1608_v34, %v1610_v0  ;;  %v1612_v28 = vsel %vm911_vm14, %v1610_v0, %v1608_v34  ;;  %v1606_v34 = vmul.f32 %v1603_v33, %v3978_v41  ;;  %v5219_v0 = vld [vmem:[#allocation67_spill] sm:$0xff] }
 0x304   : > { %v1619_v32 = vsel %vm983_vm1, %v1616_v43, %v1618_v52  ;;  %v1620_v27 = vsel %vm983_vm1, %v1618_v52, %v1616_v43  ;;  %v1613_v5 = vmul.f32 %v1611_v12, %v5215_v60  ;;  %v1614_v40 = vmul.f32 %v1612_v28, %v3948_v63  ;;  %v1639_v12 = vld [vmem:[%s4999_s6] sm:$0xff]  ;;  %v1640_v28 = vld [vmem:[%s4999_s6 + $0x8] sm:$0xff] }
 0x305   : > { %v1621_v31 = vmul.f32 %v1619_v32, %v5214_v3  ;;  %v1622_v8 = vmul.f32 %v1620_v27, %v4132_v23 }
 0x307   : > { %1669 = vmatpush.msrb.mxu1 %v1621_v31  ;;  %1692 = vmatpush.msrb.mxu0 %v1622_v8 }
 0x309   : > { %1670 = vmatpush.msrb.mxu1 %v1613_v5  ;;  %1693 = vmatpush.msrb.mxu0 %v1614_v40 }
 0x30a   : > { %v1586_v50 = vpop.permute.xlu0 %1585 }
 0x30b   : > { %1671 = vmatpush.msrb.mxu1 %v4219_v15  ;;  %1694 = vmatpush.msrb.mxu0 %v4239_v45  ;;  %v1594_v54 = vpop.permute.xlu1 %1593  ;;  %v1587_v17 = vsel %vm791_vm2, %v1584_v62, %v1586_v50  ;;  %v1588_v18 = vsel %vm791_vm2, %v1586_v50, %v1584_v62  ;;  %v1578_v62 = vpop.permute.xlu2 %1577 }
 0x30c   : > { %v1595_v6 = vsel %vm815_vm11, %v1592_v48, %v1594_v54  ;;  %v1596_v38 = vsel %vm815_vm11, %v1594_v54, %v1592_v48  ;;  %v1589_v35 = vmul.f32 %v1588_v18, %v5216_v24  ;;  %v1590_v58 = vmul.f32 %v1587_v17, %v5217_v47  ;;  %v1840_v18 = vld [vmem:[%s5002_s9] sm:$0xff] }
 0x30d   : > { %v1597_v7 = vmul.f32 %v1596_v38, %v4035_v26  ;;  %v1598_v43 = vmul.f32 %v1595_v6, %v4037_v2  ;;  %1672 = vmatpush.msrb.mxu1 %v1605_v55  ;;  %1695 = vmatpush.msrb.mxu0 %v1606_v34 }
 0x30f   : > { %1673 = vmatpush.msrb.mxu1 %v1597_v7  ;;  %1696 = vmatpush.msrb.mxu0 %v1598_v43 }
 0x311   : > { %1674 = vmatpush.msrb.mxu1 %v1589_v35  ;;  %1697 = vmatpush.msrb.mxu0 %v1590_v58 }
 0x312   : > { %v1651_v51 = vpop.permute.xlu0 %1650 }
 0x313   : > { %v1576_v56 = vpop.permute.xlu1 %1575 }
 0x314   : > { %v1579_v29 = vsel %vm767_vm4, %v1576_v56, %v1578_v62  ;;  %v1580_v48 = vsel %vm767_vm4, %v1578_v62, %v1576_v56 }
 0x315   : > { %v1581_v30 = vmul.f32 %v1580_v48, %v5218_v1  ;;  %v1582_v52 = vmul.f32 %v1579_v29, %v5219_v0 }
 0x317   : > { %1675 = vmatpush.msrb.mxu1 %v1581_v30  ;;  %1698 = vmatpush.msrb.mxu0 %v1582_v52 }
 0x318   : > { %2582 = vmatmul.msk.f32.vlgmr.msrb.gmra.mxu1 %vm1653_vm12, %v1639_v12  ;;  %2584 = vmatmul.msk.f32.vlgmr.msrb.gmra.mxu0 %vm1653_vm12, %v1639_v12 }
 0x31b   : > { %v1646_v32 = vpop.permute.xlu1 %1645 }
 0x320   : > { %2583 = vmatmul.msk.f32.gmra.mxu1 %vm1653_vm12, %v1640_v28  ;;  %2585 = vmatmul.msk.f32.gmra.mxu0 %vm1653_vm12, %v1640_v28 }
 0x395   : > { %v1677_v27 = vpop.f32.mrf.mxu1  ;;  %v1700_v36 = vpop.f32.mrf.mxu0 }
 0x396   : > { %v1678_v31 = vadd.f32 %v1677_v27, %v1646_v32  ;;  %v1701_v8 = vadd.f32 %v1700_v36, %v1646_v32 }
 0x398   : > { %v4325_v5 = vmax.f32 %v1678_v31, 0.0  ;;  %v4327_v40 = vmax.f32 %v1701_v8, 0.0 }
 0x39a   : > { %1794 = vrot.lane.b32.xlu0 %v4327_v40, %s2980_s16  ;;  %1810 = vrot.lane.b32.xlu2 %v4327_v40, %s2976_s1 }
 0x39b   : > { %1806 = vrot.lane.b32.xlu1 %v4325_v5, %s2976_s1 }
 0x39d   : > { %v1703_v33 = vpop.f32.mrf.mxu0  ;;  %v1680_v34 = vpop.f32.mrf.mxu1 }
 0x39e   : > { %v1704_v50 = vadd.f32 %v1703_v33, %v1651_v51  ;;  %v1681_v54 = vadd.f32 %v1680_v34, %v1651_v51 }
 0x3a0   : > { %v4353_v55 = vmax.f32 %v1704_v50, 0.0  ;;  %v4361_v17 = vmax.f32 %v1681_v54, 0.0 }
 0x3a2   : > { %1774 = vrot.lane.b32.xlu0 %v4325_v5, %s2977_s27  ;;  %1790 = vrot.lane.b32.xlu2 %v4325_v5, %s2980_s16 }
 0x3a3   : > { %1778 = vrot.lane.b32.xlu1 %v4327_v40, %s2977_s27 }
 0x3aa   : > { %1746 = vrot.lane.b32.xlu0 %v4327_v40, %s2986_s17  ;;  %1762 = vrot.lane.b32.xlu2 %v4327_v40, %s2982_s30 }
 0x3ab   : > { %1758 = vrot.lane.b32.xlu1 %v4325_v5, %s2982_s30 }
 0x3b2   : > { %1826 = vrot.lane.b32.xlu0 %v4327_v40, %s2973_s18  ;;  %1742 = vrot.lane.b32.xlu2 %v4325_v5, %s2986_s17 }
 0x3b3   : > { %1726 = vrot.lane.b32.xlu1 %v4325_v5, %s2965_s28 }
 0x3ba   : > { %1812 = vrot.lane.b32.xlu0 %v4353_v55, %s2976_s1  ;;  %1822 = vrot.lane.b32.xlu2 %v4325_v5, %s2973_s18 }
 0x3bb   : > { %1796 = vrot.lane.b32.xlu1 %v4353_v55, %s2980_s16 }
 0x3c2   : > { %1792 = vrot.lane.b32.xlu0 %v4361_v17, %s2980_s16  ;;  %1730 = vrot.lane.b32.xlu2 %v4327_v40, %s2965_s28 }
 0x3c3   : > { %1776 = vrot.lane.b32.xlu1 %v4361_v17, %s2977_s27 }
 0x3ca   : > { %1764 = vrot.lane.b32.xlu0 %v4353_v55, %s2982_s30  ;;  %1808 = vrot.lane.b32.xlu2 %v4361_v17, %s2976_s1 }
 0x3cb   : > { %1748 = vrot.lane.b32.xlu1 %v4353_v55, %s2986_s17 }
 0x3d2   : > { %1744 = vrot.lane.b32.xlu0 %v4361_v17, %s2986_s17  ;;  %1780 = vrot.lane.b32.xlu2 %v4353_v55, %s2977_s27 }
 0x3d3   : > { %1824 = vrot.lane.b32.xlu1 %v4361_v17, %s2973_s18 }
 0x3da   : > { %1728 = vrot.lane.b32.xlu0 %v4361_v17, %s2965_s28  ;;  %1760 = vrot.lane.b32.xlu2 %v4361_v17, %s2982_s30 }
 0x3db   : > { %1732 = vrot.lane.b32.xlu1 %v4353_v55, %s2965_s28 }
 0x3e2   : > { %1712 = vrot.lane.b32.xlu0 %v4361_v17, %s2967_s13  ;;  %1828 = vrot.lane.b32.xlu2 %v4353_v55, %s2973_s18 }
 0x3e3   : > { %1716 = vrot.lane.b32.xlu1 %v4353_v55, %s2967_s13 }
 0x3ea   : > { %1714 = vrot.lane.b32.xlu0 %v4327_v40, %s2967_s13  ;;  %1710 = vrot.lane.b32.xlu2 %v4325_v5, %s2967_s13 }
 0x3eb   : > { %1843 = vperm.xlu1 %2725, %v1840_v18  }
 0x3f4   : > { %v1811_v6 = vpop.permute.xlu2 %1810 }
 0x3fc   : > { %v1791_v38 = vpop.permute.xlu2 %1790 }
 0x404   : > { %v4400_v7 = vpop.permute.xlu2 %1762 }
 0x40c   : > { %v1795_v43 = vpop.permute.xlu0 %1794  ;;  %v4402_v35 = vpop.permute.xlu2 %1742 }
 0x40d   : > { %v1807_v58 = vpop.permute.xlu1 %1806 }
 0x40e   : > { %v1814_v36 = vsel %vm1007_vm13, %v1807_v58, %v1811_v6  ;;  %v1816_v31 = vsel %vm1007_vm13, %v1811_v6, %v1807_v58  ;;  %v1798_v58 = vsel %vm983_vm1, %v1791_v38, %v1795_v43 }
 0x40f   : > { %v1818_v54 = vmul.f32 %v1814_v36, %v5213_v57  ;;  %v1819_v18 = vmul.f32 %v1816_v31, %v4114_v22 }
 0x414   : > { %v1775_v62 = vpop.permute.xlu0 %1774  ;;  %v4404_v56 = vpop.permute.xlu2 %1822 }
 0x415   : > { %v1779_v29 = vpop.permute.xlu1 %1778 }
 0x41c   : > { %v4406_v48 = vpop.permute.xlu0 %1746  ;;  %v4408_v30 = vpop.permute.xlu2 %1730 }
 0x41d   : > { %v1759_v52 = vpop.permute.xlu1 %1758 }
 0x424   : > { %v4410_v12 = vpop.permute.xlu0 %1826  ;;  %v1809_v32 = vpop.permute.xlu2 %1808 }
 0x425   : > { %v4412_v28 = vpop.permute.xlu1 %1726 }
 0x42c   : > { %v1813_v27 = vpop.permute.xlu0 %1812  ;;  %v1781_v37 = vpop.permute.xlu2 %1780 }
 0x42d   : > { %v1815_v8 = vsel %vm1007_vm13, %v1809_v32, %v1813_v27  ;;  %v1817_v33 = vsel %vm1007_vm13, %v1813_v27, %v1809_v32  ;;  %v1797_v51 = vpop.permute.xlu1 %1796  ;;  %v1800_v32 = vsel %vm983_vm1, %v1795_v43, %v1791_v38  ;;  %v1782_v43 = vsel %vm911_vm14, %v1775_v62, %v1779_v29 }
 0x42e   : > { %v1820_v50 = vmul.f32 %v1815_v8, %v5213_v57  ;;  %v1821_v34 = vmul.f32 %v1817_v33, %v4114_v22  ;;  %v1803_v38 = vmul.f32 %v1800_v32, %v4132_v23 }
 0x430   : > { %1849 = vmatpush.msra.mxu3 %v1820_v50  ;;  %1889 = vmatpush.msra.mxu1 %v1821_v34 }
 0x432   : > { %1850 = vmatpush.msra.mxu3 %v1818_v54  ;;  %1890 = vmatpush.msra.mxu1 %v1819_v18  ;;  %v1802_v54 = vmul.f32 %v1798_v58, %v5214_v3 }
 0x434   : > { %v1793_v6 = vpop.permute.xlu0 %1792 }
 0x435   : > { %v1799_v27 = vsel %vm983_vm1, %v1793_v6, %v1797_v51  ;;  %v1801_v36 = vsel %vm983_vm1, %v1797_v51, %v1793_v6  ;;  %v1777_v8 = vpop.permute.xlu1 %1776  ;;  %v1784_v51 = vsel %vm911_vm14, %v1779_v29, %v1775_v62 }
 0x436   : > { %v1804_v31 = vmul.f32 %v1799_v27, %v5214_v3  ;;  %v1805_v33 = vmul.f32 %v1801_v36, %v4132_v23  ;;  %v1783_v50 = vsel %vm911_vm14, %v1777_v8, %v1781_v37  ;;  %v1785_v34 = vsel %vm911_vm14, %v1781_v37, %v1777_v8  ;;  %v1761_v27 = vpop.permute.xlu2 %1760 }
 0x437   : > { %v1788_v18 = vmul.f32 %v1783_v50, %v5215_v60  ;;  %v1789_v6 = vmul.f32 %v1785_v34, %v3948_v63  ;;  %v1786_v37 = vmul.f32 %v1782_v43, %v5215_v60  ;;  %v1787_v58 = vmul.f32 %v1784_v51, %v3948_v63 }
 0x438   : > { %1851 = vmatpush.msra.mxu3 %v1804_v31  ;;  %1891 = vmatpush.msra.mxu1 %v1805_v33  ;;  %v1768_v8 = vsel %vm887_vm6, %v4400_v7, %v1759_v52  ;;  %v1766_v31 = vsel %vm887_vm6, %v1759_v52, %v4400_v7  ;;  %v1752_v7 = vsel %vm815_vm11, %v4406_v48, %v4402_v35 }
 0x439   : > { %v1771_v52 = vmul.f32 %v1766_v31, %v3978_v41  ;;  %v1830_v43 = vsel %vm1031_vm10, %v4404_v56, %v4410_v12 }
 0x43a   : > { %1852 = vmatpush.msra.mxu3 %v1802_v54  ;;  %1892 = vmatpush.msra.mxu1 %v1803_v38 }
 0x43c   : > { %v1765_v32 = vpop.permute.xlu0 %1764  ;;  %1853 = vmatpush.msra.mxu3 %v1788_v18  ;;  %1893 = vmatpush.msra.mxu1 %v1789_v6 }
 0x43d   : > { %v1749_v36 = vpop.permute.xlu1 %1748  ;;  %v1767_v62 = vsel %vm887_vm6, %v1761_v27, %v1765_v32  ;;  %v1769_v29 = vsel %vm887_vm6, %v1765_v32, %v1761_v27  ;;  %v1754_v27 = vmul.f32 %v1752_v7, %v4035_v26  ;;  %v1834_v32 = vmul.f32 %v1830_v43, %v5212_v16 }
 0x43e   : > { %1854 = vmatpush.msra.mxu3 %v1786_v37  ;;  %1894 = vmatpush.msra.mxu1 %v1787_v58  ;;  %v1772_v33 = vmul.f32 %v1769_v29, %v3868_v53  ;;  %v1773_v50 = vmul.f32 %v1767_v62, %v3978_v41  ;;  %v1832_v58 = vsel %vm1031_vm10, %v4410_v12, %v4404_v56  ;;  %v1839_v62 = vld [vmem:[%s5001_s8 + $0x8] sm:$0xff] }
 0x43f   : > { %v1835_v29 = vmul.f32 %v1832_v58, %v4095_v61  ;;  %v1734_v56 = vsel %vm791_vm2, %v4412_v28, %v4408_v30  ;;  %v1736_v12 = vsel %vm791_vm2, %v4408_v30, %v4412_v28 }
 0x440   : > { %1855 = vmatpush.msra.mxu3 %v4361_v17  ;;  %1895 = vmatpush.msra.mxu1 %v4353_v55  ;;  %v1750_v55 = vsel %vm815_vm11, %v4402_v35, %v4406_v48  ;;  %v1770_v17 = vmul.f32 %v1768_v8, %v3868_v53  ;;  %v1739_v7 = vmul.f32 %v1734_v56, %v5217_v47 }
 0x441   : > { %v1755_v37 = vmul.f32 %v1750_v55, %v4037_v2 }
 0x442   : > { %1856 = vmatpush.msra.mxu3 %v4325_v5  ;;  %1896 = vmatpush.msra.mxu1 %v4327_v40  ;;  %v1829_v5 = vpop.permute.xlu2 %1828 }
 0x444   : > { %v1745_v34 = vpop.permute.xlu0 %1744  ;;  %1857 = vmatpush.msra.mxu3 %v1772_v33  ;;  %1897 = vmatpush.msra.mxu1 %v1773_v50 }
 0x445   : > { %v1751_v40 = vsel %vm815_vm11, %v1745_v34, %v1749_v36  ;;  %v1753_v54 = vsel %vm815_vm11, %v1749_v36, %v1745_v34  ;;  %v1825_v38 = vpop.permute.xlu1 %1824  ;;  %v1738_v34 = vmul.f32 %v1736_v12, %v5216_v24 }
 0x446   : > { %v1756_v51 = vmul.f32 %v1753_v54, %v4035_v26  ;;  %v1757_v18 = vmul.f32 %v1751_v40, %v4037_v2  ;;  %v1831_v35 = vsel %vm1031_vm10, %v1825_v38, %v1829_v5  ;;  %1858 = vmatpush.msra.mxu3 %v1770_v17  ;;  %v1833_v48 = vsel %vm1031_vm10, %v1829_v5, %v1825_v38 }
 0x447   : > { %v1836_v6 = vmul.f32 %v1831_v35, %v5212_v16  ;;  %1898 = vmatpush.msra.mxu1 %v1771_v52  ;;  %v1837_v36 = vmul.f32 %v1833_v48, %v4095_v61 }
 0x448   : > { %1859 = vmatpush.msra.mxu3 %v1756_v51 }
 0x449   : > { %1883 = vmatpush.msra.mxu2 %v1836_v6  ;;  %1899 = vmatpush.msra.mxu1 %v1757_v18  ;;  %v1838_v6 = vld [vmem:[%s5001_s8] sm:$0xff] }
 0x44a   : > { %1860 = vmatpush.msra.mxu3 %v1754_v27  ;;  %v1711_v38 = vpop.permute.xlu2 %1710 }
 0x44b   : > { %1884 = vmatpush.msra.mxu2 %v1834_v32  ;;  %1900 = vmatpush.msra.mxu1 %v1755_v37 }
 0x44c   : > { %v1729_v8 = vpop.permute.xlu0 %1728  ;;  %2586 = vmatmul.msk.f32.vlgmr.msra.gmra.mxu2 %vm1211_vm3, %v1839_v62 }
 0x44d   : > { %1923 = vmatpush.msrb.mxu2 %v1837_v36  ;;  %v1733_v31 = vpop.permute.xlu1 %1732 }
 0x44e   : > { %v1735_v33 = vsel %vm791_vm2, %v1729_v8, %v1733_v31  ;;  %v1737_v50 = vsel %vm791_vm2, %v1733_v31, %v1729_v8 }
 0x44f   : > { %1924 = vmatpush.msrb.mxu2 %v1835_v29  ;;  %v1740_v55 = vmul.f32 %v1737_v50, %v5216_v24  ;;  %v1741_v17 = vmul.f32 %v1735_v33, %v5217_v47  ;;  %v2000_v50 = vld [vmem:[%s5004_s11 + $0x8] sm:$0xff] }
 0x451   : > { %1861 = vmatpush.msra.mxu3 %v1740_v55  ;;  %1901 = vmatpush.msra.mxu1 %v1741_v17 }
 0x453   : > { %1862 = vmatpush.msra.mxu3 %v1738_v34  ;;  %1902 = vmatpush.msra.mxu1 %v1739_v7 }
 0x454   : > { %v1713_v30 = vpop.permute.xlu0 %1712  ;;  %2587 = vmatmul.msk.f32.vlgmr.msrb.gmra.mxu2 %vm1211_vm3, %v1839_v62 }
 0x455   : > { %v1717_v28 = vpop.permute.xlu1 %1716 }
 0x456   : > { %v1719_v52 = vsel %vm767_vm4, %v1713_v30, %v1717_v28  ;;  %v1721_v5 = vsel %vm767_vm4, %v1717_v28, %v1713_v30 }
 0x457   : > { %v1724_v40 = vmul.f32 %v1721_v5, %v5218_v1  ;;  %v1725_v54 = vmul.f32 %v1719_v52, %v5219_v0 }
 0x459   : > { %1863 = vmatpush.msra.mxu3 %v1724_v40  ;;  %1903 = vmatpush.msra.mxu1 %v1725_v54 }
 0x45c   : > { %v1715_v43 = vpop.permute.xlu0 %1714 }
 0x45d   : > { %v1718_v51 = vsel %vm767_vm4, %v1711_v38, %v1715_v43  ;;  %v1720_v18 = vsel %vm767_vm4, %v1715_v43, %v1711_v38  ;;  %v1844_v37 = vpop.permute.xlu1 %1843 }
 0x45e   : > { %v1722_v35 = vmul.f32 %v1720_v18, %v5218_v1  ;;  %v1723_v48 = vmul.f32 %v1718_v51, %v5219_v0 }
 0x460   : > { %1864 = vmatpush.msra.mxu3 %v1722_v35  ;;  %1904 = vmatpush.msra.mxu1 %v1723_v48 }
 0x461   : > { %1865 = vmatmul.f32.vlgmr.msra.gmra.mxu3 %v1838_v6  ;;  %1905 = vmatmul.f32.vlgmr.msra.gmra.mxu1 %v1838_v6 }
 0x4cf   : > { %v1886_v27 = vpop.f32.mrf.mxu2 }
 0x4d7   : > { %v1926_v32 = vpop.f32.mrf.mxu2 }
 0x4de   : > { %v1906_v58 = vpop.f32.mrf.mxu1 }
 0x4df   : > { %v1907_v36 = vadd.f32 %v1906_v58, %v1844_v37 }
 0x4e1   : > { %v1927_v62 = vadd.f32 %v1926_v32, %v1907_v36 }
 0x4e3   : > { %v1930_v29 = vmul.f32 0.70710677, %v1927_v62 }
 0x4e4   : > { %v1866_v31 = vpop.f32.mrf.mxu3 }
 0x4e5   : > { %v4537_v8 = vadd.f32 %v1930_v29, %v4239_v45  ;;  %v1867_v56 = vadd.f32 %v1866_v31, %v1844_v37 }
 0x4e7   : > { %1975 = vrot.lane.b32.xlu1 %v4537_v8, %s2980_s16  ;;  %1983 = vrot.lane.b32.xlu2 %v4537_v8, %s2976_s1  ;;  %v1887_v12 = vadd.f32 %v1886_v27, %v1867_v56 }
 0x4e8   : > { %1991 = vrot.lane.b32.xlu0 %v4537_v8, %s2973_s18 }
 0x4e9   : > { %v1929_v45 = vmul.f32 0.70710677, %v1887_v12 }
 0x4eb   : > { %v4552_v33 = vadd.f32 %v1929_v45, %v4219_v15  ;;  %v1999_v15 = vld [vmem:[%s5004_s11] sm:$0xff] }
 0x4ef   : > { %1951 = vrot.lane.b32.xlu1 %v4537_v8, %s2986_s17  ;;  %1959 = vrot.lane.b32.xlu2 %v4537_v8, %s2982_s30 }
 0x4f0   : > { %1967 = vrot.lane.b32.xlu0 %v4537_v8, %s2977_s27 }
 0x4f7   : > { %1981 = vrot.lane.b32.xlu1 %v4552_v33, %s2976_s1  ;;  %1989 = vrot.lane.b32.xlu2 %v4552_v33, %s2973_s18 }
 0x4f8   : > { %1973 = vrot.lane.b32.xlu0 %v4552_v33, %s2980_s16 }
 0x4ff   : > { %1957 = vrot.lane.b32.xlu1 %v4552_v33, %s2982_s30  ;;  %1965 = vrot.lane.b32.xlu2 %v4552_v33, %s2977_s27 }
 0x500   : > { %1949 = vrot.lane.b32.xlu0 %v4552_v33, %s2986_s17 }
 0x507   : > { %1933 = vrot.lane.b32.xlu1 %v4552_v33, %s2967_s13  ;;  %1941 = vrot.lane.b32.xlu2 %v4552_v33, %s2965_s28 }
 0x508   : > { %1943 = vrot.lane.b32.xlu0 %v4537_v8, %s2965_s28 }
 0x50f   : > { %2003 = vperm.xlu1 %2725, %v1999_v15   ;;  %1935 = vrot.lane.b32.xlu2 %v4537_v8, %s2967_s13 }
 0x510   : > { %2008 = vperm.xlu0 %2724, %v2000_v50  }
 0x541   : > { %v1984_v55 = vpop.permute.xlu2 %1983 }
 0x549   : > { %v1960_v17 = vpop.permute.xlu2 %1959 }
 0x551   : > { %v1990_v7 = vpop.permute.xlu2 %1989 }
 0x559   : > { %v1976_v34 = vpop.permute.xlu1 %1975  ;;  %v1966_v43 = vpop.permute.xlu2 %1965 }
 0x55a   : > { %v1992_v30 = vpop.permute.xlu0 %1991 }
 0x55b   : > { %v1993_v28 = vsel %vm1031_vm10, %v1990_v7, %v1992_v30  ;;  %v1994_v52 = vsel %vm1031_vm10, %v1992_v30, %v1990_v7 }
 0x55c   : > { %v1995_v5 = vmul.f32 %v1993_v28, %v5212_v16  ;;  %v1996_v40 = vmul.f32 %v1994_v52, %v4095_v61 }
 0x55e   : > { %2024 = vmatpush.msra.mxu0 %v1995_v5  ;;  %2047 = vmatpush.msra.mxu2 %v1996_v40 }
 0x561   : > { %v1952_v54 = vpop.permute.xlu1 %1951  ;;  %v1942_v12 = vpop.permute.xlu2 %1941 }
 0x562   : > { %v1968_v38 = vpop.permute.xlu0 %1967 }
 0x563   : > { %v1969_v32 = vsel %vm911_vm14, %v1966_v43, %v1968_v38  ;;  %v1970_v36 = vsel %vm911_vm14, %v1968_v38, %v1966_v43 }
 0x564   : > { %v1971_v31 = vmul.f32 %v1969_v32, %v5215_v60  ;;  %v1972_v56 = vmul.f32 %v1970_v36, %v3948_v63 }
 0x569   : > { %v1982_v51 = vpop.permute.xlu1 %1981  ;;  %v1936_v40 = vpop.permute.xlu2 %1935 }
 0x56a   : > { %v1974_v18 = vpop.permute.xlu0 %1973  ;;  %v1985_v35 = vsel %vm1007_vm13, %v1982_v51, %v1984_v55  ;;  %v1986_v48 = vsel %vm1007_vm13, %v1984_v55, %v1982_v51 }
 0x56b   : > { %v1977_v6 = vsel %vm983_vm1, %v1974_v18, %v1976_v34  ;;  %v1978_v27 = vsel %vm983_vm1, %v1976_v34, %v1974_v18  ;;  %v1987_v37 = vmul.f32 %v1985_v35, %v5213_v57  ;;  %v1988_v58 = vmul.f32 %v1986_v48, %v4114_v22 }
 0x56c   : > { %v1979_v62 = vmul.f32 %v1977_v6, %v5214_v3  ;;  %v1980_v29 = vmul.f32 %v1978_v27, %v4132_v23 }
 0x56d   : > { %2025 = vmatpush.msra.mxu0 %v1987_v37  ;;  %2048 = vmatpush.msra.mxu2 %v1988_v58  ;;  %v1997_v37 = vld [vmem:[%s5003_s10] sm:$0xff]  ;;  %v1998_v58 = vld [vmem:[%s5003_s10 + $0x8] sm:$0xff] }
 0x56f   : > { %2026 = vmatpush.msra.mxu0 %v1979_v62  ;;  %2049 = vmatpush.msra.mxu2 %v1980_v29 }
 0x571   : > { %v1958_v45 = vpop.permute.xlu1 %1957  ;;  %2027 = vmatpush.msra.mxu0 %v1971_v31  ;;  %2050 = vmatpush.msra.mxu2 %v1972_v56 }
 0x572   : > { %v1950_v15 = vpop.permute.xlu0 %1949  ;;  %v1961_v50 = vsel %vm887_vm6, %v1958_v45, %v1960_v17  ;;  %v1962_v55 = vsel %vm887_vm6, %v1960_v17, %v1958_v45 }
 0x573   : > { %v1953_v34 = vsel %vm815_vm11, %v1950_v15, %v1952_v54  ;;  %v1954_v7 = vsel %vm815_vm11, %v1952_v54, %v1950_v15  ;;  %v1963_v30 = vmul.f32 %v1962_v55, %v3868_v53  ;;  %v1964_v28 = vmul.f32 %v1961_v50, %v3978_v41  ;;  %2028 = vmatpush.msra.mxu0 %v4552_v33 }
 0x574   : > { %2051 = vmatpush.msra.mxu2 %v4537_v8  ;;  %v1955_v52 = vmul.f32 %v1954_v7, %v4035_v26  ;;  %v1956_v5 = vmul.f32 %v1953_v34, %v4037_v2 }
 0x575   : > { %2029 = vmatpush.msra.mxu0 %v1963_v30 }
 0x576   : > { %2052 = vmatpush.msra.mxu2 %v1964_v28  ;;  %v2197_v28 = vld [vmem:[%s5220_s20] sm:$0xff]  ;;  %s2604_s20 = sshll.u32 %s3095_s25, 5 }
 0x577   : > { %2030 = vmatpush.msra.mxu0 %v1955_v52 }
 0x578   : > { %2053 = vmatpush.msra.mxu2 %v1956_v5 }
 0x579   : > { %v1934_v17 = vpop.permute.xlu1 %1933 }
 0x57a   : > { %v1944_v38 = vpop.permute.xlu0 %1943  ;;  %v1937_v51 = vsel %vm767_vm4, %v1934_v17, %v1936_v40  ;;  %v1938_v18 = vsel %vm767_vm4, %v1936_v40, %v1934_v17 }
 0x57b   : > { %v1945_v54 = vsel %vm791_vm2, %v1942_v12, %v1944_v38  ;;  %v1946_v43 = vsel %vm791_vm2, %v1944_v38, %v1942_v12  ;;  %v1939_v6 = vmul.f32 %v1938_v18, %v5218_v1  ;;  %v1940_v27 = vmul.f32 %v1937_v51, %v5219_v0 }
 0x57c   : > { %v1947_v35 = vmul.f32 %v1946_v43, %v5216_v24  ;;  %v1948_v48 = vmul.f32 %v1945_v54, %v5217_v47 }
 0x57e   : > { %2031 = vmatpush.msra.mxu0 %v1947_v35  ;;  %2054 = vmatpush.msra.mxu2 %v1948_v48 }
 0x580   : > { %2032 = vmatpush.msra.mxu0 %v1939_v6  ;;  %2055 = vmatpush.msra.mxu2 %v1940_v27 }
 0x581   : > { %2588 = vmatmul.msk.f32.vlgmr.msra.gmra.mxu0 %vm1653_vm12, %v1997_v37  ;;  %2590 = vmatmul.msk.f32.vlgmr.msra.gmra.mxu2 %vm1653_vm12, %v1997_v37  ;;  %v2004_v32 = vpop.permute.xlu1 %2003 }
 0x582   : > { %v2009_v15 = vpop.permute.xlu0 %2008 }
 0x589   : > { %2589 = vmatmul.msk.f32.gmra.mxu0 %vm1653_vm12, %v1998_v58  ;;  %2591 = vmatmul.msk.f32.gmra.mxu2 %vm1653_vm12, %v1998_v58 }
 0x5fe   : > { %v2034_v36 = vpop.f32.mrf.mxu0 }
 0x5ff   : > { %v2035_v62 = vadd.f32 %v2034_v36, %v2004_v32 }
 0x601   : > { %v4640_v29 = vmax.f32 %v2035_v62, 0.0 }
 0x603   : > { %2131 = vrot.lane.b32.xlu0 %v4640_v29, %s2977_s27  ;;  %2147 = vrot.lane.b32.xlu2 %v4640_v29, %s2980_s16 }
 0x604   : > { %2163 = vrot.lane.b32.xlu1 %v4640_v29, %s2976_s1  ;;  %v2057_v31 = vpop.f32.mrf.mxu2 }
 0x605   : > { %v2058_v56 = vadd.f32 %v2057_v31, %v2004_v32 }
 0x606   : > { %v2037_v45 = vpop.f32.mrf.mxu0 }
 0x607   : > { %v4648_v12 = vmax.f32 %v2058_v56, 0.0  ;;  %v2038_v50 = vadd.f32 %v2037_v45, %v2009_v15 }
 0x609   : > { %v4662_v55 = vmax.f32 %v2038_v50, 0.0 }
 0x60b   : > { %2115 = vrot.lane.b32.xlu0 %v4640_v29, %s2982_s30  ;;  %2179 = vrot.lane.b32.xlu2 %v4640_v29, %s2973_s18 }
 0x60c   : > { %2135 = vrot.lane.b32.xlu1 %v4648_v12, %s2977_s27  ;;  %v2060_v34 = vpop.f32.mrf.mxu2 }
 0x60d   : > { %v2061_v7 = vadd.f32 %v2060_v34, %v2009_v15 }
 0x60f   : > { %v4682_v30 = vmax.f32 %v2061_v7, 0.0 }
 0x613   : > { %2099 = vrot.lane.b32.xlu0 %v4640_v29, %s2986_s17  ;;  %2167 = vrot.lane.b32.xlu2 %v4648_v12, %s2976_s1 }
 0x614   : > { %2119 = vrot.lane.b32.xlu1 %v4648_v12, %s2982_s30 }
 0x61b   : > { %2151 = vrot.lane.b32.xlu0 %v4648_v12, %s2980_s16  ;;  %2165 = vrot.lane.b32.xlu2 %v4662_v55, %s2976_s1 }
 0x61c   : > { %2133 = vrot.lane.b32.xlu1 %v4662_v55, %s2977_s27 }
 0x623   : > { %2183 = vrot.lane.b32.xlu0 %v4648_v12, %s2973_s18  ;;  %2117 = vrot.lane.b32.xlu2 %v4662_v55, %s2982_s30 }
 0x624   : > { %2181 = vrot.lane.b32.xlu1 %v4662_v55, %s2973_s18 }
 0x62b   : > { %2149 = vrot.lane.b32.xlu0 %v4662_v55, %s2980_s16  ;;  %2085 = vrot.lane.b32.xlu2 %v4662_v55, %s2965_s28 }
 0x62c   : > { %2101 = vrot.lane.b32.xlu1 %v4662_v55, %s2986_s17 }
 0x633   : > { %2169 = vrot.lane.b32.xlu0 %v4682_v30, %s2976_s1  ;;  %2137 = vrot.lane.b32.xlu2 %v4682_v30, %s2977_s27 }
 0x634   : > { %2153 = vrot.lane.b32.xlu1 %v4682_v30, %s2980_s16 }
 0x63b   : > { %2121 = vrot.lane.b32.xlu0 %v4682_v30, %s2982_s30  ;;  %2185 = vrot.lane.b32.xlu2 %v4682_v30, %s2973_s18 }
 0x63c   : > { %2103 = vrot.lane.b32.xlu1 %v4648_v12, %s2986_s17 }
 0x643   : > { %2069 = vrot.lane.b32.xlu0 %v4662_v55, %s2967_s13  ;;  %2105 = vrot.lane.b32.xlu2 %v4682_v30, %s2986_s17 }
 0x644   : > { %2083 = vrot.lane.b32.xlu1 %v4640_v29, %s2965_s28 }
 0x64b   : > { %2089 = vrot.lane.b32.xlu0 %v4682_v30, %s2965_s28  ;;  %2087 = vrot.lane.b32.xlu2 %v4648_v12, %s2965_s28 }
 0x64c   : > { %2073 = vrot.lane.b32.xlu1 %v4682_v30, %s2967_s13 }
 0x653   : > { %2071 = vrot.lane.b32.xlu0 %v4648_v12, %s2967_s13  ;;  %2067 = vrot.lane.b32.xlu2 %v4640_v29, %s2967_s13 }
 0x654   : > { %2200 = vperm.xlu1 %2725, %v2197_v28  }
 0x65d   : > { %v2148_v52 = vpop.permute.xlu2 %2147 }
 0x665   : > { %v2180_v5 = vpop.permute.xlu2 %2179 }
 0x66d   : > { %v2168_v17 = vpop.permute.xlu2 %2167 }
 0x675   : > { %v2132_v40 = vpop.permute.xlu0 %2131  ;;  %v2166_v38 = vpop.permute.xlu2 %2165 }
 0x676   : > { %v2164_v54 = vpop.permute.xlu1 %2163 }
 0x67d   : > { %v4715_v43 = vpop.permute.xlu0 %2115  ;;  %v4717_v51 = vpop.permute.xlu2 %2117 }
 0x67e   : > { %v2136_v18 = vpop.permute.xlu1 %2135 }
 0x685   : > { %v4719_v35 = vpop.permute.xlu0 %2099  ;;  %v4721_v48 = vpop.permute.xlu2 %2085 }
 0x686   : > { %v4723_v6 = vpop.permute.xlu1 %2119 }
 0x68d   : > { %v2152_v27 = vpop.permute.xlu0 %2151  ;;  %v2138_v37 = vpop.permute.xlu2 %2137 }
 0x68e   : > { %v2134_v58 = vpop.permute.xlu1 %2133 }
 0x695   : > { %v2184_v32 = vpop.permute.xlu0 %2183  ;;  %v2186_v36 = vpop.permute.xlu2 %2185 }
 0x696   : > { %v2182_v62 = vpop.permute.xlu1 %2181  ;;  %v2187_v31 = vsel %vm1031_vm10, %v2180_v5, %v2184_v32  ;;  %v2189_v50 = vsel %vm1031_vm10, %v2184_v32, %v2180_v5  ;;  %v2173_v5 = vsel %vm1007_vm13, %v2168_v17, %v2164_v54 }
 0x697   : > { %v2188_v56 = vsel %vm1031_vm10, %v2182_v62, %v2186_v36  ;;  %v2190_v45 = vsel %vm1031_vm10, %v2186_v36, %v2182_v62  ;;  %v2191_v34 = vmul.f32 %v2187_v31, %v5212_v16  ;;  %v2192_v28 = vmul.f32 %v2189_v50, %v4095_v61 }
 0x698   : > { %v2193_v15 = vmul.f32 %v2188_v56, %v5212_v16  ;;  %v2194_v7 = vmul.f32 %v2190_v45, %v4095_v61  ;;  %v2171_v62 = vsel %vm1007_vm13, %v2164_v54, %v2168_v17  ;;  %v2176_v54 = vmul.f32 %v2173_v5, %v4114_v22 }
 0x699   : > { %v2175_v17 = vmul.f32 %v2171_v62, %v5213_v57  ;;  %v2142_v62 = vsel %vm911_vm14, %v2138_v37, %v2134_v58 }
 0x69a   : > { %2240 = vmatpush.msrb.mxu3 %v2193_v15 }
 0x69c   : > { %2241 = vmatpush.msrb.mxu3 %v2191_v34 }
 0x69d   : > { %v2150_v20 = vpop.permute.xlu0 %2149  ;;  %2592 = vmatmul.msk.f32.vlgmr.msrb.gmra.mxu3 %vm1211_vm3, %v2196_v59 }
 0x69e   : > { %2280 = vmatpush.msra.mxu3 %v2194_v7  ;;  %v2102_v14 = vpop.permute.xlu1 %2101  ;;  %v2157_v7 = vsel %vm983_vm1, %v2152_v27, %v2148_v52 }
 0x6a0   : > { %2281 = vmatpush.msra.mxu3 %v2192_v28 }
 0x6a5   : > { %v2170_v36 = vpop.permute.xlu0 %2169  ;;  %2593 = vmatmul.msk.f32.vlgmr.msra.gmra.mxu3 %vm1211_vm3, %v2196_v59 }
 0x6a6   : > { %v2154_v32 = vpop.permute.xlu1 %2153  ;;  %v2172_v31 = vsel %vm1007_vm13, %v2166_v38, %v2170_v36  ;;  %v2174_v56 = vsel %vm1007_vm13, %v2170_v36, %v2166_v38  ;;  %v2155_v38 = vsel %vm983_vm1, %v2148_v52, %v2152_v27  ;;  %v2139_v52 = vsel %vm911_vm14, %v2132_v40, %v2136_v18 }
 0x6a7   : > { %v2177_v45 = vmul.f32 %v2172_v31, %v5213_v57  ;;  %v2178_v15 = vmul.f32 %v2174_v56, %v4114_v22  ;;  %v2156_v50 = vsel %vm983_vm1, %v2150_v20, %v2154_v32  ;;  %v2158_v34 = vsel %vm983_vm1, %v2154_v32, %v2150_v20 }
 0x6a8   : > { %v2161_v28 = vmul.f32 %v2156_v50, %v5214_v3  ;;  %v2162_v36 = vmul.f32 %v2158_v34, %v4132_v23  ;;  %v2140_v20 = vsel %vm911_vm14, %v2134_v58, %v2138_v37  ;;  %v2159_v59 = vmul.f32 %v2155_v38, %v5214_v3  ;;  %v2106_v58 = vpop.permute.xlu2 %2105 }
 0x6a9   : > { %2206 = vmatpush.msrb.mxu0 %v2177_v45  ;;  %2246 = vmatpush.msrb.mxu1 %v2178_v15  ;;  %v2160_v27 = vmul.f32 %v2157_v7, %v4132_v23  ;;  %v2141_v31 = vsel %vm911_vm14, %v2136_v18, %v2132_v40  ;;  %v2145_v56 = vmul.f32 %v2140_v20, %v5215_v60 }
 0x6aa   : > { %v2146_v45 = vmul.f32 %v2142_v62, %v3948_v63  ;;  %v2143_v37 = vmul.f32 %v2139_v52, %v5215_v60  ;;  %v2144_v15 = vmul.f32 %v2141_v31, %v3948_v63  ;;  %v2125_v34 = vsel %vm887_vm6, %v4723_v6, %v4715_v43 }
 0x6ab   : > { %2207 = vmatpush.msrb.mxu0 %v2175_v17  ;;  %2247 = vmatpush.msrb.mxu1 %v2176_v54  ;;  %v2123_v54 = vsel %vm887_vm6, %v4715_v43, %v4723_v6  ;;  %v2127_v7 = vmul.f32 %v2125_v34, %v3868_v53 }
 0x6ad   : > { %v2122_v5 = vpop.permute.xlu0 %2121  ;;  %2208 = vmatpush.msrb.mxu0 %v2161_v28  ;;  %2248 = vmatpush.msrb.mxu1 %v2162_v36  ;;  %v2128_v28 = vmul.f32 %v2123_v54, %v3978_v41 }
 0x6ae   : > { %v2104_v32 = vpop.permute.xlu1 %2103  ;;  %v2126_v50 = vsel %vm887_vm6, %v2122_v5, %v4717_v51  ;;  %v2124_v40 = vsel %vm887_vm6, %v4717_v51, %v2122_v5 }
 0x6af   : > { %2209 = vmatpush.msrb.mxu0 %v2159_v59  ;;  %2249 = vmatpush.msrb.mxu1 %v2160_v27  ;;  %v2129_v38 = vmul.f32 %v2126_v50, %v3868_v53  ;;  %v2130_v51 = vmul.f32 %v2124_v40, %v3978_v41  ;;  %v2109_v43 = vsel %vm815_vm11, %v2104_v32, %v4719_v35 }
 0x6b0   : > { %v2088_v6 = vpop.permute.xlu2 %2087 }
 0x6b1   : > { %2210 = vmatpush.msrb.mxu0 %v2145_v56  ;;  %2250 = vmatpush.msrb.mxu1 %v2146_v45 }
 0x6b3   : > { %2211 = vmatpush.msrb.mxu0 %v2143_v37  ;;  %2251 = vmatpush.msrb.mxu1 %v2144_v15 }
 0x6b5   : > { %v2070_v18 = vpop.permute.xlu0 %2069  ;;  %2212 = vmatpush.msrb.mxu0 %v4662_v55  ;;  %2252 = vmatpush.msrb.mxu1 %v4682_v30  ;;  %v2110_v55 = vsel %vm815_vm11, %v2106_v58, %v2102_v14  ;;  %v2108_v30 = vsel %vm815_vm11, %v2102_v14, %v2106_v58  ;;  %v2111_v14 = vmul.f32 %v2109_v43, %v4035_v26 }
 0x6b6   : > { %v2084_v17 = vpop.permute.xlu1 %2083  ;;  %v2114_v36 = vmul.f32 %v2108_v30, %v4037_v2 }
 0x6b7   : > { %2213 = vmatpush.msrb.mxu0 %v4640_v29  ;;  %2253 = vmatpush.msrb.mxu1 %v4648_v12  ;;  %v2113_v29 = vmul.f32 %v2110_v55, %v4035_v26  ;;  %v2107_v12 = vsel %vm815_vm11, %v4719_v35, %v2104_v32  ;;  %v2093_v62 = vsel %vm791_vm2, %v2088_v6, %v2084_v17 }
 0x6b8   : > { %v2112_v59 = vmul.f32 %v2107_v12, %v4037_v2  ;;  %v2091_v27 = vsel %vm791_vm2, %v2084_v17, %v2088_v6  ;;  %v2095_v45 = vmul.f32 %v2093_v62, %v5216_v24  ;;  %v2068_v50 = vpop.permute.xlu2 %2067  ;;  %v2357_v62 = vld [vmem:[%s5222_s21 + $0x8] sm:$0xff] }
 0x6b9   : > { %2214 = vmatpush.msrb.mxu0 %v2129_v38  ;;  %2254 = vmatpush.msrb.mxu1 %v2130_v51  ;;  %v2195_v38 = vld [vmem:[#allocation8] sm:$0xff] }
 0x6bb   : > { %2215 = vmatpush.msrb.mxu0 %v2127_v7  ;;  %2255 = vmatpush.msrb.mxu1 %v2128_v28 }
 0x6bd   : > { %v2090_v20 = vpop.permute.xlu0 %2089  ;;  %2216 = vmatpush.msrb.mxu0 %v2113_v29  ;;  %2256 = vmatpush.msrb.mxu1 %v2114_v36 }
 0x6be   : > { %v2074_v5 = vpop.permute.xlu1 %2073  ;;  %v2092_v52 = vsel %vm791_vm2, %v4721_v48, %v2090_v20  ;;  %v2094_v35 = vsel %vm791_vm2, %v2090_v20, %v4721_v48  ;;  %v2096_v48 = vmul.f32 %v2091_v27, %v5217_v47 }
 0x6bf   : > { %v2097_v32 = vmul.f32 %v2094_v35, %v5216_v24  ;;  %v2098_v31 = vmul.f32 %v2092_v52, %v5217_v47  ;;  %2217 = vmatpush.msrb.mxu0 %v2111_v14  ;;  %v2078_v56 = vsel %vm767_vm4, %v2074_v5, %v2070_v18  ;;  %2257 = vmatpush.msrb.mxu1 %v2112_v59 }
 0x6c0   : > { %v2076_v37 = vsel %vm767_vm4, %v2070_v18, %v2074_v5  ;;  %v2081_v58 = vmul.f32 %v2078_v56, %v5218_v1 }
 0x6c1   : > { %2218 = vmatpush.msrb.mxu0 %v2097_v32  ;;  %2258 = vmatpush.msrb.mxu1 %v2098_v31  ;;  %v2082_v15 = vmul.f32 %v2076_v37, %v5219_v0 }
 0x6c3   : > { %2219 = vmatpush.msrb.mxu0 %v2095_v45  ;;  %2259 = vmatpush.msrb.mxu1 %v2096_v48 }
 0x6c5   : > { %v2072_v40 = vpop.permute.xlu0 %2071  ;;  %2220 = vmatpush.msrb.mxu0 %v2081_v58  ;;  %2260 = vmatpush.msrb.mxu1 %v2082_v15 }
 0x6c6   : > { %v2075_v34 = vsel %vm767_vm4, %v2068_v50, %v2072_v40  ;;  %v2077_v17 = vsel %vm767_vm4, %v2072_v40, %v2068_v50  ;;  %v2201_v51 = vpop.permute.xlu1 %2200 }
 0x6c7   : > { %v2079_v18 = vmul.f32 %v2077_v17, %v5218_v1  ;;  %v2080_v54 = vmul.f32 %v2075_v34, %v5219_v0 }
 0x6c9   : > { %2221 = vmatpush.msrb.mxu0 %v2079_v18  ;;  %2261 = vmatpush.msrb.mxu1 %v2080_v54 }
 0x6ca   : > { %2222 = vmatmul.f32.vlgmr.msrb.gmra.mxu0 %v2195_v38  ;;  %2262 = vmatmul.f32.vlgmr.msrb.gmra.mxu1 %v2195_v38  ;;  %v2356_v38 = vld [vmem:[%s5223_s15] sm:$0xff] }
 0x720   : > { %v2243_v55 = vpop.f32.mrf.mxu3 }
 0x728   : > { %v2283_v7 = vpop.f32.mrf.mxu3 }
 0x747   : > { %v2223_v30 = vpop.f32.mrf.mxu0  ;;  %v2263_v28 = vpop.f32.mrf.mxu1 }
 0x748   : > { %v2224_v43 = vadd.f32 %v2223_v30, %v2201_v51  ;;  %v2264_v29 = vadd.f32 %v2263_v28, %v2201_v51 }
 0x74a   : > { %v2244_v6 = vadd.f32 %v2243_v55, %v2224_v43  ;;  %v2284_v12 = vadd.f32 %v2283_v7, %v2264_v29 }
 0x74c   : > { %v2286_v36 = vmul.f32 0.70710677, %v2244_v6  ;;  %v2287_v14 = vmul.f32 0.70710677, %v2284_v12 }
 0x74e   : > { %v4838_v20 = vadd.f32 %v2286_v36, %v4552_v33  ;;  %v4841_v59 = vadd.f32 %v2287_v14, %v4537_v8 }
 0x750   : > { %2338 = vrot.lane.b32.xlu1 %v4838_v20, %s2976_s1  ;;  %2346 = vrot.lane.b32.xlu2 %v4838_v20, %s2973_s18 }
 0x751   : > { %2348 = vrot.lane.b32.xlu0 %v4841_v59, %s2973_s18  ;;  %s605_s18 = scalar_lea.vmem [#allocation11], %s2566_s2  ;;  %s2429_s2 = scalar_lea.sflag [#allocation4], %s3194_s0 }
 0x758   : > { %2332 = vrot.lane.b32.xlu1 %v4841_v59, %s2980_s16  ;;  %2340 = vrot.lane.b32.xlu2 %v4841_v59, %s2976_s1  ;;  %s2897_s1 = scalar_lea.hbm %s5226_s26, 64 }
 0x759   : > { %2330 = vrot.lane.b32.xlu0 %v4838_v20, %s2980_s16 }
 0x760   : > { %2314 = vrot.lane.b32.xlu1 %v4838_v20, %s2982_s30  ;;  %2322 = vrot.lane.b32.xlu2 %v4838_v20, %s2977_s27 }
 0x761   : > { %2324 = vrot.lane.b32.xlu0 %v4841_v59, %s2977_s27  ;;  %s5221_s27 = sld [smem:[#allocation75_spill]] }
 0x767   : > { %v1200_v8 = vld [vmem:[%s5221_s27 + $0x8] sm:$0xff]  ;;  %v1199_v33 = vld [vmem:[%s5221_s27] sm:$0xff] }
 0x768   : > { %2308 = vrot.lane.b32.xlu1 %v4841_v59, %s2986_s17  ;;  %2316 = vrot.lane.b32.xlu2 %v4841_v59, %s2982_s30  ;;  %s2440_s30 = scalar_lea.hbm %s5226_s26, %s2604_s20 }
 0x769   : > { %2306 = vrot.lane.b32.xlu0 %v4838_v20, %s2986_s17  ;;  %s2441_s17 = sshll.u32 %s605_s18, 4  ;;  %s2443_s25 = sshll.u32 %s2440_s30, 4  ;;  %s2442_s17 = int_to_ptr.vmem [resolvable:$true] %s2441_s17  ;;  %s2444_s25 = int_to_ptr.hbm [resolvable:$true] %s2443_s25 }
 0x76a   : > { %s2891_s21 = sshra.s32 %s2444_s25, 4  ;;  %s2892_s21 = int_to_ptr.hbm [resolvable:$true] %s2891_s21 }
 0x76b   : > { %p2898_p11 = scmp.lt.s32.totalorder %s2892_s21, %s5226_s26 }
 0x770   : > { %2290 = vrot.lane.b32.xlu1 %v4838_v20, %s2967_s13  ;;  %2298 = vrot.lane.b32.xlu2 %v4838_v20, %s2965_s28 }
 0x771   : > { %2300 = vrot.lane.b32.xlu0 %v4841_v59, %s2965_s28 }
 0x778   : > { %1208 = vperm.xlu1 %2725, %v1200_v8   ;;  %2292 = vrot.lane.b32.xlu2 %v4841_v59, %s2967_s13  ;;  %s2893_s13 = scalar_lea.hbm %s2892_s21, 32 }
 0x779   : > { %1203 = vperm.xlu0 %2724, %v1199_v33   ;;  %p2894_p1 = scmp.ne.s32.totalorder %s2892_s21, %s2893_s13  ;;  %p2899_p9 = scmp.lt.s32.totalorder %s2897_s1, %s2893_s13 }
 0x77b   : > { %p2895_p4 = pnand %p2894_p1, %p3164_p5  ;;  %p2900_p2 = por %p2899_p9, %p2898_p11 }
 0x77d   : > { %p2896_p8 = pneg %p2895_p4 }
 0x77f   : > { %p2901_p10 = pnand %p2900_p2, %p2896_p8 }
 0x780   : > { %2360 = vperm.xlu2 %2726, %v2356_v38  }
 0x781   : > { %2365 = vperm.xlu0 %2724, %v2357_v62  }
 0x7aa   : > { %v2347_v5 = vpop.permute.xlu2 %2346 }
 0x7b2   : > { %v2341_v52 = vpop.permute.xlu2 %2340 }
 0x7ba   : > { %v2323_v37 = vpop.permute.xlu2 %2322 }
 0x7c2   : > { %v2339_v35 = vpop.permute.xlu1 %2338  ;;  %v2317_v54 = vpop.permute.xlu2 %2316 }
 0x7c3   : > { %v2349_v27 = vpop.permute.xlu0 %2348  ;;  %v2342_v32 = vsel %vm1007_vm13, %v2339_v35, %v2341_v52  ;;  %v2343_v31 = vsel %vm1007_vm13, %v2341_v52, %v2339_v35  ;;  %v2354_v35 = vld [vmem:[#allocation10] sm:$0xff] }
 0x7c4   : > { %v2350_v56 = vsel %vm1031_vm10, %v2347_v5, %v2349_v27  ;;  %v2351_v45 = vsel %vm1031_vm10, %v2349_v27, %v2347_v5  ;;  %v2344_v15 = vmul.f32 %v2342_v32, %v5213_v57  ;;  %v2345_v50 = vmul.f32 %v2343_v31, %v4114_v22  ;;  %v2355_v27 = vld [vmem:[#allocation10 + $0x8] sm:$0xff] }
 0x7c5   : > { %v2352_v48 = vmul.f32 %v2350_v56, %v5212_v16  ;;  %v2353_v58 = vmul.f32 %v2351_v45, %v4095_v61 }
 0x7c7   : > { %2381 = vmatpush.msrb.mxu2 %v2352_v48  ;;  %2404 = vmatpush.msrb.mxu3 %v2353_v58 }
 0x7c9   : > { %2382 = vmatpush.msrb.mxu2 %v2344_v15  ;;  %2405 = vmatpush.msrb.mxu3 %v2345_v50 }
 0x7ca   : > { %v2333_v40 = vpop.permute.xlu1 %2332  ;;  %v2299_v28 = vpop.permute.xlu2 %2298 }
 0x7cb   : > { %v2331_v34 = vpop.permute.xlu0 %2330 }
 0x7cc   : > { %v2334_v17 = vsel %vm983_vm1, %v2331_v34, %v2333_v40  ;;  %v2335_v18 = vsel %vm983_vm1, %v2333_v40, %v2331_v34 }
 0x7cd   : > { %v2336_v16 = vmul.f32 %v2334_v17, %v5214_v3  ;;  %v2337_v61 = vmul.f32 %v2335_v18, %v4132_v23  ;;  %v5225_v17 = vld [vmem:[#allocation20_spill] sm:$0xff] }
 0x7cf   : > { %2383 = vmatpush.msrb.mxu2 %v2336_v16  ;;  %2406 = vmatpush.msrb.mxu3 %v2337_v61  ;;  %v5228_v61 = vld [vmem:[#allocation61_spill] sm:$0xff] }
 0x7d2   : > { %v2315_v22 = vpop.permute.xlu1 %2314  ;;  %v2293_v14 = vpop.permute.xlu2 %2292 }
 0x7d3   : > { %v2325_v57 = vpop.permute.xlu0 %2324  ;;  %v2318_v7 = vsel %vm887_vm6, %v2315_v22, %v2317_v54  ;;  %v2319_v30 = vsel %vm887_vm6, %v2317_v54, %v2315_v22 }
 0x7d4   : > { %v2326_v55 = vsel %vm911_vm14, %v2323_v37, %v2325_v57  ;;  %v2327_v51 = vsel %vm911_vm14, %v2325_v57, %v2323_v37  ;;  %v2320_v43 = vmul.f32 %v2319_v30, %v3868_v53  ;;  %v2321_v29 = vmul.f32 %v2318_v7, %v3978_v41 }
 0x7d5   : > { %v2328_v3 = vmul.f32 %v2326_v55, %v5215_v60  ;;  %v2329_v23 = vmul.f32 %v2327_v51, %v3948_v63 }
 0x7d7   : > { %2384 = vmatpush.msrb.mxu2 %v2328_v3  ;;  %2407 = vmatpush.msrb.mxu3 %v2329_v23 }
 0x7d9   : > { %2385 = vmatpush.msrb.mxu2 %v4838_v20  ;;  %2408 = vmatpush.msrb.mxu3 %v4841_v59 }
 0x7da   : > { %v2309_v60 = vpop.permute.xlu1 %2308  ;;  %v2361_v48 = vpop.permute.xlu2 %2360 }
 0x7db   : > { %2386 = vmatpush.msrb.mxu2 %v2320_v43  ;;  %2409 = vmatpush.msrb.mxu3 %v2321_v29  ;;  %v2307_v63 = vpop.permute.xlu0 %2306 }
 0x7dc   : > { %v2310_v6 = vsel %vm815_vm11, %v2307_v63, %v2309_v60  ;;  %v2311_v12 = vsel %vm815_vm11, %v2309_v60, %v2307_v63 }
 0x7dd   : > { %v2312_v36 = vmul.f32 %v2311_v12, %v4035_v26  ;;  %v2313_v53 = vmul.f32 %v2310_v6, %v4037_v2 }
 0x7df   : > { %2387 = vmatpush.msrb.mxu2 %v2312_v36  ;;  %2410 = vmatpush.msrb.mxu3 %v2313_v53 }
 0x7e2   : > { %v2291_v41 = vpop.permute.xlu1 %2290 }
 0x7e3   : > { %v2301_v20 = vpop.permute.xlu0 %2300  ;;  %v2294_v59 = vsel %vm767_vm4, %v2291_v41, %v2293_v14  ;;  %v2295_v8 = vsel %vm767_vm4, %v2293_v14, %v2291_v41 }
 0x7e4   : > { %v2302_v33 = vsel %vm791_vm2, %v2299_v28, %v2301_v20  ;;  %v2303_v62 = vsel %vm791_vm2, %v2301_v20, %v2299_v28  ;;  %v2296_v5 = vmul.f32 %v2295_v8, %v5218_v1  ;;  %v2297_v52 = vmul.f32 %v2294_v59, %v5219_v0 }
 0x7e5   : > { %v2304_v26 = vmul.f32 %v2303_v62, %v5216_v24  ;;  %v2305_v2 = vmul.f32 %v2302_v33, %v5217_v47 }
 0x7e7   : > { %2388 = vmatpush.msrb.mxu2 %v2304_v26  ;;  %2411 = vmatpush.msrb.mxu3 %v2305_v2 }
 0x7e9   : > { %2389 = vmatpush.msrb.mxu2 %v2296_v5  ;;  %2412 = vmatpush.msrb.mxu3 %v2297_v52 }
 0x7ea   : > { %2594 = vmatmul.msk.f32.vlgmr.msrb.gmra.mxu2 %vm1653_vm12, %v2354_v35  ;;  %2596 = vmatmul.msk.f32.vlgmr.msrb.gmra.mxu3 %vm1653_vm12, %v2354_v35  ;;  %v1209_v1 = vpop.permute.xlu1 %1208 }
 0x7eb   : > { %v1204_v10 = vpop.permute.xlu0 %1203  ;;  %v1239_v31 = vadd.f32 %v4199_v49, %v1209_v1  ;;  %v1331_v56 = vadd.f32 %v4211_v13, %v1209_v1 }
 0x7ec   : > { %v1236_v24 = vadd.f32 %v4193_v25, %v1204_v10  ;;  %v1328_v47 = vadd.f32 %v4203_v4, %v1204_v10 }
 0x7ed   : > { %v1262_v25 = vadd.f32 %v4217_v9, %v1239_v31  ;;  %v1354_v4 = vadd.f32 %v4209_v39, %v1331_v56  ;;  %v5227_v9 = vld [vmem:[#allocation50_spill] sm:$0xff] }
 0x7ee   : > { %v1259_v0 = vadd.f32 %v4215_v42, %v1236_v24  ;;  %v1351_v32 = vadd.f32 %v4205_v19, %v1328_v47 }
 0x7f0   : > { %v1282_v45 = vadd.f32 %v4195_v11, %v1259_v0  ;;  %v1374_v37 = vadd.f32 %v4227_v21, %v1351_v32  ;;  %v5224_v11 = vld [vmem:[#allocation55_spill] sm:$0xff]  ;;  %v1377_v21 = vadd.f32 %v5225_v17, %v1354_v4 }
 0x7f1   : > { %v1285_v34 = vadd.f32 %v5224_v11, %v1262_v25 }
 0x7f2   : > { %2595 = vmatmul.msk.f32.gmra.mxu2 %vm1653_vm12, %v2355_v27  ;;  %2597 = vmatmul.msk.f32.gmra.mxu3 %vm1653_vm12, %v2355_v27  ;;  %v1305_v42 = vadd.f32 %v4191_v46, %v1282_v45  ;;  %v1397_v50 = vadd.f32 %v4207_v44, %v1374_v37  ;;  %v1400_v54 = vadd.f32 %v5228_v61, %v1377_v21 }
 0x7f3   : > { %v2366_v46 = vpop.permute.xlu0 %2365  ;;  %v1308_v18 = vadd.f32 %v5227_v9, %v1285_v34 }
 0x86d   : > { %v2391_v58 = vpop.f32.mrf.mxu2  ;;  %v2414_v15 = vpop.f32.mrf.mxu3 }
 0x86e   : > { %v2392_v19 = vadd.f32 %v2391_v58, %v2361_v48  ;;  %v2415_v49 = vadd.f32 %v2414_v15, %v2361_v48 }
 0x870   : > { %v2420_v40 = vadd.f32 %v2392_v19, %v1305_v42  ;;  %v2421_v13 = vadd.f32 %v2415_v49, %v1397_v50 }
 0x872   : > { %2424 = vst [vmem:[%s605_s18] sm:$0xff] %v2420_v40 }
 0x873   : > { %2425 = vst [vmem:[%s605_s18 + $0x8] sm:$0xff] %v2421_v13 }
 0x875   : > { %v2394_v44 = vpop.f32.mrf.mxu2  ;;  %v2417_v39 = vpop.f32.mrf.mxu3 }
 0x876   : > { %v2395_v16 = vadd.f32 %v2394_v44, %v2366_v46  ;;  %v2418_v22 = vadd.f32 %v2417_v39, %v2366_v46 }
 0x878   : > { %v2422_v57 = vadd.f32 %v2395_v16, %v1308_v18  ;;  %v2423_v38 = vadd.f32 %v2418_v22, %v1400_v54 }
 0x87a   : > { %2426 = vst [vmem:[%s605_s18 + $0x10] sm:$0xff] %v2422_v57 }
 0x87b   : > { %2427 = vst [vmem:[%s605_s18 + $0x18] sm:$0xff] %v2423_v38 }
 0x87c   : > { %2904 = shalt.err (!%p2901_p10)
}
 0x87d   : > { %s2988_s0 = smov 256  }
 0x87e   : > { %2623 = dma.vmem_to_hbm [thread:$0]  (%p3164_p5), %s2442_s17, 512, %s2444_s25, %s2429_s2, %s2988_s0, %s2988_s0, %s2965_s28  }
 0x87f PF: > { %s5229_s18 = sld [smem:[#allocation16_spill]]  ;;  %p5231_p12 = scmp.ge.s32.totalorder %s2951_s24, 2 }
 0x881   : > { %p2643_p13 = pnand %p5231_p12, %p3109_p6 }
 0x883   : > { %p2644_p0 = pneg %p2643_p13 }
 0x885   : > { %s2458_s5 = sand.u32 1, %s5229_s18  }
 0x886   : > { %s2459_s14 = scalar_lea.sflag [#allocation4], %s2458_s5 }
 0x887   : > { %2934 = dma.done.wait (%p2644_p0), %s2459_s14, 512  }
 0x888   : > { %2936 = vsyncadd (%p2644_p0), %s2459_s14, 4294966784  ;;  %p31_p3 = scmp.ge.s32.totalorder %s3151_s12, 4   ;;  %s5232_s21 = smov %s2943_s22 }
 0x889   : > { %s5233_s22 = smov %s2947_s23  ;;  %s5234_s23 = smov %s3160_s3 }
 0x88a   : > { %s5235_s24 = smov %s3151_s12  ;;  %33 = sbr.rel (!%p31_p3) target bundleno = 19 (0x13), region = 168 }
 0x88f   :  { %2465 = vsyncpa [#allocation3], 1 }
 0x890   :  { %2467 = vsyncpa [#allocation3 + $0x1], 1 }
 0x891   :  { %2468 = vsyncpa [#allocation6], 1 }
 0x892   :  { %2469 = vsyncpa [#allocation9], 1 }
 0x893   :  { %2470 = vsyncpa [#allocation4], 1 }
 0x894   :  { %2472 = vsyncpa [#allocation4 + $0x1], 1 }

</bundles_post_ra>
